<compile_context>
chip_gen: v7x
topology: tpu7x:2x2x1
jax: 0.10.0
libtpu: 0.0.40
codegen_flags: <defaults>
</compile_context>

<pallas_src>
import functools

import jax
import jax.numpy as jnp
from jax.experimental import pallas as pl
from jax.experimental.pallas import tpu as pltpu


LANE = 128  # lane-dense output width for the head outputs

_LAYER_KEYS = ("wqkv", "bqkv", "wo", "bo", "ln1_g", "ln1_b",
               "w1", "b1", "w2", "b2", "ln2_g", "ln2_b")


# ------------------------------ fused kernel -------------------------------

def _transfeat_kernel(*refs, B, N, D, nhead, n_layers):
    it = iter(refs)
    x_ref = next(it)           # (B*N, patch_dim)
    pos_ref = next(it)         # (B*N, D)      position embed, tiled over batch
    smul_ref = next(it)        # (B*N, LANE)   [w, h, 1, 1, ...] per row
    pe_w = next(it)            # (patch_dim, D)
    pe_b = next(it)            # (1, D)
    enc = [{k: next(it) for k in _LAYER_KEYS} for _ in range(n_layers)]
    kp_head = [(next(it), next(it)) for _ in range(3)]
    desc_head = [(next(it), next(it)) for _ in range(3)]
    kp_out_ref = next(it)      # (B*N, LANE)
    desc_out_ref = next(it)    # (B*N, LANE)
    attn_scratch = next(it)    # VMEM (B*N, D) f32

    Dh = D // nhead
    inv_sqrt_dh = 1.0 / (Dh ** 0.5)

    def layer_norm(y, g_ref, b_ref, eps=1e-5):
        mean = jnp.mean(y, axis=-1, keepdims=True)
        var = jnp.mean((y - mean) ** 2, axis=-1, keepdims=True)
        return (y - mean) * jax.lax.rsqrt(var + eps) * g_ref[...] + b_ref[...]

    # Patch embedding + position embedding.
    x = jnp.dot(x_ref[...], pe_w[...], preferred_element_type=jnp.float32)
    x = x + pe_b[...] + pos_ref[...]

    # Encoder stack (post-norm TransformerEncoderLayer, ReLU FFN, dropout=0).
    for lp in enc:
        # Fused QKV projection: one (M, D) @ (D, 3D) MXU push.
        qkv = jnp.dot(x, lp["wqkv"][...],
                      preferred_element_type=jnp.float32) + lp["bqkv"][...]

        # Per-(batch, head) attention via static row/lane slices; the output
        # projection is folded per head so no lane concatenation is needed.
        for b in range(B):
            r0 = b * N
            o_b = jnp.zeros((N, D), jnp.float32)
            for h in range(nhead):
                c0 = h * Dh
                q = qkv[r0:r0 + N, c0:c0 + Dh]
                k = qkv[r0:r0 + N, D + c0:D + c0 + Dh]
                v = qkv[r0:r0 + N, 2 * D + c0:2 * D + c0 + Dh]
                s = jax.lax.dot_general(
                    q, k, (((1,), (1,)), ((), ())),
                    preferred_element_type=jnp.float32) * inv_sqrt_dh
                s = s - jnp.max(s, axis=-1, keepdims=True)
                p = jnp.exp(s)
                p = p * pl.reciprocal(jnp.sum(p, axis=-1, keepdims=True),
                                      approx=True)
                attn = jnp.dot(p, v, preferred_element_type=jnp.float32)
                o_b = o_b + jnp.dot(attn, lp["wo"][c0:c0 + Dh, :],
                                    preferred_element_type=jnp.float32)
            attn_scratch[r0:r0 + N, :] = o_b

        o = attn_scratch[...] + lp["bo"][...]
        x = layer_norm(x + o, lp["ln1_g"], lp["ln1_b"])
        ff = jnp.dot(x, lp["w1"][...],
                     preferred_element_type=jnp.float32) + lp["b1"][...]
        ff = jnp.maximum(ff, 0.0)
        ff = jnp.dot(ff, lp["w2"][...],
                     preferred_element_type=jnp.float32) + lp["b2"][...]
        x = layer_norm(x + ff, lp["ln2_g"], lp["ln2_b"])

    def run_mlp(y, layers):
        out = y
        n = len(layers)
        for i, (w_ref, b_ref) in enumerate(layers):
            out = jnp.dot(out, w_ref[...],
                          preferred_element_type=jnp.float32) + b_ref[...]
            if i < n - 1:
                out = jnp.maximum(out, 0.0)
        return out

    # Heads. Final weights are zero-padded to LANE columns -> lane-dense stores.
    kp_logits = run_mlp(x, kp_head)                      # (M, LANE)
    kps3 = 1.0 / (1.0 + jnp.exp(-kp_logits))             # sigmoid
    kp_out_ref[...] = (kps3 * smul_ref[...]).astype(kp_out_ref.dtype)
    desc_out_ref[...] = run_mlp(x, desc_head).astype(desc_out_ref.dtype)


# --------------------------- model configuration ---------------------------

CONFIG = dict(
    patch_size=4,
    image_shape=(16, 16, 4),        # (H, W, C)
    transformer_dim=32,
    nhead=2,
    num_encoder_layers=2,
    num_decoder_layers=2,           # unused by forward (see TODO above)
    dim_feedforward=64,
    desc_dim=16,
    keypoints_num=8,                # query_embed unused by forward
)


def init_params(key, cfg):
    H, W, C = cfg["image_shape"]
    p = cfg["patch_size"]
    D = cfg["transformer_dim"]
    FF = cfg["dim_feedforward"]
    patch_dim = C * p * p
    num_patches = (H // p) * (W // p)

    def dense(k, n_in, n_out):
        w = jax.random.normal(k, (n_in, n_out), jnp.float32) * 0.02
        b = jnp.zeros((1, n_out), jnp.float32)
        return w, b

    def padded_dense(k, n_in, n_out, pad_to):
        w, b = dense(k, n_in, n_out)
        w = jnp.pad(w, ((0, 0), (0, pad_to - n_out)))
        b = jnp.pad(b, ((0, 0), (0, pad_to - n_out)))
        return w, b

    keys = iter(jax.random.split(key, 64))
    params = {}
    params["patch_embed_w"], params["patch_embed_b"] = dense(next(keys), patch_dim, D)
    params["position_embed"] = jax.random.normal(
        next(keys), (1, num_patches, D), jnp.float32)

    layers = []
    for _ in range(cfg["num_encoder_layers"]):
        lp = {}
        wq, bq = dense(next(keys), D, D)
        wk, bk = dense(next(keys), D, D)
        wv, bv = dense(next(keys), D, D)
        lp["wqkv"] = jnp.concatenate([wq, wk, wv], axis=1)   # (D, 3D) fused QKV
        lp["bqkv"] = jnp.concatenate([bq, bk, bv], axis=1)   # (1, 3D)
        lp["wo"], lp["bo"] = dense(next(keys), D, D)
        lp["ln1_g"] = jnp.ones((1, D), jnp.float32)
        lp["ln1_b"] = jnp.zeros((1, D), jnp.float32)
        lp["w1"], lp["b1"] = dense(next(keys), D, FF)
        lp["w2"], lp["b2"] = dense(next(keys), FF, D)
        lp["ln2_g"] = jnp.ones((1, D), jnp.float32)
        lp["ln2_b"] = jnp.zeros((1, D), jnp.float32)
        layers.append(lp)
    params["encoder_layers"] = layers

    # MLP heads: num_layers=3 -> [D->D, D->D, D->out]; final layer lane-padded.
    params["kp_head"] = [dense(next(keys), D, D), dense(next(keys), D, D),
                         padded_dense(next(keys), D, 3, LANE)]
    params["desc_head"] = [dense(next(keys), D, D), dense(next(keys), D, D),
                           padded_dense(next(keys), D, cfg["desc_dim"], LANE)]
    return params


# ------------------------------- forward pass ------------------------------

def _full_spec(shape):
    zeros = (0,) * len(shape)
    return pl.BlockSpec(shape, lambda i, _z=zeros: _z)


def trans_feat_forward(params, img, img_shape, cfg):
    """img: (B, C, H, W) float32 (NCHW); img_shape: (B, 2) = (h, w) per image."""
    B, C, H, W = img.shape
    p = cfg["patch_size"]
    D = cfg["transformer_dim"]
    nhead = cfg["nhead"]
    desc_dim = cfg["desc_dim"]
    n_layers = cfg["num_encoder_layers"]

    # rearrange 'b c (h p1) (w p2) -> b (h w) (p1 p2 c)'
    x = img.reshape(B, C, H // p, p, W // p, p)
    x = jnp.transpose(x, (0, 2, 4, 3, 5, 1))             # b, h, w, p1, p2, c
    N = (H // p) * (W // p)
    M = B * N
    x = x.reshape(M, p * p * C)

    # Position embedding tiled over batch -> (M, D).
    pos = jnp.broadcast_to(params["position_embed"][:, :N], (B, N, D)).reshape(M, D)

    # Keypoint scale multiplier, lane-padded: cols [w, h, 1, 1, ...].
    h, w = img_shape[:, 0], img_shape[:, 1]
    sf = jnp.stack([w, h], axis=1).astype(jnp.float32)                 # (B, 2)
    sm = jnp.concatenate([sf, jnp.ones((B, LANE - 2), jnp.float32)], axis=1)
    scale_mult = jnp.broadcast_to(sm[:, None, :], (B, N, LANE)).reshape(M, LANE)

    flat_inputs = [x, pos, scale_mult,
                   params["patch_embed_w"], params["patch_embed_b"]]
    for lp in params["encoder_layers"]:
        flat_inputs += [lp[k] for k in _LAYER_KEYS]
    for w_, b_ in params["kp_head"]:
        flat_inputs += [w_, b_]
    for w_, b_ in params["desc_head"]:
        flat_inputs += [w_, b_]

    kernel = functools.partial(_transfeat_kernel, B=B, N=N, D=D,
                               nhead=nhead, n_layers=n_layers)

    kp_out, desc_out = pl.pallas_call(
        kernel,
        out_shape=(jax.ShapeDtypeStruct((M, LANE), jnp.float32),
                   jax.ShapeDtypeStruct((M, LANE), jnp.float32)),
        grid=(1,),
        in_specs=[_full_spec(a.shape) for a in flat_inputs],
        out_specs=[pl.BlockSpec((M, LANE), lambda i: (0, 0)),
                   pl.BlockSpec((M, LANE), lambda i: (0, 0))],
        scratch_shapes=[pltpu.VMEM((M, D), jnp.float32)],
        compiler_params=pltpu.CompilerParams(
            dimension_semantics=("arbitrary",)),
    )(*flat_inputs)

    kps = kp_out[:, 0:2].reshape(B, N, 2)                 # already scaled by (w, h)
    scores = kp_out[:, 2].reshape(B, N)
    descs = desc_out[:, :desc_dim].reshape(B, N, desc_dim)
    return kps, scores, descs


# ----------------------------------- main -----------------------------------

if __name__ == "__main__":
    key = jax.random.PRNGKey(0)
    k_param, k_img = jax.random.split(key)

    cfg = CONFIG
    H, W, C = cfg["image_shape"]
    B = 2

    params = init_params(k_param, cfg)
    img = jax.random.normal(k_img, (B, C, H, W), jnp.float32)
    img_shape = jnp.array([[H, W]] * B, jnp.float32)      # (B, 2) = (h, w)

    fwd = jax.jit(functools.partial(trans_feat_forward, cfg=cfg))
    kps, scores, descs = fwd(params, img, img_shape)
    jax.block_until_ready((kps, scores, descs))

    Np = (H // cfg["patch_size"]) * (W // cfg["patch_size"])
    assert kps.shape == (B, Np, 2)
    assert scores.shape == (B, Np)
    assert descs.shape == (B, Np, cfg["desc_dim"])
    print("KERNEL_OK")
</pallas_src>

<mosaic_0001>
module attributes {stable_mosaic.version = 11 : i64} {
  func.func @_transfeat_kernel(%arg0: i32, %arg1: memref<32x64xf32, #tpu.memory_space<vmem>>, %arg2: memref<32x32xf32, #tpu.memory_space<vmem>>, %arg3: memref<32x128xf32, #tpu.memory_space<vmem>>, %arg4: memref<64x32xf32, #tpu.memory_space<vmem>>, %arg5: memref<1x32xf32, #tpu.memory_space<vmem>>, %arg6: memref<32x96xf32, #tpu.memory_space<vmem>>, %arg7: memref<1x96xf32, #tpu.memory_space<vmem>>, %arg8: memref<32x32xf32, #tpu.memory_space<vmem>>, %arg9: memref<1x32xf32, #tpu.memory_space<vmem>>, %arg10: memref<1x32xf32, #tpu.memory_space<vmem>>, %arg11: memref<1x32xf32, #tpu.memory_space<vmem>>, %arg12: memref<32x64xf32, #tpu.memory_space<vmem>>, %arg13: memref<1x64xf32, #tpu.memory_space<vmem>>, %arg14: memref<64x32xf32, #tpu.memory_space<vmem>>, %arg15: memref<1x32xf32, #tpu.memory_space<vmem>>, %arg16: memref<1x32xf32, #tpu.memory_space<vmem>>, %arg17: memref<1x32xf32, #tpu.memory_space<vmem>>, %arg18: memref<32x96xf32, #tpu.memory_space<vmem>>, %arg19: memref<1x96xf32, #tpu.memory_space<vmem>>, %arg20: memref<32x32xf32, #tpu.memory_space<vmem>>, %arg21: memref<1x32xf32, #tpu.memory_space<vmem>>, %arg22: memref<1x32xf32, #tpu.memory_space<vmem>>, %arg23: memref<1x32xf32, #tpu.memory_space<vmem>>, %arg24: memref<32x64xf32, #tpu.memory_space<vmem>>, %arg25: memref<1x64xf32, #tpu.memory_space<vmem>>, %arg26: memref<64x32xf32, #tpu.memory_space<vmem>>, %arg27: memref<1x32xf32, #tpu.memory_space<vmem>>, %arg28: memref<1x32xf32, #tpu.memory_space<vmem>>, %arg29: memref<1x32xf32, #tpu.memory_space<vmem>>, %arg30: memref<32x32xf32, #tpu.memory_space<vmem>>, %arg31: memref<1x32xf32, #tpu.memory_space<vmem>>, %arg32: memref<32x32xf32, #tpu.memory_space<vmem>>, %arg33: memref<1x32xf32, #tpu.memory_space<vmem>>, %arg34: memref<32x128xf32, #tpu.memory_space<vmem>>, %arg35: memref<1x128xf32, #tpu.memory_space<vmem>>, %arg36: memref<32x32xf32, #tpu.memory_space<vmem>>, %arg37: memref<1x32xf32, #tpu.memory_space<vmem>>, %arg38: memref<32x32xf32, #tpu.memory_space<vmem>>, %arg39: memref<1x32xf32, #tpu.memory_space<vmem>>, %arg40: memref<32x128xf32, #tpu.memory_space<vmem>>, %arg41: memref<1x128xf32, #tpu.memory_space<vmem>>, %arg42: memref<32x128xf32, #tpu.memory_space<vmem>>, %arg43: memref<32x128xf32, #tpu.memory_space<vmem>>, %arg44: memref<32x32xf32, #tpu.memory_space<vmem>>) attributes {dimension_semantics = [#tpu.dimension_semantics<arbitrary>], iteration_bounds = array<i64: 1>, scalar_prefetch = 0 : i64, scratch_operands = 1 : i64, tpu.core_type = #tpu.core_type<tc>, window_params = [{pipeline_mode = #tpu.pipeline_mode<synchronous>, transform_indices = @transform_0, window_bounds = array<i64: 32, 64>}, {pipeline_mode = #tpu.pipeline_mode<synchronous>, transform_indices = @transform_1, window_bounds = array<i64: 32, 32>}, {pipeline_mode = #tpu.pipeline_mode<synchronous>, transform_indices = @transform_2, window_bounds = array<i64: 32, 128>}, {pipeline_mode = #tpu.pipeline_mode<synchronous>, transform_indices = @transform_3, window_bounds = array<i64: 64, 32>}, {pipeline_mode = #tpu.pipeline_mode<synchronous>, transform_indices = @transform_4, window_bounds = array<i64: 1, 32>}, {pipeline_mode = #tpu.pipeline_mode<synchronous>, transform_indices = @transform_5, window_bounds = array<i64: 32, 96>}, {pipeline_mode = #tpu.pipeline_mode<synchronous>, transform_indices = @transform_6, window_bounds = array<i64: 1, 96>}, {pipeline_mode = #tpu.pipeline_mode<synchronous>, transform_indices = @transform_7, window_bounds = array<i64: 32, 32>}, {pipeline_mode = #tpu.pipeline_mode<synchronous>, transform_indices = @transform_8, window_bounds = array<i64: 1, 32>}, {pipeline_mode = #tpu.pipeline_mode<synchronous>, transform_indices = @transform_9, window_bounds = array<i64: 1, 32>}, {pipeline_mode = #tpu.pipeline_mode<synchronous>, transform_indices = @transform_10, window_bounds = array<i64: 1, 32>}, {pipeline_mode = #tpu.pipeline_mode<synchronous>, transform_indices = @transform_11, window_bounds = array<i64: 32, 64>}, {pipeline_mode = #tpu.pipeline_mode<synchronous>, transform_indices = @transform_12, window_bounds = array<i64: 1, 64>}, {pipeline_mode = #tpu.pipeline_mode<synchronous>, transform_indices = @transform_13, window_bounds = array<i64: 64, 32>}, {pipeline_mode = #tpu.pipeline_mode<synchronous>, transform_indices = @transform_14, window_bounds = array<i64: 1, 32>}, {pipeline_mode = #tpu.pipeline_mode<synchronous>, transform_indices = @transform_15, window_bounds = array<i64: 1, 32>}, {pipeline_mode = #tpu.pipeline_mode<synchronous>, transform_indices = @transform_16, window_bounds = array<i64: 1, 32>}, {pipeline_mode = #tpu.pipeline_mode<synchronous>, transform_indices = @transform_17, window_bounds = array<i64: 32, 96>}, {pipeline_mode = #tpu.pipeline_mode<synchronous>, transform_indices = @transform_18, window_bounds = array<i64: 1, 96>}, {pipeline_mode = #tpu.pipeline_mode<synchronous>, transform_indices = @transform_19, window_bounds = array<i64: 32, 32>}, {pipeline_mode = #tpu.pipeline_mode<synchronous>, transform_indices = @transform_20, window_bounds = array<i64: 1, 32>}, {pipeline_mode = #tpu.pipeline_mode<synchronous>, transform_indices = @transform_21, window_bounds = array<i64: 1, 32>}, {pipeline_mode = #tpu.pipeline_mode<synchronous>, transform_indices = @transform_22, window_bounds = array<i64: 1, 32>}, {pipeline_mode = #tpu.pipeline_mode<synchronous>, transform_indices = @transform_23, window_bounds = array<i64: 32, 64>}, {pipeline_mode = #tpu.pipeline_mode<synchronous>, transform_indices = @transform_24, window_bounds = array<i64: 1, 64>}, {pipeline_mode = #tpu.pipeline_mode<synchronous>, transform_indices = @transform_25, window_bounds = array<i64: 64, 32>}, {pipeline_mode = #tpu.pipeline_mode<synchronous>, transform_indices = @transform_26, window_bounds = array<i64: 1, 32>}, {pipeline_mode = #tpu.pipeline_mode<synchronous>, transform_indices = @transform_27, window_bounds = array<i64: 1, 32>}, {pipeline_mode = #tpu.pipeline_mode<synchronous>, transform_indices = @transform_28, window_bounds = array<i64: 1, 32>}, {pipeline_mode = #tpu.pipeline_mode<synchronous>, transform_indices = @transform_29, window_bounds = array<i64: 32, 32>}, {pipeline_mode = #tpu.pipeline_mode<synchronous>, transform_indices = @transform_30, window_bounds = array<i64: 1, 32>}, {pipeline_mode = #tpu.pipeline_mode<synchronous>, transform_indices = @transform_31, window_bounds = array<i64: 32, 32>}, {pipeline_mode = #tpu.pipeline_mode<synchronous>, transform_indices = @transform_32, window_bounds = array<i64: 1, 32>}, {pipeline_mode = #tpu.pipeline_mode<synchronous>, transform_indices = @transform_33, window_bounds = array<i64: 32, 128>}, {pipeline_mode = #tpu.pipeline_mode<synchronous>, transform_indices = @transform_34, window_bounds = array<i64: 1, 128>}, {pipeline_mode = #tpu.pipeline_mode<synchronous>, transform_indices = @transform_35, window_bounds = array<i64: 32, 32>}, {pipeline_mode = #tpu.pipeline_mode<synchronous>, transform_indices = @transform_36, window_bounds = array<i64: 1, 32>}, {pipeline_mode = #tpu.pipeline_mode<synchronous>, transform_indices = @transform_37, window_bounds = array<i64: 32, 32>}, {pipeline_mode = #tpu.pipeline_mode<synchronous>, transform_indices = @transform_38, window_bounds = array<i64: 1, 32>}, {pipeline_mode = #tpu.pipeline_mode<synchronous>, transform_indices = @transform_39, window_bounds = array<i64: 32, 128>}, {pipeline_mode = #tpu.pipeline_mode<synchronous>, transform_indices = @transform_40, window_bounds = array<i64: 1, 128>}, {pipeline_mode = #tpu.pipeline_mode<synchronous>, transform_indices = @transform_41, window_bounds = array<i64: 32, 128>}, {pipeline_mode = #tpu.pipeline_mode<synchronous>, transform_indices = @transform_42, window_bounds = array<i64: 32, 128>}]} {
    %c0 = arith.constant 0 : index
    %c0_0 = arith.constant 0 : index
    %0 = vector.load %arg1[%c0, %c0_0] : memref<32x64xf32, #tpu.memory_space<vmem>>, vector<32x64xf32>
    %c0_1 = arith.constant 0 : index
    %c0_2 = arith.constant 0 : index
    %1 = vector.load %arg4[%c0_1, %c0_2] : memref<64x32xf32, #tpu.memory_space<vmem>>, vector<64x32xf32>
    %cst = arith.constant dense<0.000000e+00> : vector<32x32xf32>
    %2 = tpu.matmul %0, %1, %cst {dimension_numbers = #tpu.dot_dimension_numbers<[1], [0], [0], [1], [0, 0, 1, 1], [], []>} : vector<32x64xf32>, vector<64x32xf32>, vector<32x32xf32> -> vector<32x32xf32>
    %c0_3 = arith.constant 0 : index
    %c0_4 = arith.constant 0 : index
    %3 = vector.load %arg5[%c0_3, %c0_4] : memref<1x32xf32, #tpu.memory_space<vmem>>, vector<1x32xf32>
    %4 = vector.broadcast %3 : vector<1x32xf32> to vector<32x32xf32>
    %5 = arith.addf %2, %4 : vector<32x32xf32>
    %c0_5 = arith.constant 0 : index
    %c0_6 = arith.constant 0 : index
    %6 = vector.load %arg2[%c0_5, %c0_6] : memref<32x32xf32, #tpu.memory_space<vmem>>, vector<32x32xf32>
    %7 = arith.addf %5, %6 : vector<32x32xf32>
    %c0_7 = arith.constant 0 : index
    %c0_8 = arith.constant 0 : index
    %8 = vector.load %arg6[%c0_7, %c0_8] : memref<32x96xf32, #tpu.memory_space<vmem>>, vector<32x96xf32>
    %cst_9 = arith.constant dense<0.000000e+00> : vector<32x96xf32>
    %9 = tpu.matmul %7, %8, %cst_9 {dimension_numbers = #tpu.dot_dimension_numbers<[1], [0], [0], [1], [0, 0, 1, 1], [], []>} : vector<32x32xf32>, vector<32x96xf32>, vector<32x96xf32> -> vector<32x96xf32>
    %c0_10 = arith.constant 0 : index
    %c0_11 = arith.constant 0 : index
    %10 = vector.load %arg7[%c0_10, %c0_11] : memref<1x96xf32, #tpu.memory_space<vmem>>, vector<1x96xf32>
    %11 = vector.broadcast %10 : vector<1x96xf32> to vector<32x96xf32>
    %12 = arith.addf %9, %11 : vector<32x96xf32>
    %cst_12 = arith.constant 0.000000e+00 : f32
    %13 = vector.broadcast %cst_12 : f32 to vector<16x32xf32>
    %14 = vector.extract_strided_slice %12 {offsets = [0, 0], sizes = [16, 16], strides = [1, 1]} : vector<32x96xf32> to vector<16x16xf32>
    %15 = vector.extract_strided_slice %12 {offsets = [0, 32], sizes = [16, 16], strides = [1, 1]} : vector<32x96xf32> to vector<16x16xf32>
    %16 = vector.extract_strided_slice %12 {offsets = [0, 64], sizes = [16, 16], strides = [1, 1]} : vector<32x96xf32> to vector<16x16xf32>
    %cst_13 = arith.constant dense<0.000000e+00> : vector<16x16xf32>
    %17 = tpu.matmul %14, %15, %cst_13 {dimension_numbers = #tpu.dot_dimension_numbers<[1], [1], [0], [0], [0, 0, 1, 0], [], []>} : vector<16x16xf32>, vector<16x16xf32>, vector<16x16xf32> -> vector<16x16xf32>
    %cst_14 = arith.constant 2.500000e-01 : f32
    %18 = vector.broadcast %cst_14 : f32 to vector<16x16xf32>
    %19 = arith.mulf %17, %18 : vector<16x16xf32>
    %cst_15 = arith.constant dense<0xFF800000> : vector<16xf32>
    %20 = vector.multi_reduction <maximumf>, %19, %cst_15 [1] : vector<16x16xf32> to vector<16xf32>
    %21 = vector.shape_cast %20 : vector<16xf32> to vector<16x1xf32>
    %22 = vector.broadcast %21 : vector<16x1xf32> to vector<16x16xf32>
    %23 = arith.subf %19, %22 : vector<16x16xf32>
    %24 = math.exp %23 : vector<16x16xf32>
    %cst_16 = arith.constant dense<0.000000e+00> : vector<16xf32>
    %25 = vector.multi_reduction <add>, %24, %cst_16 [1] : vector<16x16xf32> to vector<16xf32>
    %26 = vector.shape_cast %25 : vector<16xf32> to vector<16x1xf32>
    %27 = tpu.reciprocal %26 {approx = true} : vector<16x1xf32> -> vector<16x1xf32>
    %28 = vector.broadcast %27 : vector<16x1xf32> to vector<16x16xf32>
    %29 = arith.mulf %24, %28 : vector<16x16xf32>
    %cst_17 = arith.constant dense<0.000000e+00> : vector<16x16xf32>
    %30 = tpu.matmul %29, %16, %cst_17 {dimension_numbers = #tpu.dot_dimension_numbers<[1], [0], [0], [1], [0, 0, 1, 1], [], []>} : vector<16x16xf32>, vector<16x16xf32>, vector<16x16xf32> -> vector<16x16xf32>
    %c0_18 = arith.constant 0 : index
    %c0_19 = arith.constant 0 : index
    %31 = vector.load %arg8[%c0_18, %c0_19] : memref<32x32xf32, #tpu.memory_space<vmem>>, vector<16x32xf32>
    %cst_20 = arith.constant dense<0.000000e+00> : vector<16x32xf32>
    %32 = tpu.matmul %30, %31, %cst_20 {dimension_numbers = #tpu.dot_dimension_numbers<[1], [0], [0], [1], [0, 0, 1, 1], [], []>} : vector<16x16xf32>, vector<16x32xf32>, vector<16x32xf32> -> vector<16x32xf32>
    %33 = arith.addf %13, %32 : vector<16x32xf32>
    %34 = vector.extract_strided_slice %12 {offsets = [0, 16], sizes = [16, 16], strides = [1, 1]} : vector<32x96xf32> to vector<16x16xf32>
    %35 = vector.extract_strided_slice %12 {offsets = [0, 48], sizes = [16, 16], strides = [1, 1]} : vector<32x96xf32> to vector<16x16xf32>
    %36 = vector.extract_strided_slice %12 {offsets = [0, 80], sizes = [16, 16], strides = [1, 1]} : vector<32x96xf32> to vector<16x16xf32>
    %cst_21 = arith.constant dense<0.000000e+00> : vector<16x16xf32>
    %37 = tpu.matmul %34, %35, %cst_21 {dimension_numbers = #tpu.dot_dimension_numbers<[1], [1], [0], [0], [0, 0, 1, 0], [], []>} : vector<16x16xf32>, vector<16x16xf32>, vector<16x16xf32> -> vector<16x16xf32>
    %cst_22 = arith.constant 2.500000e-01 : f32
    %38 = vector.broadcast %cst_22 : f32 to vector<16x16xf32>
    %39 = arith.mulf %37, %38 : vector<16x16xf32>
    %cst_23 = arith.constant dense<0xFF800000> : vector<16xf32>
    %40 = vector.multi_reduction <maximumf>, %39, %cst_23 [1] : vector<16x16xf32> to vector<16xf32>
    %41 = vector.shape_cast %40 : vector<16xf32> to vector<16x1xf32>
    %42 = vector.broadcast %41 : vector<16x1xf32> to vector<16x16xf32>
    %43 = arith.subf %39, %42 : vector<16x16xf32>
    %44 = math.exp %43 : vector<16x16xf32>
    %cst_24 = arith.constant dense<0.000000e+00> : vector<16xf32>
    %45 = vector.multi_reduction <add>, %44, %cst_24 [1] : vector<16x16xf32> to vector<16xf32>
    %46 = vector.shape_cast %45 : vector<16xf32> to vector<16x1xf32>
    %47 = tpu.reciprocal %46 {approx = true} : vector<16x1xf32> -> vector<16x1xf32>
    %48 = vector.broadcast %47 : vector<16x1xf32> to vector<16x16xf32>
    %49 = arith.mulf %44, %48 : vector<16x16xf32>
    %cst_25 = arith.constant dense<0.000000e+00> : vector<16x16xf32>
    %50 = tpu.matmul %49, %36, %cst_25 {dimension_numbers = #tpu.dot_dimension_numbers<[1], [0], [0], [1], [0, 0, 1, 1], [], []>} : vector<16x16xf32>, vector<16x16xf32>, vector<16x16xf32> -> vector<16x16xf32>
    %c16 = arith.constant 16 : index
    %c0_26 = arith.constant 0 : index
    %51 = vector.load %arg8[%c16, %c0_26] : memref<32x32xf32, #tpu.memory_space<vmem>>, vector<16x32xf32>
    %cst_27 = arith.constant dense<0.000000e+00> : vector<16x32xf32>
    %52 = tpu.matmul %50, %51, %cst_27 {dimension_numbers = #tpu.dot_dimension_numbers<[1], [0], [0], [1], [0, 0, 1, 1], [], []>} : vector<16x16xf32>, vector<16x32xf32>, vector<16x32xf32> -> vector<16x32xf32>
    %53 = arith.addf %33, %52 : vector<16x32xf32>
    %c0_28 = arith.constant 0 : index
    %c0_29 = arith.constant 0 : index
    %54 = vector.load %arg44[%c0_28, %c0_29] : memref<32x32xf32, #tpu.memory_space<vmem>>, vector<16x32xf32>
    tpu.vector_store %arg44[%c0_28, %c0_29], %53 {strides = array<i32>} : memref<32x32xf32, #tpu.memory_space<vmem>>, vector<16x32xf32>,
    %cst_30 = arith.constant 0.000000e+00 : f32
    %55 = vector.broadcast %cst_30 : f32 to vector<16x32xf32>
    %56 = vector.extract_strided_slice %12 {offsets = [16, 0], sizes = [16, 16], strides = [1, 1]} : vector<32x96xf32> to vector<16x16xf32>
    %57 = vector.extract_strided_slice %12 {offsets = [16, 32], sizes = [16, 16], strides = [1, 1]} : vector<32x96xf32> to vector<16x16xf32>
    %58 = vector.extract_strided_slice %12 {offsets = [16, 64], sizes = [16, 16], strides = [1, 1]} : vector<32x96xf32> to vector<16x16xf32>
    %cst_31 = arith.constant dense<0.000000e+00> : vector<16x16xf32>
    %59 = tpu.matmul %56, %57, %cst_31 {dimension_numbers = #tpu.dot_dimension_numbers<[1], [1], [0], [0], [0, 0, 1, 0], [], []>} : vector<16x16xf32>, vector<16x16xf32>, vector<16x16xf32> -> vector<16x16xf32>
    %cst_32 = arith.constant 2.500000e-01 : f32
    %60 = vector.broadcast %cst_32 : f32 to vector<16x16xf32>
    %61 = arith.mulf %59, %60 : vector<16x16xf32>
    %cst_33 = arith.constant dense<0xFF800000> : vector<16xf32>
    %62 = vector.multi_reduction <maximumf>, %61, %cst_33 [1] : vector<16x16xf32> to vector<16xf32>
    %63 = vector.shape_cast %62 : vector<16xf32> to vector<16x1xf32>
    %64 = vector.broadcast %63 : vector<16x1xf32> to vector<16x16xf32>
    %65 = arith.subf %61, %64 : vector<16x16xf32>
    %66 = math.exp %65 : vector<16x16xf32>
    %cst_34 = arith.constant dense<0.000000e+00> : vector<16xf32>
    %67 = vector.multi_reduction <add>, %66, %cst_34 [1] : vector<16x16xf32> to vector<16xf32>
    %68 = vector.shape_cast %67 : vector<16xf32> to vector<16x1xf32>
    %69 = tpu.reciprocal %68 {approx = true} : vector<16x1xf32> -> vector<16x1xf32>
    %70 = vector.broadcast %69 : vector<16x1xf32> to vector<16x16xf32>
    %71 = arith.mulf %66, %70 : vector<16x16xf32>
    %cst_35 = arith.constant dense<0.000000e+00> : vector<16x16xf32>
    %72 = tpu.matmul %71, %58, %cst_35 {dimension_numbers = #tpu.dot_dimension_numbers<[1], [0], [0], [1], [0, 0, 1, 1], [], []>} : vector<16x16xf32>, vector<16x16xf32>, vector<16x16xf32> -> vector<16x16xf32>
    %c0_36 = arith.constant 0 : index
    %c0_37 = arith.constant 0 : index
    %73 = vector.load %arg8[%c0_36, %c0_37] : memref<32x32xf32, #tpu.memory_space<vmem>>, vector<16x32xf32>
    %cst_38 = arith.constant dense<0.000000e+00> : vector<16x32xf32>
    %74 = tpu.matmul %72, %73, %cst_38 {dimension_numbers = #tpu.dot_dimension_numbers<[1], [0], [0], [1], [0, 0, 1, 1], [], []>} : vector<16x16xf32>, vector<16x32xf32>, vector<16x32xf32> -> vector<16x32xf32>
    %75 = arith.addf %55, %74 : vector<16x32xf32>
    %76 = vector.extract_strided_slice %12 {offsets = [16, 16], sizes = [16, 16], strides = [1, 1]} : vector<32x96xf32> to vector<16x16xf32>
    %77 = vector.extract_strided_slice %12 {offsets = [16, 48], sizes = [16, 16], strides = [1, 1]} : vector<32x96xf32> to vector<16x16xf32>
    %78 = vector.extract_strided_slice %12 {offsets = [16, 80], sizes = [16, 16], strides = [1, 1]} : vector<32x96xf32> to vector<16x16xf32>
    %cst_39 = arith.constant dense<0.000000e+00> : vector<16x16xf32>
    %79 = tpu.matmul %76, %77, %cst_39 {dimension_numbers = #tpu.dot_dimension_numbers<[1], [1], [0], [0], [0, 0, 1, 0], [], []>} : vector<16x16xf32>, vector<16x16xf32>, vector<16x16xf32> -> vector<16x16xf32>
    %cst_40 = arith.constant 2.500000e-01 : f32
    %80 = vector.broadcast %cst_40 : f32 to vector<16x16xf32>
    %81 = arith.mulf %79, %80 : vector<16x16xf32>
    %cst_41 = arith.constant dense<0xFF800000> : vector<16xf32>
    %82 = vector.multi_reduction <maximumf>, %81, %cst_41 [1] : vector<16x16xf32> to vector<16xf32>
    %83 = vector.shape_cast %82 : vector<16xf32> to vector<16x1xf32>
    %84 = vector.broadcast %83 : vector<16x1xf32> to vector<16x16xf32>
    %85 = arith.subf %81, %84 : vector<16x16xf32>
    %86 = math.exp %85 : vector<16x16xf32>
    %cst_42 = arith.constant dense<0.000000e+00> : vector<16xf32>
    %87 = vector.multi_reduction <add>, %86, %cst_42 [1] : vector<16x16xf32> to vector<16xf32>
    %88 = vector.shape_cast %87 : vector<16xf32> to vector<16x1xf32>
    %89 = tpu.reciprocal %88 {approx = true} : vector<16x1xf32> -> vector<16x1xf32>
    %90 = vector.broadcast %89 : vector<16x1xf32> to vector<16x16xf32>
    %91 = arith.mulf %86, %90 : vector<16x16xf32>
    %cst_43 = arith.constant dense<0.000000e+00> : vector<16x16xf32>
    %92 = tpu.matmul %91, %78, %cst_43 {dimension_numbers = #tpu.dot_dimension_numbers<[1], [0], [0], [1], [0, 0, 1, 1], [], []>} : vector<16x16xf32>, vector<16x16xf32>, vector<16x16xf32> -> vector<16x16xf32>
    %c16_44 = arith.constant 16 : index
    %c0_45 = arith.constant 0 : index
    %93 = vector.load %arg8[%c16_44, %c0_45] : memref<32x32xf32, #tpu.memory_space<vmem>>, vector<16x32xf32>
    %cst_46 = arith.constant dense<0.000000e+00> : vector<16x32xf32>
    %94 = tpu.matmul %92, %93, %cst_46 {dimension_numbers = #tpu.dot_dimension_numbers<[1], [0], [0], [1], [0, 0, 1, 1], [], []>} : vector<16x16xf32>, vector<16x32xf32>, vector<16x32xf32> -> vector<16x32xf32>
    %95 = arith.addf %75, %94 : vector<16x32xf32>
    %c16_47 = arith.constant 16 : index
    %c0_48 = arith.constant 0 : index
    %96 = vector.load %arg44[%c16_47, %c0_48] : memref<32x32xf32, #tpu.memory_space<vmem>>, vector<16x32xf32>
    tpu.vector_store %arg44[%c16_47, %c0_48], %95 {strides = array<i32>} : memref<32x32xf32, #tpu.memory_space<vmem>>, vector<16x32xf32>,
    %c0_49 = arith.constant 0 : index
    %c0_50 = arith.constant 0 : index
    %97 = vector.load %arg44[%c0_49, %c0_50] : memref<32x32xf32, #tpu.memory_space<vmem>>, vector<32x32xf32>
    %c0_51 = arith.constant 0 : index
    %c0_52 = arith.constant 0 : index
    %98 = vector.load %arg9[%c0_51, %c0_52] : memref<1x32xf32, #tpu.memory_space<vmem>>, vector<1x32xf32>
    %99 = vector.broadcast %98 : vector<1x32xf32> to vector<32x32xf32>
    %100 = arith.addf %97, %99 : vector<32x32xf32>
    %101 = arith.addf %7, %100 : vector<32x32xf32>
    %cst_53 = arith.constant dense<0.000000e+00> : vector<32xf32>
    %102 = vector.multi_reduction <add>, %101, %cst_53 [1] : vector<32x32xf32> to vector<32xf32>
    %103 = vector.shape_cast %102 : vector<32xf32> to vector<32x1xf32>
    %cst_54 = arith.constant 3.200000e+01 : f32
    %104 = vector.broadcast %cst_54 : f32 to vector<32x1xf32>
    %105 = arith.divf %103, %104 : vector<32x1xf32>
    %106 = vector.broadcast %105 : vector<32x1xf32> to vector<32x32xf32>
    %107 = arith.subf %101, %106 : vector<32x32xf32>
    %108 = arith.mulf %107, %107 : vector<32x32xf32>
    %cst_55 = arith.constant dense<0.000000e+00> : vector<32xf32>
    %109 = vector.multi_reduction <add>, %108, %cst_55 [1] : vector<32x32xf32> to vector<32xf32>
    %110 = vector.shape_cast %109 : vector<32xf32> to vector<32x1xf32>
    %cst_56 = arith.constant 3.200000e+01 : f32
    %111 = vector.broadcast %cst_56 : f32 to vector<32x1xf32>
    %112 = arith.divf %110, %111 : vector<32x1xf32>
    %113 = vector.broadcast %105 : vector<32x1xf32> to vector<32x32xf32>
    %114 = arith.subf %101, %113 : vector<32x32xf32>
    %cst_57 = arith.constant 9.99999974E-6 : f32
    %115 = vector.broadcast %cst_57 : f32 to vector<32x1xf32>
    %116 = arith.addf %112, %115 : vector<32x1xf32>
    %117 = math.rsqrt %116 : vector<32x1xf32>
    %118 = vector.broadcast %117 : vector<32x1xf32> to vector<32x32xf32>
    %119 = arith.mulf %114, %118 : vector<32x32xf32>
    %c0_58 = arith.constant 0 : index
    %c0_59 = arith.constant 0 : index
    %120 = vector.load %arg10[%c0_58, %c0_59] : memref<1x32xf32, #tpu.memory_space<vmem>>, vector<1x32xf32>
    %121 = vector.broadcast %120 : vector<1x32xf32> to vector<32x32xf32>
    %122 = arith.mulf %119, %121 : vector<32x32xf32>
    %c0_60 = arith.constant 0 : index
    %c0_61 = arith.constant 0 : index
    %123 = vector.load %arg11[%c0_60, %c0_61] : memref<1x32xf32, #tpu.memory_space<vmem>>, vector<1x32xf32>
    %124 = vector.broadcast %123 : vector<1x32xf32> to vector<32x32xf32>
    %125 = arith.addf %122, %124 : vector<32x32xf32>
    %c0_62 = arith.constant 0 : index
    %c0_63 = arith.constant 0 : index
    %126 = vector.load %arg12[%c0_62, %c0_63] : memref<32x64xf32, #tpu.memory_space<vmem>>, vector<32x64xf32>
    %cst_64 = arith.constant dense<0.000000e+00> : vector<32x64xf32>
    %127 = tpu.matmul %125, %126, %cst_64 {dimension_numbers = #tpu.dot_dimension_numbers<[1], [0], [0], [1], [0, 0, 1, 1], [], []>} : vector<32x32xf32>, vector<32x64xf32>, vector<32x64xf32> -> vector<32x64xf32>
    %c0_65 = arith.constant 0 : index
    %c0_66 = arith.constant 0 : index
    %128 = vector.load %arg13[%c0_65, %c0_66] : memref<1x64xf32, #tpu.memory_space<vmem>>, vector<1x64xf32>
    %129 = vector.broadcast %128 : vector<1x64xf32> to vector<32x64xf32>
    %130 = arith.addf %127, %129 : vector<32x64xf32>
    %cst_67 = arith.constant 0.000000e+00 : f32
    %131 = vector.broadcast %cst_67 : f32 to vector<32x64xf32>
    %132 = arith.maximumf %130, %131 : vector<32x64xf32>
    %c0_68 = arith.constant 0 : index
    %c0_69 = arith.constant 0 : index
    %133 = vector.load %arg14[%c0_68, %c0_69] : memref<64x32xf32, #tpu.memory_space<vmem>>, vector<64x32xf32>
    %cst_70 = arith.constant dense<0.000000e+00> : vector<32x32xf32>
    %134 = tpu.matmul %132, %133, %cst_70 {dimension_numbers = #tpu.dot_dimension_numbers<[1], [0], [0], [1], [0, 0, 1, 1], [], []>} : vector<32x64xf32>, vector<64x32xf32>, vector<32x32xf32> -> vector<32x32xf32>
    %c0_71 = arith.constant 0 : index
    %c0_72 = arith.constant 0 : index
    %135 = vector.load %arg15[%c0_71, %c0_72] : memref<1x32xf32, #tpu.memory_space<vmem>>, vector<1x32xf32>
    %136 = vector.broadcast %135 : vector<1x32xf32> to vector<32x32xf32>
    %137 = arith.addf %134, %136 : vector<32x32xf32>
    %138 = arith.addf %125, %137 : vector<32x32xf32>
    %cst_73 = arith.constant dense<0.000000e+00> : vector<32xf32>
    %139 = vector.multi_reduction <add>, %138, %cst_73 [1] : vector<32x32xf32> to vector<32xf32>
    %140 = vector.shape_cast %139 : vector<32xf32> to vector<32x1xf32>
    %cst_74 = arith.constant 3.200000e+01 : f32
    %141 = vector.broadcast %cst_74 : f32 to vector<32x1xf32>
    %142 = arith.divf %140, %141 : vector<32x1xf32>
    %143 = vector.broadcast %142 : vector<32x1xf32> to vector<32x32xf32>
    %144 = arith.subf %138, %143 : vector<32x32xf32>
    %145 = arith.mulf %144, %144 : vector<32x32xf32>
    %cst_75 = arith.constant dense<0.000000e+00> : vector<32xf32>
    %146 = vector.multi_reduction <add>, %145, %cst_75 [1] : vector<32x32xf32> to vector<32xf32>
    %147 = vector.shape_cast %146 : vector<32xf32> to vector<32x1xf32>
    %cst_76 = arith.constant 3.200000e+01 : f32
    %148 = vector.broadcast %cst_76 : f32 to vector<32x1xf32>
    %149 = arith.divf %147, %148 : vector<32x1xf32>
    %150 = vector.broadcast %142 : vector<32x1xf32> to vector<32x32xf32>
    %151 = arith.subf %138, %150 : vector<32x32xf32>
    %cst_77 = arith.constant 9.99999974E-6 : f32
    %152 = vector.broadcast %cst_77 : f32 to vector<32x1xf32>
    %153 = arith.addf %149, %152 : vector<32x1xf32>
    %154 = math.rsqrt %153 : vector<32x1xf32>
    %155 = vector.broadcast %154 : vector<32x1xf32> to vector<32x32xf32>
    %156 = arith.mulf %151, %155 : vector<32x32xf32>
    %c0_78 = arith.constant 0 : index
    %c0_79 = arith.constant 0 : index
    %157 = vector.load %arg16[%c0_78, %c0_79] : memref<1x32xf32, #tpu.memory_space<vmem>>, vector<1x32xf32>
    %158 = vector.broadcast %157 : vector<1x32xf32> to vector<32x32xf32>
    %159 = arith.mulf %156, %158 : vector<32x32xf32>
    %c0_80 = arith.constant 0 : index
    %c0_81 = arith.constant 0 : index
    %160 = vector.load %arg17[%c0_80, %c0_81] : memref<1x32xf32, #tpu.memory_space<vmem>>, vector<1x32xf32>
    %161 = vector.broadcast %160 : vector<1x32xf32> to vector<32x32xf32>
    %162 = arith.addf %159, %161 : vector<32x32xf32>
    %c0_82 = arith.constant 0 : index
    %c0_83 = arith.constant 0 : index
    %163 = vector.load %arg18[%c0_82, %c0_83] : memref<32x96xf32, #tpu.memory_space<vmem>>, vector<32x96xf32>
    %cst_84 = arith.constant dense<0.000000e+00> : vector<32x96xf32>
    %164 = tpu.matmul %162, %163, %cst_84 {dimension_numbers = #tpu.dot_dimension_numbers<[1], [0], [0], [1], [0, 0, 1, 1], [], []>} : vector<32x32xf32>, vector<32x96xf32>, vector<32x96xf32> -> vector<32x96xf32>
    %c0_85 = arith.constant 0 : index
    %c0_86 = arith.constant 0 : index
    %165 = vector.load %arg19[%c0_85, %c0_86] : memref<1x96xf32, #tpu.memory_space<vmem>>, vector<1x96xf32>
    %166 = vector.broadcast %165 : vector<1x96xf32> to vector<32x96xf32>
    %167 = arith.addf %164, %166 : vector<32x96xf32>
    %cst_87 = arith.constant 0.000000e+00 : f32
    %168 = vector.broadcast %cst_87 : f32 to vector<16x32xf32>
    %169 = vector.extract_strided_slice %167 {offsets = [0, 0], sizes = [16, 16], strides = [1, 1]} : vector<32x96xf32> to vector<16x16xf32>
    %170 = vector.extract_strided_slice %167 {offsets = [0, 32], sizes = [16, 16], strides = [1, 1]} : vector<32x96xf32> to vector<16x16xf32>
    %171 = vector.extract_strided_slice %167 {offsets = [0, 64], sizes = [16, 16], strides = [1, 1]} : vector<32x96xf32> to vector<16x16xf32>
    %cst_88 = arith.constant dense<0.000000e+00> : vector<16x16xf32>
    %172 = tpu.matmul %169, %170, %cst_88 {dimension_numbers = #tpu.dot_dimension_numbers<[1], [1], [0], [0], [0, 0, 1, 0], [], []>} : vector<16x16xf32>, vector<16x16xf32>, vector<16x16xf32> -> vector<16x16xf32>
    %cst_89 = arith.constant 2.500000e-01 : f32
    %173 = vector.broadcast %cst_89 : f32 to vector<16x16xf32>
    %174 = arith.mulf %172, %173 : vector<16x16xf32>
    %cst_90 = arith.constant dense<0xFF800000> : vector<16xf32>
    %175 = vector.multi_reduction <maximumf>, %174, %cst_90 [1] : vector<16x16xf32> to vector<16xf32>
    %176 = vector.shape_cast %175 : vector<16xf32> to vector<16x1xf32>
    %177 = vector.broadcast %176 : vector<16x1xf32> to vector<16x16xf32>
    %178 = arith.subf %174, %177 : vector<16x16xf32>
    %179 = math.exp %178 : vector<16x16xf32>
    %cst_91 = arith.constant dense<0.000000e+00> : vector<16xf32>
    %180 = vector.multi_reduction <add>, %179, %cst_91 [1] : vector<16x16xf32> to vector<16xf32>
    %181 = vector.shape_cast %180 : vector<16xf32> to vector<16x1xf32>
    %182 = tpu.reciprocal %181 {approx = true} : vector<16x1xf32> -> vector<16x1xf32>
    %183 = vector.broadcast %182 : vector<16x1xf32> to vector<16x16xf32>
    %184 = arith.mulf %179, %183 : vector<16x16xf32>
    %cst_92 = arith.constant dense<0.000000e+00> : vector<16x16xf32>
    %185 = tpu.matmul %184, %171, %cst_92 {dimension_numbers = #tpu.dot_dimension_numbers<[1], [0], [0], [1], [0, 0, 1, 1], [], []>} : vector<16x16xf32>, vector<16x16xf32>, vector<16x16xf32> -> vector<16x16xf32>
    %c0_93 = arith.constant 0 : index
    %c0_94 = arith.constant 0 : index
    %186 = vector.load %arg20[%c0_93, %c0_94] : memref<32x32xf32, #tpu.memory_space<vmem>>, vector<16x32xf32>
    %cst_95 = arith.constant dense<0.000000e+00> : vector<16x32xf32>
    %187 = tpu.matmul %185, %186, %cst_95 {dimension_numbers = #tpu.dot_dimension_numbers<[1], [0], [0], [1], [0, 0, 1, 1], [], []>} : vector<16x16xf32>, vector<16x32xf32>, vector<16x32xf32> -> vector<16x32xf32>
    %188 = arith.addf %168, %187 : vector<16x32xf32>
    %189 = vector.extract_strided_slice %167 {offsets = [0, 16], sizes = [16, 16], strides = [1, 1]} : vector<32x96xf32> to vector<16x16xf32>
    %190 = vector.extract_strided_slice %167 {offsets = [0, 48], sizes = [16, 16], strides = [1, 1]} : vector<32x96xf32> to vector<16x16xf32>
    %191 = vector.extract_strided_slice %167 {offsets = [0, 80], sizes = [16, 16], strides = [1, 1]} : vector<32x96xf32> to vector<16x16xf32>
    %cst_96 = arith.constant dense<0.000000e+00> : vector<16x16xf32>
    %192 = tpu.matmul %189, %190, %cst_96 {dimension_numbers = #tpu.dot_dimension_numbers<[1], [1], [0], [0], [0, 0, 1, 0], [], []>} : vector<16x16xf32>, vector<16x16xf32>, vector<16x16xf32> -> vector<16x16xf32>
    %cst_97 = arith.constant 2.500000e-01 : f32
    %193 = vector.broadcast %cst_97 : f32 to vector<16x16xf32>
    %194 = arith.mulf %192, %193 : vector<16x16xf32>
    %cst_98 = arith.constant dense<0xFF800000> : vector<16xf32>
    %195 = vector.multi_reduction <maximumf>, %194, %cst_98 [1] : vector<16x16xf32> to vector<16xf32>
    %196 = vector.shape_cast %195 : vector<16xf32> to vector<16x1xf32>
    %197 = vector.broadcast %196 : vector<16x1xf32> to vector<16x16xf32>
    %198 = arith.subf %194, %197 : vector<16x16xf32>
    %199 = math.exp %198 : vector<16x16xf32>
    %cst_99 = arith.constant dense<0.000000e+00> : vector<16xf32>
    %200 = vector.multi_reduction <add>, %199, %cst_99 [1] : vector<16x16xf32> to vector<16xf32>
    %201 = vector.shape_cast %200 : vector<16xf32> to vector<16x1xf32>
    %202 = tpu.reciprocal %201 {approx = true} : vector<16x1xf32> -> vector<16x1xf32>
    %203 = vector.broadcast %202 : vector<16x1xf32> to vector<16x16xf32>
    %204 = arith.mulf %199, %203 : vector<16x16xf32>
    %cst_100 = arith.constant dense<0.000000e+00> : vector<16x16xf32>
    %205 = tpu.matmul %204, %191, %cst_100 {dimension_numbers = #tpu.dot_dimension_numbers<[1], [0], [0], [1], [0, 0, 1, 1], [], []>} : vector<16x16xf32>, vector<16x16xf32>, vector<16x16xf32> -> vector<16x16xf32>
    %c16_101 = arith.constant 16 : index
    %c0_102 = arith.constant 0 : index
    %206 = vector.load %arg20[%c16_101, %c0_102] : memref<32x32xf32, #tpu.memory_space<vmem>>, vector<16x32xf32>
    %cst_103 = arith.constant dense<0.000000e+00> : vector<16x32xf32>
    %207 = tpu.matmul %205, %206, %cst_103 {dimension_numbers = #tpu.dot_dimension_numbers<[1], [0], [0], [1], [0, 0, 1, 1], [], []>} : vector<16x16xf32>, vector<16x32xf32>, vector<16x32xf32> -> vector<16x32xf32>
    %208 = arith.addf %188, %207 : vector<16x32xf32>
    %c0_104 = arith.constant 0 : index
    %c0_105 = arith.constant 0 : index
    %209 = vector.load %arg44[%c0_104, %c0_105] : memref<32x32xf32, #tpu.memory_space<vmem>>, vector<16x32xf32>
    tpu.vector_store %arg44[%c0_104, %c0_105], %208 {strides = array<i32>} : memref<32x32xf32, #tpu.memory_space<vmem>>, vector<16x32xf32>,
    %cst_106 = arith.constant 0.000000e+00 : f32
    %210 = vector.broadcast %cst_106 : f32 to vector<16x32xf32>
    %211 = vector.extract_strided_slice %167 {offsets = [16, 0], sizes = [16, 16], strides = [1, 1]} : vector<32x96xf32> to vector<16x16xf32>
    %212 = vector.extract_strided_slice %167 {offsets = [16, 32], sizes = [16, 16], strides = [1, 1]} : vector<32x96xf32> to vector<16x16xf32>
    %213 = vector.extract_strided_slice %167 {offsets = [16, 64], sizes = [16, 16], strides = [1, 1]} : vector<32x96xf32> to vector<16x16xf32>
    %cst_107 = arith.constant dense<0.000000e+00> : vector<16x16xf32>
    %214 = tpu.matmul %211, %212, %cst_107 {dimension_numbers = #tpu.dot_dimension_numbers<[1], [1], [0], [0], [0, 0, 1, 0], [], []>} : vector<16x16xf32>, vector<16x16xf32>, vector<16x16xf32> -> vector<16x16xf32>
    %cst_108 = arith.constant 2.500000e-01 : f32
    %215 = vector.broadcast %cst_108 : f32 to vector<16x16xf32>
    %216 = arith.mulf %214, %215 : vector<16x16xf32>
    %cst_109 = arith.constant dense<0xFF800000> : vector<16xf32>
    %217 = vector.multi_reduction <maximumf>, %216, %cst_109 [1] : vector<16x16xf32> to vector<16xf32>
    %218 = vector.shape_cast %217 : vector<16xf32> to vector<16x1xf32>
    %219 = vector.broadcast %218 : vector<16x1xf32> to vector<16x16xf32>
    %220 = arith.subf %216, %219 : vector<16x16xf32>
    %221 = math.exp %220 : vector<16x16xf32>
    %cst_110 = arith.constant dense<0.000000e+00> : vector<16xf32>
    %222 = vector.multi_reduction <add>, %221, %cst_110 [1] : vector<16x16xf32> to vector<16xf32>
    %223 = vector.shape_cast %222 : vector<16xf32> to vector<16x1xf32>
    %224 = tpu.reciprocal %223 {approx = true} : vector<16x1xf32> -> vector<16x1xf32>
    %225 = vector.broadcast %224 : vector<16x1xf32> to vector<16x16xf32>
    %226 = arith.mulf %221, %225 : vector<16x16xf32>
    %cst_111 = arith.constant dense<0.000000e+00> : vector<16x16xf32>
    %227 = tpu.matmul %226, %213, %cst_111 {dimension_numbers = #tpu.dot_dimension_numbers<[1], [0], [0], [1], [0, 0, 1, 1], [], []>} : vector<16x16xf32>, vector<16x16xf32>, vector<16x16xf32> -> vector<16x16xf32>
    %c0_112 = arith.constant 0 : index
    %c0_113 = arith.constant 0 : index
    %228 = vector.load %arg20[%c0_112, %c0_113] : memref<32x32xf32, #tpu.memory_space<vmem>>, vector<16x32xf32>
    %cst_114 = arith.constant dense<0.000000e+00> : vector<16x32xf32>
    %229 = tpu.matmul %227, %228, %cst_114 {dimension_numbers = #tpu.dot_dimension_numbers<[1], [0], [0], [1], [0, 0, 1, 1], [], []>} : vector<16x16xf32>, vector<16x32xf32>, vector<16x32xf32> -> vector<16x32xf32>
    %230 = arith.addf %210, %229 : vector<16x32xf32>
    %231 = vector.extract_strided_slice %167 {offsets = [16, 16], sizes = [16, 16], strides = [1, 1]} : vector<32x96xf32> to vector<16x16xf32>
    %232 = vector.extract_strided_slice %167 {offsets = [16, 48], sizes = [16, 16], strides = [1, 1]} : vector<32x96xf32> to vector<16x16xf32>
    %233 = vector.extract_strided_slice %167 {offsets = [16, 80], sizes = [16, 16], strides = [1, 1]} : vector<32x96xf32> to vector<16x16xf32>
    %cst_115 = arith.constant dense<0.000000e+00> : vector<16x16xf32>
    %234 = tpu.matmul %231, %232, %cst_115 {dimension_numbers = #tpu.dot_dimension_numbers<[1], [1], [0], [0], [0, 0, 1, 0], [], []>} : vector<16x16xf32>, vector<16x16xf32>, vector<16x16xf32> -> vector<16x16xf32>
    %cst_116 = arith.constant 2.500000e-01 : f32
    %235 = vector.broadcast %cst_116 : f32 to vector<16x16xf32>
    %236 = arith.mulf %234, %235 : vector<16x16xf32>
    %cst_117 = arith.constant dense<0xFF800000> : vector<16xf32>
    %237 = vector.multi_reduction <maximumf>, %236, %cst_117 [1] : vector<16x16xf32> to vector<16xf32>
    %238 = vector.shape_cast %237 : vector<16xf32> to vector<16x1xf32>
    %239 = vector.broadcast %238 : vector<16x1xf32> to vector<16x16xf32>
    %240 = arith.subf %236, %239 : vector<16x16xf32>
    %241 = math.exp %240 : vector<16x16xf32>
    %cst_118 = arith.constant dense<0.000000e+00> : vector<16xf32>
    %242 = vector.multi_reduction <add>, %241, %cst_118 [1] : vector<16x16xf32> to vector<16xf32>
    %243 = vector.shape_cast %242 : vector<16xf32> to vector<16x1xf32>
    %244 = tpu.reciprocal %243 {approx = true} : vector<16x1xf32> -> vector<16x1xf32>
    %245 = vector.broadcast %244 : vector<16x1xf32> to vector<16x16xf32>
    %246 = arith.mulf %241, %245 : vector<16x16xf32>
    %cst_119 = arith.constant dense<0.000000e+00> : vector<16x16xf32>
    %247 = tpu.matmul %246, %233, %cst_119 {dimension_numbers = #tpu.dot_dimension_numbers<[1], [0], [0], [1], [0, 0, 1, 1], [], []>} : vector<16x16xf32>, vector<16x16xf32>, vector<16x16xf32> -> vector<16x16xf32>
    %c16_120 = arith.constant 16 : index
    %c0_121 = arith.constant 0 : index
    %248 = vector.load %arg20[%c16_120, %c0_121] : memref<32x32xf32, #tpu.memory_space<vmem>>, vector<16x32xf32>
    %cst_122 = arith.constant dense<0.000000e+00> : vector<16x32xf32>
    %249 = tpu.matmul %247, %248, %cst_122 {dimension_numbers = #tpu.dot_dimension_numbers<[1], [0], [0], [1], [0, 0, 1, 1], [], []>} : vector<16x16xf32>, vector<16x32xf32>, vector<16x32xf32> -> vector<16x32xf32>
    %250 = arith.addf %230, %249 : vector<16x32xf32>
    %c16_123 = arith.constant 16 : index
    %c0_124 = arith.constant 0 : index
    %251 = vector.load %arg44[%c16_123, %c0_124] : memref<32x32xf32, #tpu.memory_space<vmem>>, vector<16x32xf32>
    tpu.vector_store %arg44[%c16_123, %c0_124], %250 {strides = array<i32>} : memref<32x32xf32, #tpu.memory_space<vmem>>, vector<16x32xf32>,
    %c0_125 = arith.constant 0 : index
    %c0_126 = arith.constant 0 : index
    %252 = vector.load %arg44[%c0_125, %c0_126] : memref<32x32xf32, #tpu.memory_space<vmem>>, vector<32x32xf32>
    %c0_127 = arith.constant 0 : index
    %c0_128 = arith.constant 0 : index
    %253 = vector.load %arg21[%c0_127, %c0_128] : memref<1x32xf32, #tpu.memory_space<vmem>>, vector<1x32xf32>
    %254 = vector.broadcast %253 : vector<1x32xf32> to vector<32x32xf32>
    %255 = arith.addf %252, %254 : vector<32x32xf32>
    %256 = arith.addf %162, %255 : vector<32x32xf32>
    %cst_129 = arith.constant dense<0.000000e+00> : vector<32xf32>
    %257 = vector.multi_reduction <add>, %256, %cst_129 [1] : vector<32x32xf32> to vector<32xf32>
    %258 = vector.shape_cast %257 : vector<32xf32> to vector<32x1xf32>
    %cst_130 = arith.constant 3.200000e+01 : f32
    %259 = vector.broadcast %cst_130 : f32 to vector<32x1xf32>
    %260 = arith.divf %258, %259 : vector<32x1xf32>
    %261 = vector.broadcast %260 : vector<32x1xf32> to vector<32x32xf32>
    %262 = arith.subf %256, %261 : vector<32x32xf32>
    %263 = arith.mulf %262, %262 : vector<32x32xf32>
    %cst_131 = arith.constant dense<0.000000e+00> : vector<32xf32>
    %264 = vector.multi_reduction <add>, %263, %cst_131 [1] : vector<32x32xf32> to vector<32xf32>
    %265 = vector.shape_cast %264 : vector<32xf32> to vector<32x1xf32>
    %cst_132 = arith.constant 3.200000e+01 : f32
    %266 = vector.broadcast %cst_132 : f32 to vector<32x1xf32>
    %267 = arith.divf %265, %266 : vector<32x1xf32>
    %268 = vector.broadcast %260 : vector<32x1xf32> to vector<32x32xf32>
    %269 = arith.subf %256, %268 : vector<32x32xf32>
    %cst_133 = arith.constant 9.99999974E-6 : f32
    %270 = vector.broadcast %cst_133 : f32 to vector<32x1xf32>
    %271 = arith.addf %267, %270 : vector<32x1xf32>
    %272 = math.rsqrt %271 : vector<32x1xf32>
    %273 = vector.broadcast %272 : vector<32x1xf32> to vector<32x32xf32>
    %274 = arith.mulf %269, %273 : vector<32x32xf32>
    %c0_134 = arith.constant 0 : index
    %c0_135 = arith.constant 0 : index
    %275 = vector.load %arg22[%c0_134, %c0_135] : memref<1x32xf32, #tpu.memory_space<vmem>>, vector<1x32xf32>
    %276 = vector.broadcast %275 : vector<1x32xf32> to vector<32x32xf32>
    %277 = arith.mulf %274, %276 : vector<32x32xf32>
    %c0_136 = arith.constant 0 : index
    %c0_137 = arith.constant 0 : index
    %278 = vector.load %arg23[%c0_136, %c0_137] : memref<1x32xf32, #tpu.memory_space<vmem>>, vector<1x32xf32>
    %279 = vector.broadcast %278 : vector<1x32xf32> to vector<32x32xf32>
    %280 = arith.addf %277, %279 : vector<32x32xf32>
    %c0_138 = arith.constant 0 : index
    %c0_139 = arith.constant 0 : index
    %281 = vector.load %arg24[%c0_138, %c0_139] : memref<32x64xf32, #tpu.memory_space<vmem>>, vector<32x64xf32>
    %cst_140 = arith.constant dense<0.000000e+00> : vector<32x64xf32>
    %282 = tpu.matmul %280, %281, %cst_140 {dimension_numbers = #tpu.dot_dimension_numbers<[1], [0], [0], [1], [0, 0, 1, 1], [], []>} : vector<32x32xf32>, vector<32x64xf32>, vector<32x64xf32> -> vector<32x64xf32>
    %c0_141 = arith.constant 0 : index
    %c0_142 = arith.constant 0 : index
    %283 = vector.load %arg25[%c0_141, %c0_142] : memref<1x64xf32, #tpu.memory_space<vmem>>, vector<1x64xf32>
    %284 = vector.broadcast %283 : vector<1x64xf32> to vector<32x64xf32>
    %285 = arith.addf %282, %284 : vector<32x64xf32>
    %cst_143 = arith.constant 0.000000e+00 : f32
    %286 = vector.broadcast %cst_143 : f32 to vector<32x64xf32>
    %287 = arith.maximumf %285, %286 : vector<32x64xf32>
    %c0_144 = arith.constant 0 : index
    %c0_145 = arith.constant 0 : index
    %288 = vector.load %arg26[%c0_144, %c0_145] : memref<64x32xf32, #tpu.memory_space<vmem>>, vector<64x32xf32>
    %cst_146 = arith.constant dense<0.000000e+00> : vector<32x32xf32>
    %289 = tpu.matmul %287, %288, %cst_146 {dimension_numbers = #tpu.dot_dimension_numbers<[1], [0], [0], [1], [0, 0, 1, 1], [], []>} : vector<32x64xf32>, vector<64x32xf32>, vector<32x32xf32> -> vector<32x32xf32>
    %c0_147 = arith.constant 0 : index
    %c0_148 = arith.constant 0 : index
    %290 = vector.load %arg27[%c0_147, %c0_148] : memref<1x32xf32, #tpu.memory_space<vmem>>, vector<1x32xf32>
    %291 = vector.broadcast %290 : vector<1x32xf32> to vector<32x32xf32>
    %292 = arith.addf %289, %291 : vector<32x32xf32>
    %293 = arith.addf %280, %292 : vector<32x32xf32>
    %cst_149 = arith.constant dense<0.000000e+00> : vector<32xf32>
    %294 = vector.multi_reduction <add>, %293, %cst_149 [1] : vector<32x32xf32> to vector<32xf32>
    %295 = vector.shape_cast %294 : vector<32xf32> to vector<32x1xf32>
    %cst_150 = arith.constant 3.200000e+01 : f32
    %296 = vector.broadcast %cst_150 : f32 to vector<32x1xf32>
    %297 = arith.divf %295, %296 : vector<32x1xf32>
    %298 = vector.broadcast %297 : vector<32x1xf32> to vector<32x32xf32>
    %299 = arith.subf %293, %298 : vector<32x32xf32>
    %300 = arith.mulf %299, %299 : vector<32x32xf32>
    %cst_151 = arith.constant dense<0.000000e+00> : vector<32xf32>
    %301 = vector.multi_reduction <add>, %300, %cst_151 [1] : vector<32x32xf32> to vector<32xf32>
    %302 = vector.shape_cast %301 : vector<32xf32> to vector<32x1xf32>
    %cst_152 = arith.constant 3.200000e+01 : f32
    %303 = vector.broadcast %cst_152 : f32 to vector<32x1xf32>
    %304 = arith.divf %302, %303 : vector<32x1xf32>
    %305 = vector.broadcast %297 : vector<32x1xf32> to vector<32x32xf32>
    %306 = arith.subf %293, %305 : vector<32x32xf32>
    %cst_153 = arith.constant 9.99999974E-6 : f32
    %307 = vector.broadcast %cst_153 : f32 to vector<32x1xf32>
    %308 = arith.addf %304, %307 : vector<32x1xf32>
    %309 = math.rsqrt %308 : vector<32x1xf32>
    %310 = vector.broadcast %309 : vector<32x1xf32> to vector<32x32xf32>
    %311 = arith.mulf %306, %310 : vector<32x32xf32>
    %c0_154 = arith.constant 0 : index
    %c0_155 = arith.constant 0 : index
    %312 = vector.load %arg28[%c0_154, %c0_155] : memref<1x32xf32, #tpu.memory_space<vmem>>, vector<1x32xf32>
    %313 = vector.broadcast %312 : vector<1x32xf32> to vector<32x32xf32>
    %314 = arith.mulf %311, %313 : vector<32x32xf32>
    %c0_156 = arith.constant 0 : index
    %c0_157 = arith.constant 0 : index
    %315 = vector.load %arg29[%c0_156, %c0_157] : memref<1x32xf32, #tpu.memory_space<vmem>>, vector<1x32xf32>
    %316 = vector.broadcast %315 : vector<1x32xf32> to vector<32x32xf32>
    %317 = arith.addf %314, %316 : vector<32x32xf32>
    %c0_158 = arith.constant 0 : index
    %c0_159 = arith.constant 0 : index
    %318 = vector.load %arg30[%c0_158, %c0_159] : memref<32x32xf32, #tpu.memory_space<vmem>>, vector<32x32xf32>
    %cst_160 = arith.constant dense<0.000000e+00> : vector<32x32xf32>
    %319 = tpu.matmul %317, %318, %cst_160 {dimension_numbers = #tpu.dot_dimension_numbers<[1], [0], [0], [1], [0, 0, 1, 1], [], []>} : vector<32x32xf32>, vector<32x32xf32>, vector<32x32xf32> -> vector<32x32xf32>
    %c0_161 = arith.constant 0 : index
    %c0_162 = arith.constant 0 : index
    %320 = vector.load %arg31[%c0_161, %c0_162] : memref<1x32xf32, #tpu.memory_space<vmem>>, vector<1x32xf32>
    %321 = vector.broadcast %320 : vector<1x32xf32> to vector<32x32xf32>
    %322 = arith.addf %319, %321 : vector<32x32xf32>
    %cst_163 = arith.constant 0.000000e+00 : f32
    %323 = vector.broadcast %cst_163 : f32 to vector<32x32xf32>
    %324 = arith.maximumf %322, %323 : vector<32x32xf32>
    %c0_164 = arith.constant 0 : index
    %c0_165 = arith.constant 0 : index
    %325 = vector.load %arg32[%c0_164, %c0_165] : memref<32x32xf32, #tpu.memory_space<vmem>>, vector<32x32xf32>
    %cst_166 = arith.constant dense<0.000000e+00> : vector<32x32xf32>
    %326 = tpu.matmul %324, %325, %cst_166 {dimension_numbers = #tpu.dot_dimension_numbers<[1], [0], [0], [1], [0, 0, 1, 1], [], []>} : vector<32x32xf32>, vector<32x32xf32>, vector<32x32xf32> -> vector<32x32xf32>
    %c0_167 = arith.constant 0 : index
    %c0_168 = arith.constant 0 : index
    %327 = vector.load %arg33[%c0_167, %c0_168] : memref<1x32xf32, #tpu.memory_space<vmem>>, vector<1x32xf32>
    %328 = vector.broadcast %327 : vector<1x32xf32> to vector<32x32xf32>
    %329 = arith.addf %326, %328 : vector<32x32xf32>
    %cst_169 = arith.constant 0.000000e+00 : f32
    %330 = vector.broadcast %cst_169 : f32 to vector<32x32xf32>
    %331 = arith.maximumf %329, %330 : vector<32x32xf32>
    %c0_170 = arith.constant 0 : index
    %c0_171 = arith.constant 0 : index
    %332 = vector.load %arg34[%c0_170, %c0_171] : memref<32x128xf32, #tpu.memory_space<vmem>>, vector<32x128xf32>
    %cst_172 = arith.constant dense<0.000000e+00> : vector<32x128xf32>
    %333 = tpu.matmul %331, %332, %cst_172 {dimension_numbers = #tpu.dot_dimension_numbers<[1], [0], [0], [1], [0, 0, 1, 1], [], []>} : vector<32x32xf32>, vector<32x128xf32>, vector<32x128xf32> -> vector<32x128xf32>
    %c0_173 = arith.constant 0 : index
    %c0_174 = arith.constant 0 : index
    %334 = vector.load %arg35[%c0_173, %c0_174] : memref<1x128xf32, #tpu.memory_space<vmem>>, vector<1x128xf32>
    %335 = vector.broadcast %334 : vector<1x128xf32> to vector<32x128xf32>
    %336 = arith.addf %333, %335 : vector<32x128xf32>
    %cst_175 = arith.constant 0.000000e+00 : f32
    %337 = vector.broadcast %cst_175 : f32 to vector<32x128xf32>
    %338 = arith.subf %337, %336 : vector<32x128xf32>
    %339 = math.exp %338 : vector<32x128xf32>
    %cst_176 = arith.constant 1.000000e+00 : f32
    %340 = vector.broadcast %cst_176 : f32 to vector<32x128xf32>
    %341 = arith.addf %340, %339 : vector<32x128xf32>
    %cst_177 = arith.constant 1.000000e+00 : f32
    %342 = vector.broadcast %cst_177 : f32 to vector<32x128xf32>
    %343 = arith.divf %342, %341 : vector<32x128xf32>
    %c0_178 = arith.constant 0 : index
    %c0_179 = arith.constant 0 : index
    %344 = vector.load %arg3[%c0_178, %c0_179] : memref<32x128xf32, #tpu.memory_space<vmem>>, vector<32x128xf32>
    %345 = arith.mulf %343, %344 : vector<32x128xf32>
    %c0_180 = arith.constant 0 : index
    %c0_181 = arith.constant 0 : index
    %346 = vector.load %arg42[%c0_180, %c0_181] : memref<32x128xf32, #tpu.memory_space<vmem>>, vector<32x128xf32>
    tpu.vector_store %arg42[%c0_180, %c0_181], %345 {strides = array<i32>} : memref<32x128xf32, #tpu.memory_space<vmem>>, vector<32x128xf32>,
    %c0_182 = arith.constant 0 : index
    %c0_183 = arith.constant 0 : index
    %347 = vector.load %arg36[%c0_182, %c0_183] : memref<32x32xf32, #tpu.memory_space<vmem>>, vector<32x32xf32>
    %cst_184 = arith.constant dense<0.000000e+00> : vector<32x32xf32>
    %348 = tpu.matmul %317, %347, %cst_184 {dimension_numbers = #tpu.dot_dimension_numbers<[1], [0], [0], [1], [0, 0, 1, 1], [], []>} : vector<32x32xf32>, vector<32x32xf32>, vector<32x32xf32> -> vector<32x32xf32>
    %c0_185 = arith.constant 0 : index
    %c0_186 = arith.constant 0 : index
    %349 = vector.load %arg37[%c0_185, %c0_186] : memref<1x32xf32, #tpu.memory_space<vmem>>, vector<1x32xf32>
    %350 = vector.broadcast %349 : vector<1x32xf32> to vector<32x32xf32>
    %351 = arith.addf %348, %350 : vector<32x32xf32>
    %cst_187 = arith.constant 0.000000e+00 : f32
    %352 = vector.broadcast %cst_187 : f32 to vector<32x32xf32>
    %353 = arith.maximumf %351, %352 : vector<32x32xf32>
    %c0_188 = arith.constant 0 : index
    %c0_189 = arith.constant 0 : index
    %354 = vector.load %arg38[%c0_188, %c0_189] : memref<32x32xf32, #tpu.memory_space<vmem>>, vector<32x32xf32>
    %cst_190 = arith.constant dense<0.000000e+00> : vector<32x32xf32>
    %355 = tpu.matmul %353, %354, %cst_190 {dimension_numbers = #tpu.dot_dimension_numbers<[1], [0], [0], [1], [0, 0, 1, 1], [], []>} : vector<32x32xf32>, vector<32x32xf32>, vector<32x32xf32> -> vector<32x32xf32>
    %c0_191 = arith.constant 0 : index
    %c0_192 = arith.constant 0 : index
    %356 = vector.load %arg39[%c0_191, %c0_192] : memref<1x32xf32, #tpu.memory_space<vmem>>, vector<1x32xf32>
    %357 = vector.broadcast %356 : vector<1x32xf32> to vector<32x32xf32>
    %358 = arith.addf %355, %357 : vector<32x32xf32>
    %cst_193 = arith.constant 0.000000e+00 : f32
    %359 = vector.broadcast %cst_193 : f32 to vector<32x32xf32>
    %360 = arith.maximumf %358, %359 : vector<32x32xf32>
    %c0_194 = arith.constant 0 : index
    %c0_195 = arith.constant 0 : index
    %361 = vector.load %arg40[%c0_194, %c0_195] : memref<32x128xf32, #tpu.memory_space<vmem>>, vector<32x128xf32>
    %cst_196 = arith.constant dense<0.000000e+00> : vector<32x128xf32>
    %362 = tpu.matmul %360, %361, %cst_196 {dimension_numbers = #tpu.dot_dimension_numbers<[1], [0], [0], [1], [0, 0, 1, 1], [], []>} : vector<32x32xf32>, vector<32x128xf32>, vector<32x128xf32> -> vector<32x128xf32>
    %c0_197 = arith.constant 0 : index
    %c0_198 = arith.constant 0 : index
    %363 = vector.load %arg41[%c0_197, %c0_198] : memref<1x128xf32, #tpu.memory_space<vmem>>, vector<1x128xf32>
    %364 = vector.broadcast %363 : vector<1x128xf32> to vector<32x128xf32>
    %365 = arith.addf %362, %364 : vector<32x128xf32>
    %c0_199 = arith.constant 0 : index
    %c0_200 = arith.constant 0 : index
    %366 = vector.load %arg43[%c0_199, %c0_200] : memref<32x128xf32, #tpu.memory_space<vmem>>, vector<32x128xf32>
    tpu.vector_store %arg43[%c0_199, %c0_200], %365 {strides = array<i32>} : memref<32x128xf32, #tpu.memory_space<vmem>>, vector<32x128xf32>,
    return
  }
  func.func @transform_0(%arg0: i32) -> (i32, i32) {
    %c0_i32 = arith.constant 0 : i32
    %c0_i32_0 = arith.constant 0 : i32
    %c0_i32_1 = arith.constant 0 : i32
    return %c0_i32, %c0_i32_0 : i32, i32
  }
  func.func @transform_1(%arg0: i32) -> (i32, i32) {
    %c0_i32 = arith.constant 0 : i32
    %c0_i32_0 = arith.constant 0 : i32
    %c0_i32_1 = arith.constant 0 : i32
    return %c0_i32, %c0_i32_0 : i32, i32
  }
  func.func @transform_2(%arg0: i32) -> (i32, i32) {
    %c0_i32 = arith.constant 0 : i32
    %c0_i32_0 = arith.constant 0 : i32
    %c0_i32_1 = arith.constant 0 : i32
    return %c0_i32, %c0_i32_0 : i32, i32
  }
  func.func @transform_3(%arg0: i32) -> (i32, i32) {
    %c0_i32 = arith.constant 0 : i32
    %c0_i32_0 = arith.constant 0 : i32
    %c0_i32_1 = arith.constant 0 : i32
    return %c0_i32, %c0_i32_0 : i32, i32
  }
  func.func @transform_4(%arg0: i32) -> (i32, i32) {
    %c0_i32 = arith.constant 0 : i32
    %c0_i32_0 = arith.constant 0 : i32
    %c0_i32_1 = arith.constant 0 : i32
    return %c0_i32, %c0_i32_0 : i32, i32
  }
  func.func @transform_5(%arg0: i32) -> (i32, i32) {
    %c0_i32 = arith.constant 0 : i32
    %c0_i32_0 = arith.constant 0 : i32
    %c0_i32_1 = arith.constant 0 : i32
    return %c0_i32, %c0_i32_0 : i32, i32
  }
  func.func @transform_6(%arg0: i32) -> (i32, i32) {
    %c0_i32 = arith.constant 0 : i32
    %c0_i32_0 = arith.constant 0 : i32
    %c0_i32_1 = arith.constant 0 : i32
    return %c0_i32, %c0_i32_0 : i32, i32
  }
  func.func @transform_7(%arg0: i32) -> (i32, i32) {
    %c0_i32 = arith.constant 0 : i32
    %c0_i32_0 = arith.constant 0 : i32
    %c0_i32_1 = arith.constant 0 : i32
    return %c0_i32, %c0_i32_0 : i32, i32
  }
  func.func @transform_8(%arg0: i32) -> (i32, i32) {
    %c0_i32 = arith.constant 0 : i32
    %c0_i32_0 = arith.constant 0 : i32
    %c0_i32_1 = arith.constant 0 : i32
    return %c0_i32, %c0_i32_0 : i32, i32
  }
  func.func @transform_9(%arg0: i32) -> (i32, i32) {
    %c0_i32 = arith.constant 0 : i32
    %c0_i32_0 = arith.constant 0 : i32
    %c0_i32_1 = arith.constant 0 : i32
    return %c0_i32, %c0_i32_0 : i32, i32
  }
  func.func @transform_10(%arg0: i32) -> (i32, i32) {
    %c0_i32 = arith.constant 0 : i32
    %c0_i32_0 = arith.constant 0 : i32
    %c0_i32_1 = arith.constant 0 : i32
    return %c0_i32, %c0_i32_0 : i32, i32
  }
  func.func @transform_11(%arg0: i32) -> (i32, i32) {
    %c0_i32 = arith.constant 0 : i32
    %c0_i32_0 = arith.constant 0 : i32
    %c0_i32_1 = arith.constant 0 : i32
    return %c0_i32, %c0_i32_0 : i32, i32
  }
  func.func @transform_12(%arg0: i32) -> (i32, i32) {
    %c0_i32 = arith.constant 0 : i32
    %c0_i32_0 = arith.constant 0 : i32
    %c0_i32_1 = arith.constant 0 : i32
    return %c0_i32, %c0_i32_0 : i32, i32
  }
  func.func @transform_13(%arg0: i32) -> (i32, i32) {
    %c0_i32 = arith.constant 0 : i32
    %c0_i32_0 = arith.constant 0 : i32
    %c0_i32_1 = arith.constant 0 : i32
    return %c0_i32, %c0_i32_0 : i32, i32
  }
  func.func @transform_14(%arg0: i32) -> (i32, i32) {
    %c0_i32 = arith.constant 0 : i32
    %c0_i32_0 = arith.constant 0 : i32
    %c0_i32_1 = arith.constant 0 : i32
    return %c0_i32, %c0_i32_0 : i32, i32
  }
  func.func @transform_15(%arg0: i32) -> (i32, i32) {
    %c0_i32 = arith.constant 0 : i32
    %c0_i32_0 = arith.constant 0 : i32
    %c0_i32_1 = arith.constant 0 : i32
    return %c0_i32, %c0_i32_0 : i32, i32
  }
  func.func @transform_16(%arg0: i32) -> (i32, i32) {
    %c0_i32 = arith.constant 0 : i32
    %c0_i32_0 = arith.constant 0 : i32
    %c0_i32_1 = arith.constant 0 : i32
    return %c0_i32, %c0_i32_0 : i32, i32
  }
  func.func @transform_17(%arg0: i32) -> (i32, i32) {
    %c0_i32 = arith.constant 0 : i32
    %c0_i32_0 = arith.constant 0 : i32
    %c0_i32_1 = arith.constant 0 : i32
    return %c0_i32, %c0_i32_0 : i32, i32
  }
  func.func @transform_18(%arg0: i32) -> (i32, i32) {
    %c0_i32 = arith.constant 0 : i32
    %c0_i32_0 = arith.constant 0 : i32
    %c0_i32_1 = arith.constant 0 : i32
    return %c0_i32, %c0_i32_0 : i32, i32
  }
  func.func @transform_19(%arg0: i32) -> (i32, i32) {
    %c0_i32 = arith.constant 0 : i32
    %c0_i32_0 = arith.constant 0 : i32
    %c0_i32_1 = arith.constant 0 : i32
    return %c0_i32, %c0_i32_0 : i32, i32
  }
  func.func @transform_20(%arg0: i32) -> (i32, i32) {
    %c0_i32 = arith.constant 0 : i32
    %c0_i32_0 = arith.constant 0 : i32
    %c0_i32_1 = arith.constant 0 : i32
    return %c0_i32, %c0_i32_0 : i32, i32
  }
  func.func @transform_21(%arg0: i32) -> (i32, i32) {
    %c0_i32 = arith.constant 0 : i32
    %c0_i32_0 = arith.constant 0 : i32
    %c0_i32_1 = arith.constant 0 : i32
    return %c0_i32, %c0_i32_0 : i32, i32
  }
  func.func @transform_22(%arg0: i32) -> (i32, i32) {
    %c0_i32 = arith.constant 0 : i32
    %c0_i32_0 = arith.constant 0 : i32
    %c0_i32_1 = arith.constant 0 : i32
    return %c0_i32, %c0_i32_0 : i32, i32
  }
  func.func @transform_23(%arg0: i32) -> (i32, i32) {
    %c0_i32 = arith.constant 0 : i32
    %c0_i32_0 = arith.constant 0 : i32
    %c0_i32_1 = arith.constant 0 : i32
    return %c0_i32, %c0_i32_0 : i32, i32
  }
  func.func @transform_24(%arg0: i32) -> (i32, i32) {
    %c0_i32 = arith.constant 0 : i32
    %c0_i32_0 = arith.constant 0 : i32
    %c0_i32_1 = arith.constant 0 : i32
    return %c0_i32, %c0_i32_0 : i32, i32
  }
  func.func @transform_25(%arg0: i32) -> (i32, i32) {
    %c0_i32 = arith.constant 0 : i32
    %c0_i32_0 = arith.constant 0 : i32
    %c0_i32_1 = arith.constant 0 : i32
    return %c0_i32, %c0_i32_0 : i32, i32
  }
  func.func @transform_26(%arg0: i32) -> (i32, i32) {
    %c0_i32 = arith.constant 0 : i32
    %c0_i32_0 = arith.constant 0 : i32
    %c0_i32_1 = arith.constant 0 : i32
    return %c0_i32, %c0_i32_0 : i32, i32
  }
  func.func @transform_27(%arg0: i32) -> (i32, i32) {
    %c0_i32 = arith.constant 0 : i32
    %c0_i32_0 = arith.constant 0 : i32
    %c0_i32_1 = arith.constant 0 : i32
    return %c0_i32, %c0_i32_0 : i32, i32
  }
  func.func @transform_28(%arg0: i32) -> (i32, i32) {
    %c0_i32 = arith.constant 0 : i32
    %c0_i32_0 = arith.constant 0 : i32
    %c0_i32_1 = arith.constant 0 : i32
    return %c0_i32, %c0_i32_0 : i32, i32
  }
  func.func @transform_29(%arg0: i32) -> (i32, i32) {
    %c0_i32 = arith.constant 0 : i32
    %c0_i32_0 = arith.constant 0 : i32
    %c0_i32_1 = arith.constant 0 : i32
    return %c0_i32, %c0_i32_0 : i32, i32
  }
  func.func @transform_30(%arg0: i32) -> (i32, i32) {
    %c0_i32 = arith.constant 0 : i32
    %c0_i32_0 = arith.constant 0 : i32
    %c0_i32_1 = arith.constant 0 : i32
    return %c0_i32, %c0_i32_0 : i32, i32
  }
  func.func @transform_31(%arg0: i32) -> (i32, i32) {
    %c0_i32 = arith.constant 0 : i32
    %c0_i32_0 = arith.constant 0 : i32
    %c0_i32_1 = arith.constant 0 : i32
    return %c0_i32, %c0_i32_0 : i32, i32
  }
  func.func @transform_32(%arg0: i32) -> (i32, i32) {
    %c0_i32 = arith.constant 0 : i32
    %c0_i32_0 = arith.constant 0 : i32
    %c0_i32_1 = arith.constant 0 : i32
    return %c0_i32, %c0_i32_0 : i32, i32
  }
  func.func @transform_33(%arg0: i32) -> (i32, i32) {
    %c0_i32 = arith.constant 0 : i32
    %c0_i32_0 = arith.constant 0 : i32
    %c0_i32_1 = arith.constant 0 : i32
    return %c0_i32, %c0_i32_0 : i32, i32
  }
  func.func @transform_34(%arg0: i32) -> (i32, i32) {
    %c0_i32 = arith.constant 0 : i32
    %c0_i32_0 = arith.constant 0 : i32
    %c0_i32_1 = arith.constant 0 : i32
    return %c0_i32, %c0_i32_0 : i32, i32
  }
  func.func @transform_35(%arg0: i32) -> (i32, i32) {
    %c0_i32 = arith.constant 0 : i32
    %c0_i32_0 = arith.constant 0 : i32
    %c0_i32_1 = arith.constant 0 : i32
    return %c0_i32, %c0_i32_0 : i32, i32
  }
  func.func @transform_36(%arg0: i32) -> (i32, i32) {
    %c0_i32 = arith.constant 0 : i32
    %c0_i32_0 = arith.constant 0 : i32
    %c0_i32_1 = arith.constant 0 : i32
    return %c0_i32, %c0_i32_0 : i32, i32
  }
  func.func @transform_37(%arg0: i32) -> (i32, i32) {
    %c0_i32 = arith.constant 0 : i32
    %c0_i32_0 = arith.constant 0 : i32
    %c0_i32_1 = arith.constant 0 : i32
    return %c0_i32, %c0_i32_0 : i32, i32
  }
  func.func @transform_38(%arg0: i32) -> (i32, i32) {
    %c0_i32 = arith.constant 0 : i32
    %c0_i32_0 = arith.constant 0 : i32
    %c0_i32_1 = arith.constant 0 : i32
    return %c0_i32, %c0_i32_0 : i32, i32
  }
  func.func @transform_39(%arg0: i32) -> (i32, i32) {
    %c0_i32 = arith.constant 0 : i32
    %c0_i32_0 = arith.constant 0 : i32
    %c0_i32_1 = arith.constant 0 : i32
    return %c0_i32, %c0_i32_0 : i32, i32
  }
  func.func @transform_40(%arg0: i32) -> (i32, i32) {
    %c0_i32 = arith.constant 0 : i32
    %c0_i32_0 = arith.constant 0 : i32
    %c0_i32_1 = arith.constant 0 : i32
    return %c0_i32, %c0_i32_0 : i32, i32
  }
  func.func @transform_41(%arg0: i32) -> (i32, i32) {
    %c0_i32 = arith.constant 0 : i32
    %c0_i32_0 = arith.constant 0 : i32
    %c0_i32_1 = arith.constant 0 : i32
    return %c0_i32, %c0_i32_0 : i32, i32
  }
  func.func @transform_42(%arg0: i32) -> (i32, i32) {
    %c0_i32 = arith.constant 0 : i32
    %c0_i32_0 = arith.constant 0 : i32
    %c0_i32_1 = arith.constant 0 : i32
    return %c0_i32, %c0_i32_0 : i32, i32
  }
}

</mosaic_0001>

<bundles_post_ra>
// kernel: squeeze.1
= control target key start
LH: loop header
LB: loop body
LE: loop exit
PB: predicated region body
PF: predicated region fallthrough
CT: control target
= control target key end

     0   :  { %s85_s0 = inlined_call_operand.vmem [shape: f32[32], index: 0, kind: input, shape index: {}]   ;;  %s86_s1 = inlined_call_operand.hbm [shape: f32[2,16], index: 1, kind: output, shape index: {}]  }
   0x1   :  { %v5_v0 = vld [vmem:[%s85_s0] sm:$0x1] }
   0x2   :  { %2 = vsyncpa [#allocation1], 0  ;;  %6 = vst [vmem:[#allocation3] sm:$0x1] %v5_v0  ;;  %vm8_vm0 = vcmask 130048   ;;  %s58_s0 = smov 112  }
   0x3   :  { %s59_s8 = smov [#allocation0]  }
   0x4   :  { %s26_s9 = sshll.u32 %s59_s8, 4  ;;  %s27_s9 = int_to_ptr.vmem [resolvable:$true] %s26_s9 }
   0x5   :  { %s34_s10 = scalar_lea.vmem %s27_s9, 32  ;;  %p39_p1 = scmp.lt.s32.totalorder %s27_s9, %s27_s9 }
   0x6   :  { %p35_p0 = scmp.ne.s32.totalorder %s27_s9, %s34_s10  ;;  %p40_p2 = scmp.lt.s32.totalorder %s34_s10, %s34_s10 }
   0x8   :  { %p41_p3 = por %p40_p2, %p39_p1 }
   0x9   :  { %v10_v1 = vld [vmem:[#allocation3] sm:$0x1]  }
   0xa   :  { %v7_v2 = vld [vmem:[#allocation3] sm:$0x1]   ;;  %11 = vrot.lane.b32.xlu0 %v10_v1, %s58_s0  ;;  %p42_p4 = pnand %p41_p3, %p35_p0 }
   0xb   :  { %9 = vst.msk [vmem:[#allocation2] sm:$0x1] %vm8_vm0, %v7_v2  }
  0x7c   :  { %v12_v3 = vpop.permute.xlu0 %11  }
  0x7d   :  { %15 = vst.msk [vmem:[#allocation2 + $0x1] sm:$0x1] %vm8_vm0, %v12_v3  }
  0x84   :  { %v19_v4 = vld [vmem:[#allocation2] sm:$0x3] }
  0x85   :  { %21 = vst [vmem:[#allocation0] sm:$0x3] %v19_v4 }
  0x86   :  { %45 = shalt.err (!%p42_p4)
}
  0x87   :  { %s46_s13 = scalar_lea.hbm %s86_s1, 32 }
  0x88   :  { %p47_p5 = scmp.ne.s32.totalorder %s86_s1, %s46_s13  ;;  %p50_p6 = scmp.lt.u32.totalorder %s46_s13, %s86_s1 }
  0x8a   :  { %p52_p7 = pnand %p50_p6, %p47_p5 }
  0x8c   :  { %55 = shalt.err (!%p52_p7)
}
  0x8d   :  { %29 = dma.vmem_to_hbm [thread:$0]  %s27_s9, 32, %s86_s1, [#allocation1]  }
  0x8e   :  { %56 = dma.done.wait [#allocation1], 32  }
  0x8f   :  { %57 = vsyncadd [#allocation1], 4294967264 }
  0x90   :  { %31 = vsyncpa [#allocation1], 1 }

// kernel: trans_feat_forward.1
= control target key start
LH: loop header
LB: loop body
LE: loop exit
PB: predicated region body
PF: predicated region fallthrough
CT: control target
= control target key end

     0   :  { %s5581_s6 = smov 1   ;;  %s5582_s10 = smov 2   ;;  %s6370_s0 = inlined_call_operand.smem [shape: u32[43], index: -1, kind: input, shape index: {}] }
   0x1   :  { %s5639_s5 = sld [smem:[%s6370_s0]]   ;;  %s5583_s14 = smov 3  }
   0x2   :  { %s5644_s9 = sld [smem:[%s6370_s0 + %s5581_s6]]   ;;  %s5584_s18 = smov 4  }
   0x3   :  { %s5649_s13 = sld [smem:[%s6370_s0 + %s5582_s10]]   ;;  %s5585_s22 = smov 5  }
   0x4   :  { %s5654_s17 = sld [smem:[%s6370_s0 + %s5583_s14]]   ;;  %s5586_s26 = smov 6  }
   0x5   :  { %s5659_s21 = sld [smem:[%s6370_s0 + %s5584_s18]]   ;;  %s5587_s30 = smov 7  }
   0x6   :  { %s5664_s25 = sld [smem:[%s6370_s0 + %s5585_s22]]   ;;  %s5588_s4 = smov 8  }
   0x7   :  { %s5669_s29 = sld [smem:[%s6370_s0 + %s5586_s26]]   ;;  %s5589_s10 = smov 9  }
   0x8   :  { %s5674_s3 = sld [smem:[%s6370_s0 + %s5587_s30]]   ;;  %s5590_s15 = smov 10  }
   0x9   :  { %6381 = sst [smem:[#allocation6_spill]] %s5649_s13  ;;  %s5591_s20 = smov 11  }
   0xa   :  { %s5679_s8 = sld [smem:[%s6370_s0 + %s5588_s4]]   ;;  %s5592_s26 = smov 12  }
   0xb   :  { %s5684_s14 = sld [smem:[%s6370_s0 + %s5589_s10]]   ;;  %s5593_s1 = smov 13  }
   0xc   :  { %s5689_s19 = sld [smem:[%s6370_s0 + %s5590_s15]]   ;;  %s5594_s7 = smov 14  }
   0xd   :  { %s5694_s24 = sld [smem:[%s6370_s0 + %s5591_s20]]   ;;  %s5595_s15 = smov 15  }
   0xe   :  { %s5699_s30 = sld [smem:[%s6370_s0 + %s5592_s26]]   ;;  %s5596_s22 = smov 16  }
   0xf   :  { %s5704_s6 = sld [smem:[%s6370_s0 + %s5593_s1]]   ;;  %s5597_s28 = smov 17  }
  0x10   :  { %s5709_s12 = sld [smem:[%s6370_s0 + %s5594_s7]]   ;;  %s5598_s7 = smov 18  }
  0x11   :  { %s5714_s20 = sld [smem:[%s6370_s0 + %s5595_s15]]   ;;  %s5599_s15 = smov 19  }
  0x12   :  { %s5719_s27 = sld [smem:[%s6370_s0 + %s5596_s22]]   ;;  %s5600_s22 = smov 20  }
  0x13   :  { %s5724_s4 = sld [smem:[%s6370_s0 + %s5597_s28]]   ;;  %s5601_s28 = smov 21  }
  0x14   :  { %s5729_s13 = sld [smem:[%s6370_s0 + %s5598_s7]]   ;;  %s5602_s7 = smov 22  }
  0x17   :  { %6382 = sst [smem:[#allocation7_spill]] %s5714_s20 }
  0x18   :  { %6383 = sst [smem:[#allocation8_spill]] %s5719_s27 }
  0x19   :  { %6384 = sst [smem:[#allocation9_spill]] %s5724_s4 }
  0x1a   :  { %6385 = sst [smem:[#allocation10_spill]] %s5729_s13 }
  0x1b   :  { %s5734_s20 = sld [smem:[%s6370_s0 + %s5599_s15]]   ;;  %s5603_s15 = smov 23  }
  0x1c   :  { %s5739_s27 = sld [smem:[%s6370_s0 + %s5600_s22]]   ;;  %s5604_s22 = smov 24  }
  0x1d   :  { %s5744_s4 = sld [smem:[%s6370_s0 + %s5601_s28]]   ;;  %s5605_s28 = smov 25  }
  0x1e   :  { %s5749_s13 = sld [smem:[%s6370_s0 + %s5602_s7]]   ;;  %s5606_s7 = smov 26  }
  0x21   :  { %6386 = sst [smem:[#allocation11_spill]] %s5734_s20 }
  0x22   :  { %6387 = sst [smem:[#allocation12_spill]] %s5739_s27 }
  0x23   :  { %6388 = sst [smem:[#allocation13_spill]] %s5744_s4 }
  0x24   :  { %6389 = sst [smem:[#allocation14_spill]] %s5749_s13 }
  0x25   :  { %s5754_s20 = sld [smem:[%s6370_s0 + %s5603_s15]]   ;;  %s5607_s15 = smov 27  }
  0x26   :  { %s5759_s27 = sld [smem:[%s6370_s0 + %s5604_s22]]   ;;  %s5608_s22 = smov 28  }
  0x27   :  { %s5764_s4 = sld [smem:[%s6370_s0 + %s5605_s28]]   ;;  %s5609_s28 = smov 29  }
  0x28   :  { %s5769_s13 = sld [smem:[%s6370_s0 + %s5606_s7]]   ;;  %s5610_s7 = smov 30  }
  0x2b   :  { %6390 = sst [smem:[#allocation15_spill]] %s5754_s20 }
  0x2c   :  { %6391 = sst [smem:[#allocation16_spill]] %s5759_s27 }
  0x2d   :  { %6392 = sst [smem:[#allocation17_spill]] %s5764_s4 }
  0x2e   :  { %6393 = sst [smem:[#allocation18_spill]] %s5769_s13 }
  0x2f   :  { %s5774_s20 = sld [smem:[%s6370_s0 + %s5607_s15]]   ;;  %s5611_s15 = smov 31  }
  0x30   :  { %s5779_s27 = sld [smem:[%s6370_s0 + %s5608_s22]]   ;;  %s5612_s22 = smov 32  }
  0x31   :  { %s5784_s4 = sld [smem:[%s6370_s0 + %s5609_s28]]   ;;  %s5613_s28 = smov 33  }
  0x32   :  { %s5789_s13 = sld [smem:[%s6370_s0 + %s5610_s7]]   ;;  %s5614_s7 = smov 34  }
  0x35   :  { %6394 = sst [smem:[#allocation19_spill]] %s5774_s20 }
  0x36   :  { %6395 = sst [smem:[#allocation20_spill]] %s5779_s27 }
  0x37   :  { %6396 = sst [smem:[#allocation21_spill]] %s5784_s4 }
  0x38   :  { %6397 = sst [smem:[#allocation22_spill]] %s5789_s13 }
  0x39   :  { %s5794_s20 = sld [smem:[%s6370_s0 + %s5611_s15]]   ;;  %s5615_s15 = smov 35  }
  0x3a   :  { %s5799_s27 = sld [smem:[%s6370_s0 + %s5612_s22]]   ;;  %s5616_s22 = smov 36  }
  0x3b   :  { %s5804_s4 = sld [smem:[%s6370_s0 + %s5613_s28]]   ;;  %s5617_s28 = smov 37  }
  0x3c   :  { %s5809_s13 = sld [smem:[%s6370_s0 + %s5614_s7]]   ;;  %s5618_s7 = smov 38  }
  0x3f   :  { %6398 = sst [smem:[#allocation23_spill]] %s5794_s20 }
  0x40   :  { %6399 = sst [smem:[#allocation24_spill]] %s5799_s27 }
  0x41   :  { %6400 = sst [smem:[#allocation25_spill]] %s5804_s4 }
  0x42   :  { %6401 = sst [smem:[#allocation26_spill]] %s5809_s13 }
  0x43   :  { %s5814_s20 = sld [smem:[%s6370_s0 + %s5615_s15]]   ;;  %s5619_s15 = smov 39  }
  0x44   :  { %s5819_s27 = sld [smem:[%s6370_s0 + %s5616_s22]]   ;;  %s5620_s22 = smov 40  }
  0x45   :  { %s5824_s4 = sld [smem:[%s6370_s0 + %s5617_s28]]   ;;  %s5621_s28 = smov 41  }
  0x46   :  { %s5829_s13 = sld [smem:[%s6370_s0 + %s5618_s7]]   ;;  %s5622_s7 = smov 42  }
  0x49   :  { %6402 = sst [smem:[#allocation27_spill]] %s5814_s20 }
  0x4a   :  { %6403 = sst [smem:[#allocation28_spill]] %s5819_s27 }
  0x4b   :  { %6404 = sst [smem:[#allocation29_spill]] %s5824_s4 }
  0x4c   :  { %6405 = sst [smem:[#allocation30_spill]] %s5829_s13 }
  0x4d   :  { %s5834_s20 = sld [smem:[%s6370_s0 + %s5619_s15]]  }
  0x4e   :  { %s5839_s27 = sld [smem:[%s6370_s0 + %s5620_s22]]  }
  0x4f   :  { %s5844_s4 = sld [smem:[%s6370_s0 + %s5621_s28]]  }
  0x50   :  { %s5849_s13 = sld [smem:[%s6370_s0 + %s5622_s7]]  }
  0x51   :  { %v178_v0 = vld [vmem:[%s5654_s17] sm:$0xff]  ;;  %v179_v1 = vld [vmem:[%s5654_s17 + $0x8] sm:$0xff]  ;;  %v180_v2 = vld [vmem:[%s5654_s17 + $0x10] sm:$0xff]  ;;  %vm193_vm0 = vcmask 523264  }
  0x52   :  { %v5067_v3 = vpack.c.bf16 %v179_v1, %v178_v0  ;;  %v181_v4 = vld [vmem:[%s5654_s17 + $0x18] sm:$0xff]  ;;  %v182_v6 = vld [vmem:[%s5654_s17 + $0x20] sm:$0xff]  ;;  %v183_v7 = vld [vmem:[%s5654_s17 + $0x28] sm:$0xff] }
  0x53   :  { %v5071_v5 = vpack.c.bf16 %v181_v4, %v180_v2  ;;  %v174_v8 = vld [vmem:[%s5639_s5] sm:$0xff]  ;;  %v300_v10 = vld [vmem:[%s5664_s25 + $0x8] sm:$0xff] }
  0x54   :  { %5068 = vmatprep.subr.bf16.mxu0 %v5067_v3  ;;  %4709 = vmatprep.mubr.msk.f32.mxu0 %vm193_vm0, %v174_v8  ;;  %v299_v9 = vld [vmem:[%s5664_s25] sm:$0xff] }
  0x55   :  { %5070 = vmatpush3.bf16.msra.mxu0 %v5067_v3  ;;  %v5083_v11 = vpack.c.bf16 %v300_v10, %v299_v9 }
  0x56   :  { %91 = vsyncpa [#allocation4], 0  ;;  %5072 = vmatprep.subr.bf16.mxu0 %v5071_v5  ;;  %v5075_v12 = vpack.c.bf16 %v183_v7, %v182_v6  ;;  %v184_v13 = vld [vmem:[%s5654_s17 + $0x30] sm:$0xff]  ;;  %v185_v14 = vld [vmem:[%s5654_s17 + $0x38] sm:$0xff]  ;;  %vm310_vm1 = vcmask 261120   ;;  %vm414_vm2 = vcmask 130048  }
  0x57   :  { %5084 = vmatprep.subr.bf16.mxu1 %v5083_v11  ;;  %v5079_v15 = vpack.c.bf16 %v185_v14, %v184_v13  ;;  %v175_v16 = vld [vmem:[%s5639_s5 + $0x8] sm:$0xff]  ;;  %v301_v17 = vld [vmem:[%s5664_s25 + $0x10] sm:$0xff]  ;;  %v302_v18 = vld [vmem:[%s5664_s25 + $0x18] sm:$0xff]  ;;  %s5623_s0 = smov 112   ;;  %s5626_s17 = smov 64  }
  0x58   :  { %5086 = vmatpush3.bf16.msra.mxu1 %v5083_v11  ;;  %v176_v19 = vld [vmem:[%s5639_s5 + $0x10] sm:$0xff]  ;;  %v5087_v20 = vpack.c.bf16 %v302_v18, %v301_v17  ;;  %v177_v21 = vld [vmem:[%s5639_s5 + $0x18] sm:$0xff]  ;;  %v4342_v22 = vld [vmem:[%s5659_s21] ss:$0 sm:$0xff]  ;;  %s5624_s5 = smov 96   ;;  %s5627_s21 = smov 48  }
  0x59   :  { %5074 = vmatpush3.bf16.msra.mxu0 %v5071_v5  ;;  %v291_v26 = vld [vmem:[%s5644_s9] sm:$0xff]  ;;  %v292_v27 = vld [vmem:[%s5644_s9 + $0x8] sm:$0xff]  ;;  %v294_v32 = vld [vmem:[%s5644_s9 + $0x18] sm:$0xff]  ;;  %s6408_s25 = sld [smem:[#allocation9_spill]]  ;;  %s6418_s15 = sld [smem:[#allocation16_spill]] }
  0x5a   :  { %5076 = vmatprep.subr.bf16.mxu0 %v5075_v12  ;;  %5088 = vmatprep.subr.bf16.mxu1 %v5087_v20  ;;  %v293_v35 = vld [vmem:[%s5644_s9 + $0x10] sm:$0xff]  ;;  %v5893_v39 = vld [vmem:[%s5669_s29] ss:$0 sm:$0xff]  ;;  %s5625_s9 = smov 80   ;;  %vm5913_vm3 = vmpackc.low %vm414_vm2, %vm414_vm2  ;;  %s6409_s29 = sld [smem:[#allocation7_spill]] }
  0x5b   :  { %s6419_s16 = sld [smem:[#allocation18_spill]]  ;;  %s6420_s18 = sld [smem:[#allocation21_spill]] }
  0x5c   :  { %5090 = vmatpush3.bf16.msra.mxu1 %v5087_v20  ;;  %s6421_s22 = sld [smem:[#allocation19_spill]]  ;;  %s6422_s23 = sld [smem:[#allocation20_spill]] }
  0x5d   :  { %5078 = vmatpush3.bf16.msra.mxu0 %v5075_v12  ;;  %s6423_s26 = sld [smem:[#allocation23_spill]]  ;;  %s6424_s28 = sld [smem:[#allocation22_spill]] }
  0x5e   :  { %5080 = vmatprep.subr.bf16.mxu0 %v5079_v15  ;;  %s6425_s1 = sld [smem:[#allocation27_spill]]  ;;  %s6426_s2 = sld [smem:[#allocation25_spill]] }
  0x5f   :  { %s6427_s7 = sld [smem:[#allocation24_spill]]  ;;  %s6428_s10 = sld [smem:[#allocation29_spill]] }
  0x60   :  { %s6429_s11 = sld [smem:[#allocation28_spill]] }
  0x61   :  { %5082 = vmatpush3.bf16.msra.mxu0 %v5079_v15 }
  0x64   :  { %4710 = vmatmul.mubr.msk.f32.vlgmr.msra.gmra.mrb[0].mxu0 %vm193_vm0, %v175_v16 }
  0x65   :  { %4712 = vmatprep.mubr.msk.f32.mxu0 %vm193_vm0, %v176_v19 }
  0x68   :  { %4713 = vmatmul.mubr.msk.f32.gmra.mrb[2].mxu0 %vm193_vm0, %v177_v21 }
 0x137   :  { %v4711_v23 = vpop.f32.mrb[0].mxu0 }
 0x138   :  { %v278_v24 = vadd.f32 %v4711_v23, %v4342_v22  ;;  %v272_v25 = vpop.f32.mrb[1].mxu0 }
 0x139   :  { %v273_v28 = vadd.f32 %v4342_v22, %v272_v25 }
 0x13a   :  { %v5876_v30 = vadd.f32 %v292_v27, %v278_v24 }
 0x13b   :  { %v5874_v29 = vadd.f32 %v291_v26, %v273_v28  ;;  %v4714_v31 = vpop.f32.mrb[2].mxu0 }
 0x13c   :  { %v288_v33 = vadd.f32 %v4714_v31, %v4342_v22  ;;  %v282_v34 = vpop.f32.mrb[3].mxu0 }
 0x13d   :  { %4723 = vmatprep.mubr.msk.f32.mxu1 %vm310_vm1, %v5874_v29  ;;  %v283_v36 = vadd.f32 %v4342_v22, %v282_v34 }
 0x13e   :  { %4724 = vmatmul.mubr.msk.f32.vlgmr.msra.gmra.mrb[0].mxu1 %vm310_vm1, %v5876_v30  ;;  %v5884_v37 = vadd.f32 %v294_v32, %v288_v33 }
 0x13f   :  { %v5886_v38 = vadd.f32 %v293_v35, %v283_v36 }
 0x141   :  { %4726 = vmatprep.mubr.msk.f32.mxu1 %vm310_vm1, %v5886_v38 }
 0x142   :  { %4727 = vmatmul.mubr.msk.f32.gmra.mrb[2].mxu1 %vm310_vm1, %v5884_v37 }
 0x211   :  { %v4725_v40 = vpop.f32.mrb[0].mxu1 }
 0x212   :  { %v395_v41 = vadd.f32 %v4725_v40, %v5893_v39  ;;  %v389_v42 = vpop.f32.mrb[1].mxu1 }
 0x213   :  { %v390_v43 = vadd.f32 %v5893_v39, %v389_v42 }
 0x215   :  { %611 = vrot.lane.b32.xlu1 %v390_v43, %s5623_s0  ;;  %4733 = vmatprep.mubr.msk.f32.mxu1 %vm414_vm2, %v390_v43  ;;  %v5899_v44 = vpack.i.bf16 %v395_v41, %v390_v43  ;;  %v5906_v45 = vpop.f32.mrb[2].mxu1 }
 0x216   :  { %v5908_v46 = vpop.f32.mrb[3].mxu1  ;;  %v405_v26 = vadd.f32 %v5906_v45, %v5893_v39 }
 0x217   :  { %5366 = vrot.lane.b32.xlu0 %v5899_v44, %s5624_s5  ;;  %v400_v27 = vadd.f32 %v5893_v39, %v5908_v46 }
 0x219   :  { %613 = vrot.lane.b32.xlu1 %v395_v41, %s5623_s0  ;;  %v5940_v28 = vpack.i.bf16 %v405_v26, %v400_v27 }
 0x21b   :  { %5371 = vrot.lane.b32.xlu0 %v5899_v44, %s5625_s9 }
 0x287   :  { %v612_v47 = vpop.permute.xlu1 %611 }
 0x288   :  { %4747 = vmatprep.mubr.msk.f32.mxu0 %vm414_vm2, %v612_v47 }
 0x289   :  { %v5367_v48 = vpop.permute.xlu0 %5366 }
 0x28a   :  { %v5369_v49 = vunpack.i.h.bf16 %v5367_v48  ;;  %v5368_v50 = vunpack.i.l.bf16 %v5367_v48 }
 0x28b   :  { %v614_v57 = vpop.permute.xlu1 %613 }
 0x28c   :  { %v5091_v52 = vpack.c.bf16 %v5369_v49, %v5368_v50 }
 0x28d   :  { %v5372_v53 = vpop.permute.xlu0 %5371 }
 0x28e   :  { %v5374_v54 = vunpack.i.h.bf16 %v5372_v53  ;;  %v5373_v55 = vunpack.i.l.bf16 %v5372_v53  ;;  %5093 = vmatprep.subr.msk.bf16.mxu1 %vm5913_vm3, %v5091_v52 }
 0x28f   :  { %5096 = vmatpush3.bf16.xpose.msk.msra.mxu1 %vm5913_vm3, %v5091_v52 }
 0x290   :  { %v5101_v56 = vpack.c.bf16 %v5374_v54, %v5373_v55 }
 0x292   :  { %5103 = vmatprep.subr.msk.bf16.mxu0 %vm5913_vm3, %v5101_v56 }
 0x293   :  { %5106 = vmatpush3.bf16.xpose.msk.msra.mxu0 %vm5913_vm3, %v5101_v56 }
 0x296   :  { %4734 = vmatmul.mubr.msk.f32.vlgmr.msra.gmra.mrb[4].mxu1 %vm414_vm2, %v395_v41 }
 0x29a   :  { %4748 = vmatmul.mubr.msk.f32.vlgmr.msra.gmra.mrb[4].mxu0 %vm414_vm2, %v614_v57 }
 0x369   :  { %v4735_v58 = vpop.f32.mrb[4].mxu1 }
 0x36a   :  { %v499_v59 = vmul.f32 0.25, %v4735_v58  ;;  %v489_v60 = vpop.f32.mrb[5].mxu1 }
 0x36b   :  { %v498_v61 = vmul.f32 0.25, %v489_v60 }
 0x36c   :  { %v503_v62 = vsel %vm414_vm2, %v499_v59, -inf }
 0x36d   :  { %v4749_v63 = vpop.f32.mrb[4].mxu0  ;;  %504 = vmax.xlane.f32.xlu1 %v503_v62  ;;  %v500_v0 = vsel %vm414_vm2, %v498_v61, -inf }
 0x36e   :  { %v693_v1 = vpop.f32.mrb[5].mxu0  ;;  %501 = vmax.xlane.f32.xlu0 %v500_v0  ;;  %v703_v3 = vmul.f32 0.25, %v4749_v63  ;;  %v813_v0 = vld [vmem:[%s5674_s3 + $0x10] sm:$0xff] }
 0x36f   :  { %v702_v2 = vmul.f32 0.25, %v693_v1  ;;  %v814_v1 = vld [vmem:[%s5674_s3 + $0x18] sm:$0xff] }
 0x370   :  { %v707_v5 = vsel %vm414_vm2, %v703_v3, -inf }
 0x371   :  { %v704_v4 = vsel %vm414_vm2, %v702_v2, -inf }
 0x372   :  { %705 = vmax.xlane.f32.xlu0 %v704_v4  ;;  %v610_v4 = vld [vmem:[%s5674_s3 + $0x8] sm:$0xff] }
 0x376   :  { %708 = vmax.xlane.f32.xlu0 %v707_v5 }
 0x37e   :  { %5376 = vrot.lane.b32.xlu1 %v5899_v44, %s5626_s17 }
 0x3fa   :  { %v505_v6 = vpop.xlane.xlu1 %504 }
 0x3fb   :  { %v507_v7 = vsub.f32 %v499_v59, %v505_v6  ;;  %v502_v8 = vpop.xlane.xlu0 %501 }
 0x3fc   :  { %v506_v9 = vsub.f32 %v498_v61, %v502_v8 }
 0x3fd   :  { %v510_v10 = vmul.f32 1.442695, %v507_v7 }
 0x3fe   :  { %v508_v11 = vmul.f32 1.442695, %v506_v9  ;;  %v5377_v12 = vpop.permute.xlu1 %5376 }
 0x3ff   :  { %5445 = vpow2.f32 %v510_v10  ;;  %v5379_v13 = vunpack.i.h.bf16 %v5377_v12  ;;  %v5378_v14 = vunpack.i.l.bf16 %v5377_v12  ;;  %v706_v15 = vpop.xlane.xlu0 %705 }
 0x400   :  { %5447 = vpow2.f32 %v508_v11  ;;  %v710_v31 = vsub.f32 %v702_v2, %v706_v15  ;;  %v5969_v2 = vpack.c.bf16 %v814_v1, %v813_v0 }
 0x401   :  { %v5097_v16 = vpack.c.bf16 %v5379_v13, %v5378_v14 }
 0x402   :  { %v712_v32 = vmul.f32 1.442695, %v710_v31  ;;  %5112 = vmatprep.subr.bf16.mxu0 %v5969_v2 }
 0x403   :  { %5098 = vmatprep.subr.bf16.mxu1 %v5097_v16  ;;  %v709_v17 = vpop.xlane.xlu0 %708  ;;  %5114 = vmatpush3.bf16.msra.mxu0 %v5969_v2 }
 0x404   :  { %v711_v18 = vsub.f32 %v703_v3, %v709_v17  ;;  %5100 = vmatpush3.bf16.msra.mxu1 %v5097_v16  ;;  %v609_v3 = vld [vmem:[%s5674_s3] sm:$0xff]  ;;  %s6410_s3 = sld [smem:[#allocation8_spill]] }
 0x405   :  { %v5975_v5 = vpack.c.bf16 %v610_v4, %v609_v3 }
 0x406   :  { %v714_v19 = vmul.f32 1.442695, %v711_v18 }
 0x407   :  { %5116 = vmatprep.subr.bf16.mxu0 %v5975_v5 }
 0x408   :  { %5449 = vpow2.f32 %v714_v19 }
 0x409   :  { %v5446_v20 = vpop.eup %5445  ;;  %5451 = vpow2.f32 %v712_v32 }
 0x40a   :  { %v5448_v21 = vpop.eup %5447  ;;  %v515_v22 = vsel %vm414_vm2, %v5446_v20, 0.0 }
 0x40b   :  { %516 = vadd.xlane.f32.xlu0 %v515_v22  ;;  %v512_v23 = vsel %vm414_vm2, %v5448_v21, 0.0 }
 0x40c   :  { %513 = vadd.xlane.f32.xlu1 %v512_v23 }
 0x412   :  { %v5450_v24 = vpop.eup %5449 }
 0x413   :  { %v719_v25 = vsel %vm414_vm2, %v5450_v24, 0.0  ;;  %v5452_v33 = vpop.eup %5451 }
 0x414   :  { %720 = vadd.xlane.f32.xlu0 %v719_v25  ;;  %v716_v34 = vsel %vm414_vm2, %v5452_v33, 0.0 }
 0x41d   :  { %5386 = vrot.lane.b32.xlu1 %v5940_v28, %s5624_s5 }
 0x42a   :  { %5381 = vrot.lane.b32.xlu0 %v5899_v44, %s5627_s21 }
 0x42e   :  { %1181 = vrot.lane.b32.xlu0 %v400_v27, %s5623_s0 }
 0x441   :  { %717 = vadd.xlane.f32.xlu1 %v716_v34 }
 0x452   :  { %5391 = vrot.lane.b32.xlu1 %v5940_v28, %s5625_s9 }
 0x456   :  { %1183 = vrot.lane.b32.xlu1 %v405_v26, %s5623_s0 }
 0x498   :  { %v517_v35 = vpop.xlane.xlu0 %516 }
 0x499   :  { %5453 = vrcp.f32 %v517_v35  ;;  %v514_v36 = vpop.xlane.xlu1 %513 }
 0x49a   :  { %5455 = vrcp.f32 %v514_v36 }
 0x49d   :  { %v5387_v40 = vpop.permute.xlu1 %5386 }
 0x49e   :  { %v5389_v43 = vunpack.i.h.bf16 %v5387_v40  ;;  %v5388_v47 = vunpack.i.l.bf16 %v5387_v40 }
 0x4a0   :  { %v5119_v52 = vpack.c.bf16 %v5389_v43, %v5388_v47 }
 0x4a1   :  { %v721_v39 = vpop.xlane.xlu0 %720 }
 0x4a2   :  { %5457 = vrcp.f32 %v721_v39 }
 0x4a3   :  { %v5454_v41 = vpop.eup %5453 }
 0x4a4   :  { %v5456_v42 = vpop.eup %5455  ;;  %v521_v46 = vmul.f32 %v5454_v41, %v5446_v20 }
 0x4a5   :  { %v5382_v44 = vpop.permute.xlu0 %5381  ;;  %v520_v45 = vmul.f32 %v5456_v42, %v5448_v21 }
 0x4a6   :  { %v5384_v48 = vunpack.i.h.bf16 %v5382_v44  ;;  %v5383_v49 = vunpack.i.l.bf16 %v5382_v44 }
 0x4a7   :  { %4740 = vmatprep.mubr.msk.f32.mxu1 %vm414_vm2, %v520_v45 }
 0x4a8   :  { %v5107_v50 = vpack.c.bf16 %v5384_v48, %v5383_v49  ;;  %4741 = vmatmul.mubr.msk.f32.vlgmr.msra.gmra.mrb[6].mxu1 %vm414_vm2, %v521_v46  ;;  %v5998_v49 = vld [vmem:[%s5679_s8] ss:$0 sm:$0xff]  ;;  %s6411_s8 = sld [smem:[#allocation10_spill]] }
 0x4a9   :  { %v1182_v62 = vpop.permute.xlu0 %1181 }
 0x4aa   :  { %5108 = vmatprep.subr.bf16.mxu1 %v5107_v50 }
 0x4ab   :  { %5110 = vmatpush3.bf16.msra.mxu1 %v5107_v50 }
 0x4ac   :  { %5121 = vmatprep.subr.msk.bf16.mxu1 %vm5913_vm3, %v5119_v52  ;;  %v5458_v55 = vpop.eup %5457 }
 0x4ad   :  { %v725_v60 = vmul.f32 %v5458_v55, %v5450_v24 }
 0x4ce   :  { %v718_v53 = vpop.xlane.xlu1 %717 }
 0x4cf   :  { %5459 = vrcp.f32 %v718_v53 }
 0x4d2   :  { %v5392_v54 = vpop.permute.xlu1 %5391 }
 0x4d3   :  { %v5394_v57 = vunpack.i.h.bf16 %v5392_v54  ;;  %v5393_v58 = vunpack.i.l.bf16 %v5392_v54 }
 0x4d5   :  { %v5129_v61 = vpack.c.bf16 %v5394_v57, %v5393_v58 }
 0x4d6   :  { %v1184_v63 = vpop.permute.xlu1 %1183 }
 0x4d9   :  { %v5460_v56 = vpop.eup %5459 }
 0x4da   :  { %v724_v59 = vmul.f32 %v5460_v56, %v5452_v33 }
 0x4dc   :  { %4754 = vmatprep.mubr.msk.f32.mxu1 %vm414_vm2, %v724_v59 }
 0x4dd   :  { %4755 = vmatmul.mubr.msk.f32.vlgmr.msra.gmra.mrb[8].mxu1 %vm414_vm2, %v725_v60 }
 0x4de   :  { %5124 = vmatpush3.bf16.xpose.msk.msra.mxu1 %vm5913_vm3, %v5119_v52  ;;  %4775 = vmatprep.mubr.msk.f32.mxu1 %vm414_vm2, %v400_v27 }
 0x4df   :  { %5131 = vmatprep.subr.msk.bf16.mxu1 %vm5913_vm3, %v5129_v61 }
 0x4e5   :  { %4776 = vmatmul.mubr.msk.f32.vlgmr.msra.gmra.mrb[10].mxu1 %vm414_vm2, %v405_v26 }
 0x4e6   :  { %5134 = vmatpush3.bf16.xpose.msk.msra.mxu1 %vm5913_vm3, %v5129_v61  ;;  %4789 = vmatprep.mubr.msk.f32.mxu1 %vm414_vm2, %v1182_v62 }
 0x4ed   :  { %4790 = vmatmul.mubr.msk.f32.vlgmr.msra.gmra.mrb[12].mxu1 %vm414_vm2, %v1184_v63 }
 0x57b   :  { %v4742_v6 = vpop.f32.mrb[6].mxu1 }
 0x57c   :  { %v600_v7 = vpop.f32.mrb[7].mxu1 }
 0x5b0   :  { %v4756_v8 = vpop.f32.mrb[8].mxu1 }
 0x5b1   :  { %v804_v9 = vpop.f32.mrb[9].mxu1 }
 0x5b2   :  { %4761 = vmatprep.mubr.msk.f32.mxu0 %vm414_vm2, %v804_v9 }
 0x5b3   :  { %4762 = vmatmul.mubr.msk.f32.vlgmr.msra.gmra.mrb[6].mxu0 %vm414_vm2, %v4756_v8 }
 0x5b4   :  { %4768 = vmatprep.mubr.msk.f32.mxu0 %vm414_vm2, %v600_v7  ;;  %5118 = vmatpush3.bf16.msra.mxu0 %v5975_v5 }
 0x5b8   :  { %v4777_v10 = vpop.f32.mrb[10].mxu1 }
 0x5b9   :  { %v1069_v11 = vmul.f32 0.25, %v4777_v10  ;;  %v1059_v12 = vpop.f32.mrb[11].mxu1 }
 0x5ba   :  { %v1068_v13 = vmul.f32 0.25, %v1059_v12 }
 0x5bb   :  { %v1073_v14 = vsel %vm414_vm2, %v1069_v11, -inf  ;;  %4769 = vmatmul.mubr.msk.f32.vlgmr.msra.gmra.mrb[6].mxu0 %vm414_vm2, %v4742_v6 }
 0x5bc   :  { %1074 = vmax.xlane.f32.xlu1 %v1073_v14  ;;  %v1070_v15 = vsel %vm414_vm2, %v1068_v13, -inf }
 0x5bd   :  { %1071 = vmax.xlane.f32.xlu0 %v1070_v15 }
 0x5c0   :  { %v4791_v16 = vpop.f32.mrb[12].mxu1 }
 0x5c1   :  { %v1263_v17 = vpop.f32.mrb[13].mxu1  ;;  %v1273_v19 = vmul.f32 0.25, %v4791_v16 }
 0x5c2   :  { %v1272_v18 = vmul.f32 0.25, %v1263_v17 }
 0x5c3   :  { %v1277_v21 = vsel %vm414_vm2, %v1273_v19, -inf }
 0x5c4   :  { %v1274_v20 = vsel %vm414_vm2, %v1272_v18, -inf }
 0x5c5   :  { %1275 = vmax.xlane.f32.xlu0 %v1274_v20 }
 0x5c9   :  { %1278 = vmax.xlane.f32.xlu0 %v1277_v21 }
 0x649   :  { %v1075_v22 = vpop.xlane.xlu1 %1074 }
 0x64a   :  { %v1077_v23 = vsub.f32 %v1069_v11, %v1075_v22  ;;  %v1072_v24 = vpop.xlane.xlu0 %1071 }
 0x64b   :  { %v1076_v25 = vsub.f32 %v1068_v13, %v1072_v24  ;;  %v1643_v24 = vld [vmem:[%s5694_s24] sm:$0xff] }
 0x64c   :  { %v1080_v26 = vmul.f32 1.442695, %v1077_v23 }
 0x64d   :  { %v1078_v27 = vmul.f32 1.442695, %v1076_v25 }
 0x64e   :  { %5461 = vpow2.f32 %v1080_v26  ;;  %v1645_v26 = vld [vmem:[%s5694_s24 + $0x10] sm:$0xff] }
 0x64f   :  { %5463 = vpow2.f32 %v1078_v27  ;;  %v1646_v27 = vld [vmem:[%s5694_s24 + $0x18] sm:$0xff] }
 0x652   :  { %v1276_v31 = vpop.xlane.xlu0 %1275 }
 0x653   :  { %v1280_v32 = vsub.f32 %v1272_v18, %v1276_v31  ;;  %v5151_v31 = vpack.c.bf16 %v1646_v27, %v1645_v26 }
 0x655   :  { %v1282_v33 = vmul.f32 1.442695, %v1280_v32 }
 0x656   :  { %v1279_v34 = vpop.xlane.xlu0 %1278 }
 0x657   :  { %5465 = vpow2.f32 %v1282_v33  ;;  %v1281_v35 = vsub.f32 %v1273_v19, %v1279_v34 }
 0x658   :  { %v5462_v36 = vpop.eup %5461 }
 0x659   :  { %v5464_v39 = vpop.eup %5463  ;;  %v1284_v40 = vmul.f32 1.442695, %v1281_v35  ;;  %v1085_v41 = vsel %vm414_vm2, %v5462_v36, 0.0 }
 0x65a   :  { %1086 = vadd.xlane.f32.xlu0 %v1085_v41  ;;  %v1082_v42 = vsel %vm414_vm2, %v5464_v39, 0.0  ;;  %v6020_v41 = vld [vmem:[%s5684_s14] ss:$0 sm:$0xff]  ;;  %s6412_s14 = sld [smem:[#allocation11_spill]] }
 0x65b   :  { %5467 = vpow2.f32 %v1284_v40  ;;  %1083 = vadd.xlane.f32.xlu1 %v1082_v42 }
 0x661   :  { %v5466_v43 = vpop.eup %5465 }
 0x662   :  { %v1286_v44 = vsel %vm414_vm2, %v5466_v43, 0.0 }
 0x663   :  { %1287 = vadd.xlane.f32.xlu1 %v1286_v44 }
 0x665   :  { %v5468_v45 = vpop.eup %5467 }
 0x666   :  { %v1289_v46 = vsel %vm414_vm2, %v5468_v45, 0.0 }
 0x667   :  { %1290 = vadd.xlane.f32.xlu0 %v1289_v46  ;;  %v6023_v46 = vld [vmem:[%s5689_s19] ss:$0 sm:$0xff]  ;;  %s6413_s19 = sld [smem:[#allocation12_spill]] }
 0x674   :  { %5396 = vrot.lane.b32.xlu1 %v5940_v28, %s5626_s17 }
 0x67d   :  { %5401 = vrot.lane.b32.xlu0 %v5940_v28, %s5627_s21 }
 0x68e   :  { %v4770_v47 = vpop.f32.mrb[6].mxu0 }
 0x68f   :  { %978 = vst.msk [vmem:[#allocation2 + $0x8] sm:$0xff] %vm310_vm1, %v4770_v47  ;;  %v968_v48 = vpop.f32.mrb[7].mxu0 }
 0x690   :  { %977 = vst.msk [vmem:[#allocation2] sm:$0xff] %vm310_vm1, %v968_v48 }
 0x696   :  { %v1550_v50 = vld [vmem:[#allocation2 + $0x8] sm:$0xff] }
 0x697   :  { %v1561_v52 = vadd.f32 %v5998_v49, %v1550_v50  ;;  %v1549_v53 = vld [vmem:[#allocation2] sm:$0xff] }
 0x698   :  { %v1560_v54 = vadd.f32 %v5998_v49, %v1549_v53  ;;  %v1755_v53 = vld [vmem:[%s5704_s6] sm:$0xff] }
 0x699   :  { %v1565_v55 = vadd.f32 %v1561_v52, %v5876_v30 }
 0x69a   :  { %v1564_v56 = vadd.f32 %v1560_v54, %v5874_v29  ;;  %v1756_v54 = vld [vmem:[%s5704_s6 + $0x8] sm:$0xff] }
 0x69b   :  { %v1571_v28 = vsel %vm310_vm1, %v1565_v55, 0.0 }
 0x69c   :  { %1572 = vadd.xlane.f32.xlu0 %v1571_v28  ;;  %v1568_v57 = vsel %vm310_vm1, %v1564_v56, 0.0 }
 0x69d   :  { %1569 = vadd.xlane.f32.xlu1 %v1568_v57  ;;  %v5155_v57 = vpack.c.bf16 %v1756_v54, %v1755_v53 }
 0x6e7   :  { %v1087_v59 = vpop.xlane.xlu0 %1086 }
 0x6e8   :  { %v1084_v58 = vpop.xlane.xlu1 %1083 }
 0x6e9   :  { %5469 = vrcp.f32 %v1084_v58  ;;  %v1757_v58 = vld [vmem:[%s5704_s6 + $0x10] sm:$0xff] }
 0x6ea   :  { %5471 = vrcp.f32 %v1087_v59  ;;  %v1758_v59 = vld [vmem:[%s5704_s6 + $0x18] sm:$0xff] }
 0x6f0   :  { %v1288_v60 = vpop.xlane.xlu1 %1287 }
 0x6f1   :  { %5473 = vrcp.f32 %v1288_v60  ;;  %v5159_v60 = vpack.c.bf16 %v1758_v59, %v1757_v58 }
 0x6f3   :  { %v5470_v61 = vpop.eup %5469 }
 0x6f4   :  { %v5397_v62 = vpop.permute.xlu1 %5396  ;;  %v1291_v63 = vpop.xlane.xlu0 %1290  ;;  %v1090_v0 = vmul.f32 %v5470_v61, %v5464_v39  ;;  %v1759_v61 = vld [vmem:[%s5704_s6 + $0x20] sm:$0xff] }
 0x6f5   :  { %v5399_v1 = vunpack.i.h.bf16 %v5397_v62  ;;  %v5398_v30 = vunpack.i.l.bf16 %v5397_v62  ;;  %5475 = vrcp.f32 %v1291_v63  ;;  %v5472_v3 = vpop.eup %5471  ;;  %v1760_v62 = vld [vmem:[%s5704_s6 + $0x28] sm:$0xff] }
 0x6f6   :  { %4782 = vmatprep.mubr.msk.f32.mxu0 %vm414_vm2, %v1090_v0  ;;  %v1091_v9 = vmul.f32 %v5472_v3, %v5462_v36  ;;  %v5163_v63 = vpack.c.bf16 %v1760_v62, %v1759_v61  ;;  %v1761_v0 = vld [vmem:[%s5704_s6 + $0x30] sm:$0xff] }
 0x6f7   :  { %v5125_v29 = vpack.c.bf16 %v5399_v1, %v5398_v30  ;;  %v6051_v30 = vld [vmem:[%s5699_s30] ss:$0 sm:$0xff]  ;;  %s6415_s30 = sld [smem:[#allocation13_spill]] }
 0x6f8   :  { %v5402_v4 = vpop.permute.xlu0 %5401 }
 0x6f9   :  { %v5404_v6 = vunpack.i.h.bf16 %v5402_v4  ;;  %v5403_v7 = vunpack.i.l.bf16 %v5402_v4  ;;  %5126 = vmatprep.subr.bf16.mxu0 %v5125_v29 }
 0x6fa   :  { %5128 = vmatpush3.bf16.msra.mxu0 %v5125_v29 }
 0x6fb   :  { %v5474_v8 = vpop.eup %5473  ;;  %v5135_v10 = vpack.c.bf16 %v5404_v6, %v5403_v7 }
 0x6fc   :  { %v1294_v11 = vmul.f32 %v5474_v8, %v5466_v43 }
 0x6fd   :  { %4783 = vmatmul.mubr.msk.f32.vlgmr.msra.gmra.mrb[8].mxu0 %vm414_vm2, %v1091_v9  ;;  %5136 = vmatprep.subr.bf16.mxu0 %v5135_v10 }
 0x6fe   :  { %5138 = vmatpush3.bf16.msra.mxu0 %v5135_v10  ;;  %4796 = vmatprep.mubr.msk.f32.mxu0 %vm414_vm2, %v1294_v11 }
 0x6ff   :  { %v5476_v12 = vpop.eup %5475  ;;  %5140 = vmatprep.subr.bf16.mxu0 %v5969_v2 }
 0x700   :  { %v1295_v13 = vmul.f32 %v5476_v12, %v5468_v45 }
 0x702   :  { %4797 = vmatmul.mubr.msk.f32.vlgmr.msra.gmra.mrb[10].mxu0 %vm414_vm2, %v1295_v13 }
 0x703   :  { %5142 = vmatpush3.bf16.msra.mxu0 %v5969_v2  ;;  %v1644_v2 = vld [vmem:[%s5694_s24 + $0x8] sm:$0xff]  ;;  %s6414_s24 = sld [smem:[#allocation15_spill]] }
 0x704   :  { %5144 = vmatprep.subr.bf16.mxu0 %v5975_v5  ;;  %v5147_v25 = vpack.c.bf16 %v1644_v2, %v1643_v24 }
 0x706   :  { %5148 = vmatprep.subr.bf16.mxu1 %v5147_v25 }
 0x707   :  { %5150 = vmatpush3.bf16.msra.mxu1 %v5147_v25 }
 0x708   :  { %5152 = vmatprep.subr.bf16.mxu1 %v5151_v31 }
 0x70b   :  { %5154 = vmatpush3.bf16.msra.mxu1 %v5151_v31 }
 0x729   :  { %v1573_v14 = vpop.xlane.xlu0 %1572 }
 0x72a   :  { %v1582_v15 = vmul.f32 0.03125, %v1573_v14  ;;  %v1570_v16 = vpop.xlane.xlu1 %1569 }
 0x72b   :  { %v1581_v17 = vmul.f32 0.03125, %v1570_v16 }
 0x72c   :  { %v1586_v18 = vsub.f32 %v1565_v55, %v1582_v15 }
 0x72d   :  { %v1585_v19 = vsub.f32 %v1564_v56, %v1581_v17 }
 0x72e   :  { %v1590_v20 = vmul.f32 %v1586_v18, %v1586_v18 }
 0x72f   :  { %v1589_v21 = vmul.f32 %v1585_v19, %v1585_v19 }
 0x730   :  { %v1596_v22 = vsel %vm310_vm1, %v1590_v20, 0.0 }
 0x731   :  { %1597 = vadd.xlane.f32.xlu0 %v1596_v22  ;;  %v1593_v23 = vsel %vm310_vm1, %v1589_v21, 0.0 }
 0x732   :  { %1594 = vadd.xlane.f32.xlu1 %v1593_v23 }
 0x7be   :  { %v1598_v32 = vpop.xlane.xlu0 %1597 }
 0x7bf   :  { %v1606_v33 = vmul.f32 0.03125, %v1598_v32  ;;  %v1595_v34 = vpop.xlane.xlu1 %1594 }
 0x7c0   :  { %v1605_v35 = vmul.f32 0.03125, %v1595_v34 }
 0x7c1   :  { %v1610_v36 = vadd.f32 1e-05, %v1606_v33 }
 0x7c2   :  { %v1609_v39 = vadd.f32 1e-05, %v1605_v35 }
 0x7c3   :  { %5477 = vrsqrt.f32 %v1610_v36 }
 0x7c4   :  { %5479 = vrsqrt.f32 %v1609_v39 }
 0x7cd   :  { %v5478_v40 = vpop.eup %5477 }
 0x7ce   :  { %v5480_v42 = vpop.eup %5479  ;;  %v1618_v43 = vmul.f32 %v5478_v40, %v1586_v18 }
 0x7cf   :  { %v1617_v44 = vmul.f32 %v5480_v42, %v1585_v19 }
 0x7d0   :  { %v4784_v45 = vpop.f32.mrb[8].mxu0  ;;  %v1629_v47 = vmul.f32 %v6020_v41, %v1618_v43 }
 0x7d1   :  { %v1170_v48 = vpop.f32.mrb[9].mxu0  ;;  %v1628_v50 = vmul.f32 %v6020_v41, %v1617_v44 }
 0x7d2   :  { %v6033_v55 = vadd.f32 %v6023_v46, %v1629_v47 }
 0x7d3   :  { %v6028_v52 = vadd.f32 %v6023_v46, %v1628_v50 }
 0x7d5   :  { %v4798_v56 = vpop.f32.mrb[10].mxu0  ;;  %4821 = vmatprep.mubr.msk.f32.mxu1 %vm310_vm1, %v6028_v52 }
 0x7d6   :  { %v1374_v28 = vpop.f32.mrb[11].mxu0  ;;  %4822 = vmatmul.mubr.msk.f32.vlgmr.msra.gmra.mrb[14].mxu1 %vm310_vm1, %v6033_v55 }
 0x7d7   :  { %4803 = vmatprep.mubr.msk.f32.mxu0 %vm414_vm2, %v1374_v28 }
 0x7d8   :  { %4804 = vmatmul.mubr.msk.f32.vlgmr.msra.gmra.mrb[12].mxu0 %vm414_vm2, %v4798_v56 }
 0x7d9   :  { %5146 = vmatpush3.bf16.msra.mxu0 %v5975_v5  ;;  %4810 = vmatprep.mubr.msk.f32.mxu0 %vm414_vm2, %v1170_v48  ;;  %v1762_v5 = vld [vmem:[%s5704_s6 + $0x38] sm:$0xff]  ;;  %s6416_s6 = sld [smem:[#allocation14_spill]] }
 0x7da   :  { %5156 = vmatprep.subr.bf16.mxu0 %v5155_v57  ;;  %v5167_v1 = vpack.c.bf16 %v1762_v5, %v1761_v0  ;;  %v1945_v0 = vld [vmem:[%s6408_s25] sm:$0xff]  ;;  %v1946_v5 = vld [vmem:[%s6408_s25 + $0x8] sm:$0xff] }
 0x7e0   :  { %4811 = vmatmul.mubr.msk.f32.vlgmr.msra.gmra.mrb[12].mxu0 %vm414_vm2, %v4784_v45 }
 0x7e1   :  { %5158 = vmatpush3.bf16.msra.mxu0 %v5155_v57 }
 0x7e2   :  { %5160 = vmatprep.subr.bf16.mxu0 %v5159_v60 }
 0x7e5   :  { %5162 = vmatpush3.bf16.msra.mxu0 %v5159_v60 }
 0x7e6   :  { %5164 = vmatprep.subr.bf16.mxu0 %v5163_v63 }
 0x7e9   :  { %5166 = vmatpush3.bf16.msra.mxu0 %v5163_v63 }
 0x7ea   :  { %5168 = vmatprep.subr.bf16.mxu0 %v5167_v1 }
 0x7ed   :  { %5170 = vmatpush3.bf16.msra.mxu0 %v5167_v1  ;;  %v5171_v1 = vpack.c.bf16 %v1946_v5, %v1945_v0 }
 0x7ef   :  { %5172 = vmatprep.subr.bf16.mxu1 %v5171_v1 }
 0x7f0   :  { %5174 = vmatpush3.bf16.msra.mxu1 %v5171_v1 }
 0x8a9   :  { %v4823_v29 = vpop.f32.mrb[14].mxu1 }
 0x8aa   :  { %v1738_v3 = vadd.f32 %v4823_v29, %v6051_v30  ;;  %v1732_v4 = vpop.f32.mrb[15].mxu1  ;;  %v1947_v29 = vld [vmem:[%s6408_s25 + $0x10] sm:$0xff] }
 0x8ab   :  { %v1733_v6 = vadd.f32 %v6051_v30, %v1732_v4 }
 0x8ac   :  { %v1752_v8 = vmax.f32 %v1738_v3, 0.0  ;;  %v1948_v3 = vld [vmem:[%s6408_s25 + $0x18] sm:$0xff] }
 0x8ad   :  { %v1751_v7 = vmax.f32 %v1733_v6, 0.0  ;;  %v5175_v4 = vpack.c.bf16 %v1948_v3, %v1947_v29 }
 0x8af   :  { %4843 = vmatprep.mubr.msk.f32.mxu0 %vm193_vm0, %v1751_v7  ;;  %5176 = vmatprep.subr.bf16.mxu1 %v5175_v4 }
 0x8b0   :  { %4844 = vmatmul.mubr.msk.f32.vlgmr.msra.gmra.mrb[14].mxu0 %vm193_vm0, %v1752_v8  ;;  %5178 = vmatpush3.bf16.msra.mxu1 %v5175_v4 }
 0x8b3   :  { %v4812_v9 = vpop.f32.mrb[12].mxu0 }
 0x8b4   :  { %1548 = vst.msk [vmem:[#allocation2 + $0x18] sm:$0xff] %vm310_vm1, %v4812_v9  ;;  %v1538_v10 = vpop.f32.mrb[13].mxu0 }
 0x8b5   :  { %1547 = vst.msk [vmem:[#allocation2 + $0x10] sm:$0xff] %vm310_vm1, %v1538_v10 }
 0x8bb   :  { %v1552_v11 = vld [vmem:[#allocation2 + $0x18] sm:$0xff] }
 0x8bc   :  { %v1563_v12 = vadd.f32 %v5998_v49, %v1552_v11  ;;  %v1551_v13 = vld [vmem:[#allocation2 + $0x10] sm:$0xff] }
 0x8bd   :  { %v1562_v14 = vadd.f32 %v5998_v49, %v1551_v13  ;;  %v6089_v13 = vld [vmem:[%s6409_s29] ss:$0 sm:$0xff] }
 0x8be   :  { %v1567_v15 = vadd.f32 %v1563_v12, %v5884_v37 }
 0x8bf   :  { %v1566_v16 = vadd.f32 %v1562_v14, %v5886_v38  ;;  %v6068_v38 = vld [vmem:[%s5709_s12] ss:$0 sm:$0xff]  ;;  %s6417_s12 = sld [smem:[#allocation17_spill]] }
 0x8c0   :  { %v1577_v17 = vsel %vm310_vm1, %v1567_v15, 0.0 }
 0x8c1   :  { %1578 = vadd.xlane.f32.xlu0 %v1577_v17  ;;  %v1574_v18 = vsel %vm310_vm1, %v1566_v16, 0.0 }
 0x8c2   :  { %1575 = vadd.xlane.f32.xlu1 %v1574_v18  ;;  %v6093_v18 = vld [vmem:[%s6410_s3] ss:$0 sm:$0xff] }
 0x94e   :  { %v1579_v19 = vpop.xlane.xlu0 %1578 }
 0x94f   :  { %v1584_v20 = vmul.f32 0.03125, %v1579_v19  ;;  %v1576_v21 = vpop.xlane.xlu1 %1575 }
 0x950   :  { %v1583_v22 = vmul.f32 0.03125, %v1576_v21 }
 0x951   :  { %v1588_v23 = vsub.f32 %v1567_v15, %v1584_v20 }
 0x952   :  { %v1587_v24 = vsub.f32 %v1566_v16, %v1583_v22 }
 0x953   :  { %v1592_v2 = vmul.f32 %v1588_v23, %v1588_v23 }
 0x954   :  { %v1591_v25 = vmul.f32 %v1587_v24, %v1587_v24 }
 0x955   :  { %v1602_v49 = vsel %vm310_vm1, %v1592_v2, 0.0 }
 0x956   :  { %1603 = vadd.xlane.f32.xlu0 %v1602_v49  ;;  %v1599_v37 = vsel %vm310_vm1, %v1591_v25, 0.0 }
 0x957   :  { %1600 = vadd.xlane.f32.xlu1 %v1599_v37 }
 0x983   :  { %v4845_v26 = vpop.f32.mrb[14].mxu0 }
 0x984   :  { %v1854_v27 = vadd.f32 %v4845_v26, %v6068_v38  ;;  %v1848_v31 = vpop.f32.mrb[15].mxu0 }
 0x985   :  { %v1849_v32 = vadd.f32 %v6068_v38, %v1848_v31 }
 0x986   :  { %v1868_v33 = vadd.f32 %v1854_v27, %v6033_v55 }
 0x987   :  { %v1867_v34 = vadd.f32 %v1849_v32, %v6028_v52 }
 0x988   :  { %v1874_v35 = vsel %vm310_vm1, %v1868_v33, 0.0 }
 0x989   :  { %1875 = vadd.xlane.f32.xlu0 %v1874_v35  ;;  %v1871_v36 = vsel %vm310_vm1, %v1867_v34, 0.0 }
 0x98a   :  { %1872 = vadd.xlane.f32.xlu1 %v1871_v36 }
 0x9e3   :  { %v1604_v39 = vpop.xlane.xlu0 %1603 }
 0x9e4   :  { %v1608_v40 = vmul.f32 0.03125, %v1604_v39  ;;  %v1601_v42 = vpop.xlane.xlu1 %1600 }
 0x9e5   :  { %v1607_v43 = vmul.f32 0.03125, %v1601_v42 }
 0x9e6   :  { %v1612_v44 = vadd.f32 1e-05, %v1608_v40 }
 0x9e7   :  { %v1611_v45 = vadd.f32 1e-05, %v1607_v43 }
 0x9e8   :  { %5481 = vrsqrt.f32 %v1612_v44 }
 0x9e9   :  { %5483 = vrsqrt.f32 %v1611_v45 }
 0x9f2   :  { %v5482_v47 = vpop.eup %5481 }
 0x9f3   :  { %v5484_v48 = vpop.eup %5483  ;;  %v1620_v50 = vmul.f32 %v5482_v47, %v1588_v23 }
 0x9f4   :  { %v1619_v53 = vmul.f32 %v5484_v48, %v1587_v24 }
 0x9f5   :  { %v1631_v52 = vmul.f32 %v6020_v41, %v1620_v50 }
 0x9f6   :  { %v1630_v54 = vmul.f32 %v6020_v41, %v1619_v53  ;;  %v6117_v53 = vld [vmem:[%s6411_s8] ss:$0 sm:$0xff] }
 0x9f7   :  { %v1642_v56 = vadd.f32 %v6023_v46, %v1631_v52 }
 0x9f8   :  { %v1641_v55 = vadd.f32 %v6023_v46, %v1630_v54 }
 0x9fa   :  { %4824 = vmatprep.mubr.msk.f32.mxu1 %vm310_vm1, %v1641_v55 }
 0x9fb   :  { %4825 = vmatmul.mubr.msk.f32.gmra.mrb[16].mxu1 %vm310_vm1, %v1642_v56 }
 0xa16   :  { %v1876_v28 = vpop.xlane.xlu0 %1875 }
 0xa17   :  { %v1884_v57 = vmul.f32 0.03125, %v1876_v28  ;;  %v1873_v58 = vpop.xlane.xlu1 %1872 }
 0xa18   :  { %v1883_v59 = vmul.f32 0.03125, %v1873_v58 }
 0xa19   :  { %v1888_v60 = vsub.f32 %v1868_v33, %v1884_v57 }
 0xa1a   :  { %v1887_v61 = vsub.f32 %v1867_v34, %v1883_v59 }
 0xa1b   :  { %v1892_v62 = vmul.f32 %v1888_v60, %v1888_v60 }
 0xa1c   :  { %v1891_v41 = vmul.f32 %v1887_v61, %v1887_v61 }
 0xa1d   :  { %v1898_v63 = vsel %vm310_vm1, %v1892_v62, 0.0 }
 0xa1e   :  { %1899 = vadd.xlane.f32.xlu0 %v1898_v63  ;;  %v1895_v46 = vsel %vm310_vm1, %v1891_v41, 0.0 }
 0xa1f   :  { %1896 = vadd.xlane.f32.xlu1 %v1895_v46 }
 0xaab   :  { %v1900_v6 = vpop.xlane.xlu0 %1899 }
 0xaac   :  { %v1908_v7 = vmul.f32 0.03125, %v1900_v6  ;;  %v1897_v8 = vpop.xlane.xlu1 %1896 }
 0xaad   :  { %v1907_v9 = vmul.f32 0.03125, %v1897_v8 }
 0xaae   :  { %v1912_v10 = vadd.f32 1e-05, %v1908_v7 }
 0xaaf   :  { %v1911_v11 = vadd.f32 1e-05, %v1907_v9 }
 0xab0   :  { %5485 = vrsqrt.f32 %v1912_v10 }
 0xab1   :  { %5487 = vrsqrt.f32 %v1911_v11 }
 0xaba   :  { %v5486_v12 = vpop.eup %5485 }
 0xabb   :  { %v5488_v14 = vpop.eup %5487  ;;  %v1920_v15 = vmul.f32 %v5486_v12, %v1888_v60 }
 0xabc   :  { %v1919_v16 = vmul.f32 %v5488_v14, %v1887_v61 }
 0xabd   :  { %v1931_v17 = vmul.f32 %v6089_v13, %v1920_v15 }
 0xabe   :  { %v1930_v19 = vmul.f32 %v6089_v13, %v1919_v16 }
 0xabf   :  { %v6100_v21 = vadd.f32 %v6093_v18, %v1931_v17 }
 0xac0   :  { %v6097_v20 = vadd.f32 %v6093_v18, %v1930_v19 }
 0xac2   :  { %4857 = vmatprep.mubr.msk.f32.mxu1 %vm310_vm1, %v6097_v20 }
 0xac3   :  { %4858 = vmatmul.mubr.msk.f32.vlgmr.msra.gmra.mrb[18].mxu1 %vm310_vm1, %v6100_v21 }
 0xace   :  { %v4826_v22 = vpop.f32.mrb[16].mxu1 }
 0xacf   :  { %v1748_v23 = vadd.f32 %v4826_v22, %v6051_v30  ;;  %v1742_v24 = vpop.f32.mrb[17].mxu1 }
 0xad0   :  { %v1743_v2 = vadd.f32 %v6051_v30, %v1742_v24 }
 0xad1   :  { %v1754_v49 = vmax.f32 %v1748_v23, 0.0 }
 0xad2   :  { %v1753_v25 = vmax.f32 %v1743_v2, 0.0 }
 0xad4   :  { %4846 = vmatprep.mubr.msk.f32.mxu0 %vm193_vm0, %v1753_v25 }
 0xad5   :  { %4847 = vmatmul.mubr.msk.f32.gmra.mrb[16].mxu0 %vm193_vm0, %v1754_v49 }
 0xb96   :  { %v4859_v37 = vpop.f32.mrb[18].mxu1 }
 0xb97   :  { %v2034_v26 = vpop.f32.mrb[19].mxu1  ;;  %v2040_v52 = vadd.f32 %v4859_v37, %v6117_v53 }
 0xb98   :  { %v2035_v54 = vadd.f32 %v6117_v53, %v2034_v26 }
 0xba8   :  { %v4848_v27 = vpop.f32.mrb[16].mxu0 }
 0xba9   :  { %v1864_v31 = vadd.f32 %v4848_v27, %v6068_v38  ;;  %v1858_v32 = vpop.f32.mrb[17].mxu0 }
 0xbaa   :  { %v1859_v33 = vadd.f32 %v6068_v38, %v1858_v32 }
 0xbab   :  { %v1870_v34 = vadd.f32 %v1864_v31, %v1642_v56 }
 0xbac   :  { %v1869_v35 = vadd.f32 %v1859_v33, %v1641_v55  ;;  %v6121_v55 = vpack.i.bf16 %v2040_v52, %v2035_v54 }
 0xbad   :  { %v1880_v36 = vsel %vm310_vm1, %v1870_v34, 0.0 }
 0xbae   :  { %1881 = vadd.xlane.f32.xlu0 %v1880_v36  ;;  %v1877_v30 = vsel %vm310_vm1, %v1869_v35, 0.0 }
 0xbaf   :  { %1878 = vadd.xlane.f32.xlu1 %v1877_v30 }
 0xc3b   :  { %v1882_v39 = vpop.xlane.xlu0 %1881 }
 0xc3c   :  { %v1886_v40 = vmul.f32 0.03125, %v1882_v39  ;;  %v1879_v42 = vpop.xlane.xlu1 %1878 }
 0xc3d   :  { %v1885_v43 = vmul.f32 0.03125, %v1879_v42 }
 0xc3e   :  { %v1890_v44 = vsub.f32 %v1870_v34, %v1886_v40 }
 0xc3f   :  { %v1889_v45 = vsub.f32 %v1869_v35, %v1885_v43 }
 0xc40   :  { %v1894_v47 = vmul.f32 %v1890_v44, %v1890_v44 }
 0xc41   :  { %v1893_v48 = vmul.f32 %v1889_v45, %v1889_v45 }
 0xc42   :  { %v1904_v50 = vsel %vm310_vm1, %v1894_v47, 0.0 }
 0xc43   :  { %1905 = vadd.xlane.f32.xlu0 %v1904_v50  ;;  %v1901_v38 = vsel %vm310_vm1, %v1893_v48, 0.0 }
 0xc44   :  { %1902 = vadd.xlane.f32.xlu1 %v1901_v38 }
 0xc55   :  { %5406 = vrot.lane.b32.xlu1 %v6121_v55, %s5624_s5 }
 0xc59   :  { %5411 = vrot.lane.b32.xlu0 %v6121_v55, %s5625_s9  ;;  %2255 = vrot.lane.b32.xlu1 %v2035_v54, %s5623_s0 }
 0xc5d   :  { %2257 = vrot.lane.b32.xlu1 %v2040_v52, %s5623_s0 }
 0xcd0   :  { %v1906_v56 = vpop.xlane.xlu0 %1905 }
 0xcd1   :  { %v1910_v28 = vmul.f32 0.03125, %v1906_v56  ;;  %v1903_v57 = vpop.xlane.xlu1 %1902 }
 0xcd2   :  { %v1909_v58 = vmul.f32 0.03125, %v1903_v57 }
 0xcd3   :  { %v1914_v59 = vadd.f32 1e-05, %v1910_v28 }
 0xcd4   :  { %v1913_v60 = vadd.f32 1e-05, %v1909_v58  ;;  %v5412_v61 = vpop.permute.xlu0 %5411 }
 0xcd5   :  { %5489 = vrsqrt.f32 %v1914_v59  ;;  %v5414_v62 = vunpack.i.h.bf16 %v5412_v61  ;;  %v5413_v41 = vunpack.i.l.bf16 %v5412_v61  ;;  %v5407_v63 = vpop.permute.xlu1 %5406 }
 0xcd6   :  { %5491 = vrsqrt.f32 %v1913_v60  ;;  %v5409_v46 = vunpack.i.h.bf16 %v5407_v63  ;;  %v5408_v0 = vunpack.i.l.bf16 %v5407_v63 }
 0xcd7   :  { %v5189_v5 = vpack.c.bf16 %v5414_v62, %v5413_v41 }
 0xcd8   :  { %v5179_v1 = vpack.c.bf16 %v5409_v46, %v5408_v0 }
 0xcd9   :  { %5191 = vmatprep.subr.msk.bf16.mxu0 %vm5913_vm3, %v5189_v5  ;;  %v2256_v29 = vpop.permute.xlu1 %2255 }
 0xcda   :  { %5181 = vmatprep.subr.msk.bf16.mxu1 %vm5913_vm3, %v5179_v1  ;;  %5194 = vmatpush3.bf16.xpose.msk.msra.mxu0 %vm5913_vm3, %v5189_v5 }
 0xcdb   :  { %4881 = vmatprep.mubr.msk.f32.mxu0 %vm414_vm2, %v2256_v29  ;;  %5184 = vmatpush3.bf16.xpose.msk.msra.mxu1 %vm5913_vm3, %v5179_v1 }
 0xcdd   :  { %v2258_v6 = vpop.permute.xlu1 %2257 }
 0xcdf   :  { %v5490_v3 = vpop.eup %5489 }
 0xce0   :  { %v5492_v4 = vpop.eup %5491  ;;  %v1922_v7 = vmul.f32 %v5490_v3, %v1890_v44 }
 0xce1   :  { %4882 = vmatmul.mubr.msk.f32.vlgmr.msra.gmra.mrb[18].mxu0 %vm414_vm2, %v2258_v6  ;;  %v1921_v8 = vmul.f32 %v5492_v4, %v1889_v45 }
 0xce2   :  { %v1933_v9 = vmul.f32 %v6089_v13, %v1922_v7 }
 0xce3   :  { %v1932_v10 = vmul.f32 %v6089_v13, %v1921_v8 }
 0xce4   :  { %v6145_v12 = vadd.f32 %v6093_v18, %v1933_v9 }
 0xce5   :  { %v6142_v11 = vadd.f32 %v6093_v18, %v1932_v10 }
 0xce7   :  { %4860 = vmatprep.mubr.msk.f32.mxu1 %vm310_vm1, %v6142_v11 }
 0xce8   :  { %4861 = vmatmul.mubr.msk.f32.gmra.mrb[20].mxu1 %vm310_vm1, %v6145_v12 }
 0xce9   :  { %4867 = vmatprep.mubr.msk.f32.mxu1 %vm414_vm2, %v2035_v54 }
 0xcec   :  { %4868 = vmatmul.mubr.msk.f32.vlgmr.msra.gmra.mrb[22].mxu1 %vm414_vm2, %v2040_v52 }
 0xdb4   :  { %v4883_v14 = vpop.f32.mrb[18].mxu0 }
 0xdb5   :  { %v2337_v15 = vpop.f32.mrb[19].mxu0  ;;  %v2347_v25 = vmul.f32 0.25, %v4883_v14 }
 0xdb6   :  { %v2346_v24 = vmul.f32 0.25, %v2337_v15 }
 0xdb7   :  { %v2351_v37 = vsel %vm414_vm2, %v2347_v25, -inf }
 0xdb8   :  { %v2348_v49 = vsel %vm414_vm2, %v2346_v24, -inf }
 0xdbb   :  { %v4862_v16 = vpop.f32.mrb[20].mxu1 }
 0xdbc   :  { %v2044_v13 = vpop.f32.mrb[21].mxu1  ;;  %v2050_v56 = vadd.f32 %v4862_v16, %v6117_v53 }
 0xdbd   :  { %v2045_v50 = vadd.f32 %v6117_v53, %v2044_v13 }
 0xdbf   :  { %v4869_v17 = vpop.f32.mrb[22].mxu1  ;;  %v6168_v28 = vpack.i.bf16 %v2050_v56, %v2045_v50 }
 0xdc0   :  { %v2143_v19 = vmul.f32 0.25, %v4869_v17  ;;  %v2133_v22 = vpop.f32.mrb[23].mxu1 }
 0xdc1   :  { %v2142_v23 = vmul.f32 0.25, %v2133_v22 }
 0xdc2   :  { %v2147_v18 = vsel %vm414_vm2, %v2143_v19, -inf }
 0xdc3   :  { %2148 = vmax.xlane.f32.xlu1 %v2147_v18  ;;  %v2144_v2 = vsel %vm414_vm2, %v2142_v23, -inf  ;;  %v2457_v18 = vld [vmem:[%s6412_s14 + $0x10] sm:$0xff] }
 0xdc4   :  { %2145 = vmax.xlane.f32.xlu0 %v2144_v2 }
 0xdc8   :  { %2349 = vmax.xlane.f32.xlu0 %v2348_v49  ;;  %v2254_v49 = vld [vmem:[%s6412_s14 + $0x8] sm:$0xff] }
 0xdcc   :  { %2352 = vmax.xlane.f32.xlu0 %v2351_v37 }
 0xe50   :  { %v2149_v27 = vpop.xlane.xlu1 %2148 }
 0xe51   :  { %v2146_v26 = vpop.xlane.xlu0 %2145  ;;  %v2151_v33 = vsub.f32 %v2143_v19, %v2149_v27 }
 0xe52   :  { %v2150_v48 = vsub.f32 %v2142_v23, %v2146_v26 }
 0xe53   :  { %v2154_v30 = vmul.f32 1.442695, %v2151_v33 }
 0xe54   :  { %v2152_v38 = vmul.f32 1.442695, %v2150_v48 }
 0xe55   :  { %v2350_v31 = vpop.xlane.xlu0 %2349 }
 0xe56   :  { %v2354_v32 = vsub.f32 %v2346_v24, %v2350_v31  ;;  %v2458_v24 = vld [vmem:[%s6412_s14 + $0x18] sm:$0xff] }
 0xe57   :  { %v6193_v2 = vpack.c.bf16 %v2458_v24, %v2457_v18 }
 0xe58   :  { %v2356_v34 = vmul.f32 1.442695, %v2354_v32 }
 0xe59   :  { %v2353_v35 = vpop.xlane.xlu0 %2352  ;;  %5200 = vmatprep.subr.bf16.mxu0 %v6193_v2 }
 0xe5a   :  { %5493 = vpow2.f32 %v2356_v34  ;;  %v2355_v36 = vsub.f32 %v2347_v25, %v2353_v35  ;;  %5202 = vmatpush3.bf16.msra.mxu0 %v6193_v2  ;;  %v2253_v25 = vld [vmem:[%s6412_s14] sm:$0xff] }
 0xe5b   :  { %v6199_v37 = vpack.c.bf16 %v2254_v49, %v2253_v25 }
 0xe5c   :  { %v2358_v39 = vmul.f32 1.442695, %v2355_v36 }
 0xe5d   :  { %5204 = vmatprep.subr.bf16.mxu0 %v6199_v37 }
 0xe5e   :  { %5495 = vpow2.f32 %v2358_v39 }
 0xe5f   :  { %5497 = vpow2.f32 %v2154_v30 }
 0xe60   :  { %5499 = vpow2.f32 %v2152_v38 }
 0xe64   :  { %v5494_v40 = vpop.eup %5493 }
 0xe65   :  { %v2360_v42 = vsel %vm414_vm2, %v5494_v40, 0.0 }
 0xe66   :  { %2361 = vadd.xlane.f32.xlu1 %v2360_v42 }
 0xe68   :  { %v5496_v43 = vpop.eup %5495 }
 0xe69   :  { %v2363_v44 = vsel %vm414_vm2, %v5496_v43, 0.0  ;;  %v5498_v45 = vpop.eup %5497 }
 0xe6a   :  { %2364 = vadd.xlane.f32.xlu0 %v2363_v44  ;;  %v2159_v47 = vsel %vm414_vm2, %v5498_v45, 0.0  ;;  %v5500_v52 = vpop.eup %5499 }
 0xe6b   :  { %v2156_v54 = vsel %vm414_vm2, %v5500_v52, 0.0 }
 0xe6e   :  { %2160 = vadd.xlane.f32.xlu0 %v2159_v47 }
 0xe77   :  { %5416 = vrot.lane.b32.xlu1 %v6121_v55, %s5626_s17 }
 0xe84   :  { %5421 = vrot.lane.b32.xlu0 %v6121_v55, %s5627_s21 }
 0xe88   :  { %2825 = vrot.lane.b32.xlu0 %v2045_v50, %s5623_s0 }
 0xe9b   :  { %2157 = vadd.xlane.f32.xlu1 %v2156_v54 }
 0xeac   :  { %5426 = vrot.lane.b32.xlu1 %v6168_v28, %s5624_s5  ;;  %s6431_s5 = sld [smem:[#allocation6_spill]] }
 0xeb0   :  { %5431 = vrot.lane.b32.xlu1 %v6168_v28, %s5625_s9  ;;  %s6432_s9 = sld [smem:[#allocation30_spill]] }
 0xeb4   :  { %2827 = vrot.lane.b32.xlu1 %v2050_v56, %s5623_s0  ;;  %s6430_s0 = sld [smem:[#allocation26_spill]] }
 0xef3   :  { %v2362_v55 = vpop.xlane.xlu1 %2361 }
 0xef4   :  { %5501 = vrcp.f32 %v2362_v55 }
 0xef7   :  { %v5417_v57 = vpop.permute.xlu1 %5416  ;;  %v2365_v58 = vpop.xlane.xlu0 %2364 }
 0xef8   :  { %v5419_v59 = vunpack.i.h.bf16 %v5417_v57  ;;  %v5418_v60 = vunpack.i.l.bf16 %v5417_v57 }
 0xefa   :  { %v5185_v61 = vpack.c.bf16 %v5419_v59, %v5418_v60 }
 0xefb   :  { %v2161_v62 = vpop.xlane.xlu0 %2160 }
 0xefc   :  { %5186 = vmatprep.subr.bf16.mxu1 %v5185_v61  ;;  %5503 = vrcp.f32 %v2161_v62 }
 0xefd   :  { %5188 = vmatpush3.bf16.msra.mxu1 %v5185_v61 }
 0xefe   :  { %v5502_v1 = vpop.eup %5501 }
 0xeff   :  { %v5422_v53 = vpop.permute.xlu0 %5421  ;;  %v2368_v10 = vmul.f32 %v5502_v1, %v5494_v40 }
 0xf00   :  { %v5424_v41 = vunpack.i.h.bf16 %v5422_v53  ;;  %v5423_v63 = vunpack.i.l.bf16 %v5422_v53 }
 0xf02   :  { %v5195_v46 = vpack.c.bf16 %v5424_v41, %v5423_v63 }
 0xf03   :  { %v2826_v22 = vpop.permute.xlu0 %2825 }
 0xf04   :  { %5196 = vmatprep.subr.bf16.mxu1 %v5195_v46 }
 0xf06   :  { %v5504_v29 = vpop.eup %5503 }
 0xf07   :  { %v2165_v8 = vmul.f32 %v5504_v29, %v5498_v45 }
 0xf28   :  { %v2158_v0 = vpop.xlane.xlu1 %2157 }
 0xf29   :  { %5505 = vrcp.f32 %v2158_v0 }
 0xf2a   :  { %5507 = vrcp.f32 %v2365_v58 }
 0xf2c   :  { %v5427_v5 = vpop.permute.xlu1 %5426 }
 0xf2d   :  { %v5429_v4 = vunpack.i.h.bf16 %v5427_v5  ;;  %v5428_v6 = vunpack.i.l.bf16 %v5427_v5 }
 0xf2f   :  { %v5207_v14 = vpack.c.bf16 %v5429_v4, %v5428_v6 }
 0xf30   :  { %v5432_v16 = vpop.permute.xlu1 %5431 }
 0xf31   :  { %v5434_v13 = vunpack.i.h.bf16 %v5432_v16  ;;  %v5433_v17 = vunpack.i.l.bf16 %v5432_v16 }
 0xf33   :  { %v5506_v3 = vpop.eup %5505  ;;  %v5217_v19 = vpack.c.bf16 %v5434_v13, %v5433_v17 }
 0xf34   :  { %v2164_v7 = vmul.f32 %v5506_v3, %v5500_v52  ;;  %v5508_v9 = vpop.eup %5507  ;;  %v2828_v23 = vpop.permute.xlu1 %2827  ;;  %v6222_v3 = vld [vmem:[%s6413_s19] ss:$0 sm:$0xff] }
 0xf35   :  { %v2369_v15 = vmul.f32 %v5508_v9, %v5496_v43 }
 0xf36   :  { %4874 = vmatprep.mubr.msk.f32.mxu1 %vm414_vm2, %v2164_v7 }
 0xf37   :  { %4875 = vmatmul.mubr.msk.f32.vlgmr.msra.gmra.mrb[24].mxu1 %vm414_vm2, %v2165_v8 }
 0xf38   :  { %5198 = vmatpush3.bf16.msra.mxu1 %v5195_v46  ;;  %4888 = vmatprep.mubr.msk.f32.mxu1 %vm414_vm2, %v2368_v10 }
 0xf39   :  { %5209 = vmatprep.subr.msk.bf16.mxu1 %vm5913_vm3, %v5207_v14 }
 0xf3b   :  { %4889 = vmatmul.mubr.msk.f32.vlgmr.msra.gmra.mrb[26].mxu1 %vm414_vm2, %v2369_v15 }
 0xf3c   :  { %4909 = vmatprep.mubr.msk.f32.mxu1 %vm414_vm2, %v2045_v50 }
 0xf41   :  { %5212 = vmatpush3.bf16.xpose.msk.msra.mxu1 %vm5913_vm3, %v5207_v14 }
 0xf42   :  { %5219 = vmatprep.subr.msk.bf16.mxu1 %vm5913_vm3, %v5217_v19 }
 0xf48   :  { %4910 = vmatmul.mubr.msk.f32.vlgmr.msra.gmra.mrb[28].mxu1 %vm414_vm2, %v2050_v56 }
 0xf49   :  { %5222 = vmatpush3.bf16.xpose.msk.msra.mxu1 %vm5913_vm3, %v5217_v19  ;;  %4923 = vmatprep.mubr.msk.f32.mxu1 %vm414_vm2, %v2826_v22 }
 0xf50   :  { %4924 = vmatmul.mubr.msk.f32.vlgmr.msra.gmra.mrb[30].mxu1 %vm414_vm2, %v2828_v23 }
0x100a   :  { %v4876_v51 = vpop.f32.mrb[24].mxu1 }
0x100b   :  { %v2244_v26 = vpop.f32.mrb[25].mxu1 }
0x100e   :  { %v4890_v27 = vpop.f32.mrb[26].mxu1 }
0x100f   :  { %v2448_v31 = vpop.f32.mrb[27].mxu1 }
0x1010   :  { %4895 = vmatprep.mubr.msk.f32.mxu0 %vm414_vm2, %v2448_v31 }
0x1011   :  { %4896 = vmatmul.mubr.msk.f32.vlgmr.msra.gmra.mrb[20].mxu0 %vm414_vm2, %v4890_v27 }
0x1012   :  { %4902 = vmatprep.mubr.msk.f32.mxu0 %vm414_vm2, %v2244_v26  ;;  %5206 = vmatpush3.bf16.msra.mxu0 %v6199_v37 }
0x1019   :  { %4903 = vmatmul.mubr.msk.f32.vlgmr.msra.gmra.mrb[20].mxu0 %vm414_vm2, %v4876_v51 }
0x101b   :  { %v4911_v32 = vpop.f32.mrb[28].mxu1 }
0x101c   :  { %v2713_v33 = vmul.f32 0.25, %v4911_v32  ;;  %v2703_v34 = vpop.f32.mrb[29].mxu1 }
0x101d   :  { %v2712_v35 = vmul.f32 0.25, %v2703_v34 }
0x101e   :  { %v2717_v36 = vsel %vm414_vm2, %v2713_v33, -inf }
0x101f   :  { %2718 = vmax.xlane.f32.xlu1 %v2717_v36  ;;  %v2714_v30 = vsel %vm414_vm2, %v2712_v35, -inf }
0x1020   :  { %2715 = vmax.xlane.f32.xlu0 %v2714_v30 }
0x1023   :  { %v4925_v39 = vpop.f32.mrb[30].mxu1 }
0x1024   :  { %v2907_v40 = vpop.f32.mrb[31].mxu1  ;;  %v2917_v43 = vmul.f32 0.25, %v4925_v39 }
0x1025   :  { %v2916_v42 = vmul.f32 0.25, %v2907_v40 }
0x1026   :  { %v2921_v45 = vsel %vm414_vm2, %v2917_v43, -inf }
0x1027   :  { %v2918_v44 = vsel %vm414_vm2, %v2916_v42, -inf }
0x1028   :  { %2919 = vmax.xlane.f32.xlu0 %v2918_v44 }
0x102c   :  { %2922 = vmax.xlane.f32.xlu0 %v2921_v45 }
0x10ac   :  { %v2719_v47 = vpop.xlane.xlu1 %2718 }
0x10ad   :  { %v2721_v48 = vsub.f32 %v2713_v33, %v2719_v47  ;;  %v2716_v50 = vpop.xlane.xlu0 %2715 }
0x10ae   :  { %v2720_v38 = vsub.f32 %v2712_v35, %v2716_v50 }
0x10af   :  { %v2724_v52 = vmul.f32 1.442695, %v2721_v48 }
0x10b0   :  { %v2722_v54 = vmul.f32 1.442695, %v2720_v38 }
0x10b1   :  { %5509 = vpow2.f32 %v2724_v52 }
0x10b2   :  { %5511 = vpow2.f32 %v2722_v54 }
0x10b5   :  { %v2920_v56 = vpop.xlane.xlu0 %2919 }
0x10b6   :  { %v2924_v55 = vsub.f32 %v2916_v42, %v2920_v56 }
0x10b8   :  { %v2926_v57 = vmul.f32 1.442695, %v2924_v55 }
0x10b9   :  { %v2923_v58 = vpop.xlane.xlu0 %2922 }
0x10ba   :  { %5513 = vpow2.f32 %v2926_v57  ;;  %v2925_v59 = vsub.f32 %v2917_v43, %v2923_v58 }
0x10bb   :  { %v5510_v60 = vpop.eup %5509 }
0x10bc   :  { %v5512_v61 = vpop.eup %5511  ;;  %v2928_v62 = vmul.f32 1.442695, %v2925_v59  ;;  %v2729_v53 = vsel %vm414_vm2, %v5510_v60, 0.0 }
0x10bd   :  { %2730 = vadd.xlane.f32.xlu0 %v2729_v53  ;;  %v2726_v41 = vsel %vm414_vm2, %v5512_v61, 0.0 }
0x10be   :  { %5515 = vpow2.f32 %v2928_v62  ;;  %2727 = vadd.xlane.f32.xlu1 %v2726_v41  ;;  %v3286_v62 = vld [vmem:[%s6414_s24] sm:$0xff]  ;;  %v3289_v41 = vld [vmem:[%s6414_s24 + $0x18] sm:$0xff] }
0x10c4   :  { %v5514_v63 = vpop.eup %5513 }
0x10c5   :  { %v2930_v46 = vsel %vm414_vm2, %v5514_v63, 0.0 }
0x10c6   :  { %2931 = vadd.xlane.f32.xlu1 %v2930_v46 }
0x10c8   :  { %v5516_v0 = vpop.eup %5515 }
0x10c9   :  { %v2933_v5 = vsel %vm414_vm2, %v5516_v0, 0.0 }
0x10ca   :  { %2934 = vadd.xlane.f32.xlu0 %v2933_v5 }
0x10d7   :  { %5436 = vrot.lane.b32.xlu1 %v6168_v28, %s5626_s17 }
0x10e0   :  { %5441 = vrot.lane.b32.xlu0 %v6168_v28, %s5627_s21 }
0x10ec   :  { %v4904_v1 = vpop.f32.mrb[20].mxu0 }
0x10ed   :  { %2622 = vst.msk [vmem:[#allocation2 + $0x8] sm:$0xff] %vm310_vm1, %v4904_v1  ;;  %v2612_v29 = vpop.f32.mrb[21].mxu0 }
0x10ee   :  { %2621 = vst.msk [vmem:[#allocation2] sm:$0xff] %vm310_vm1, %v2612_v29 }
0x10f4   :  { %v3194_v4 = vld [vmem:[#allocation2 + $0x8] sm:$0xff] }
0x10f5   :  { %v3193_v6 = vld [vmem:[#allocation2] sm:$0xff]  ;;  %v3205_v8 = vadd.f32 %v6222_v3, %v3194_v4 }
0x10f6   :  { %v3204_v7 = vadd.f32 %v6222_v3, %v3193_v6 }
0x10f7   :  { %v3209_v28 = vadd.f32 %v3205_v8, %v6100_v21 }
0x10f8   :  { %v3208_v9 = vadd.f32 %v3204_v7, %v6097_v20 }
0x10f9   :  { %v3215_v14 = vsel %vm310_vm1, %v3209_v28, 0.0 }
0x10fa   :  { %v3212_v10 = vsel %vm310_vm1, %v3208_v9, 0.0 }
0x10fb   :  { %3213 = vadd.xlane.f32.xlu1 %v3212_v10 }
0x10ff   :  { %3216 = vadd.xlane.f32.xlu0 %v3215_v14 }
0x114a   :  { %v2731_v16 = vpop.xlane.xlu0 %2730 }
0x114b   :  { %v2728_v15 = vpop.xlane.xlu1 %2727 }
0x114c   :  { %5517 = vrcp.f32 %v2728_v15 }
0x114d   :  { %5519 = vrcp.f32 %v2731_v16 }
0x1153   :  { %v2932_v13 = vpop.xlane.xlu1 %2931 }
0x1154   :  { %5521 = vrcp.f32 %v2932_v13 }
0x1156   :  { %v5518_v17 = vpop.eup %5517 }
0x1157   :  { %v5437_v19 = vpop.permute.xlu1 %5436  ;;  %v2935_v22 = vpop.xlane.xlu0 %2934  ;;  %v2734_v23 = vmul.f32 %v5518_v17, %v5512_v61  ;;  %v4437_v17 = vld [vmem:[%s6415_s30] ss:$0 sm:$0xff] }
0x1158   :  { %v5439_v18 = vunpack.i.h.bf16 %v5437_v19  ;;  %v5438_v20 = vunpack.i.l.bf16 %v5437_v19  ;;  %5523 = vrcp.f32 %v2935_v22  ;;  %v5520_v24 = vpop.eup %5519 }
0x1159   :  { %4916 = vmatprep.mubr.msk.f32.mxu0 %vm414_vm2, %v2734_v23  ;;  %v2735_v27 = vmul.f32 %v5520_v24, %v5510_v60 }
0x115a   :  { %v5213_v21 = vpack.c.bf16 %v5439_v18, %v5438_v20  ;;  %v4438_v18 = vld [vmem:[%s6416_s6] ss:$0 sm:$0xff] }
0x115b   :  { %v5442_v25 = vpop.permute.xlu0 %5441 }
0x115c   :  { %v5444_v49 = vunpack.i.h.bf16 %v5442_v25  ;;  %v5443_v51 = vunpack.i.l.bf16 %v5442_v25  ;;  %5214 = vmatprep.subr.bf16.mxu0 %v5213_v21 }
0x115d   :  { %5216 = vmatpush3.bf16.msra.mxu0 %v5213_v21 }
0x115e   :  { %v5522_v26 = vpop.eup %5521  ;;  %v5223_v31 = vpack.c.bf16 %v5444_v49, %v5443_v51  ;;  %v3398_v49 = vld [vmem:[%s6417_s12] sm:$0xff]  ;;  %v3399_v51 = vld [vmem:[%s6417_s12 + $0x8] sm:$0xff] }
0x115f   :  { %v2938_v32 = vmul.f32 %v5522_v26, %v5514_v63  ;;  %v3400_v26 = vld [vmem:[%s6417_s12 + $0x10] sm:$0xff] }
0x1160   :  { %4917 = vmatmul.mubr.msk.f32.vlgmr.msra.gmra.mrb[22].mxu0 %vm414_vm2, %v2735_v27  ;;  %5224 = vmatprep.subr.bf16.mxu0 %v5223_v31  ;;  %v5243_v27 = vpack.c.bf16 %v3399_v51, %v3398_v49 }
0x1161   :  { %5226 = vmatpush3.bf16.msra.mxu0 %v5223_v31  ;;  %4930 = vmatprep.mubr.msk.f32.mxu0 %vm414_vm2, %v2938_v32  ;;  %v3401_v31 = vld [vmem:[%s6417_s12 + $0x18] sm:$0xff] }
0x1162   :  { %v5524_v33 = vpop.eup %5523  ;;  %5228 = vmatprep.subr.bf16.mxu0 %v6193_v2  ;;  %v5247_v32 = vpack.c.bf16 %v3401_v31, %v3400_v26  ;;  %v3588_v26 = vld [vmem:[%s6420_s18] sm:$0xff] }
0x1163   :  { %v2939_v34 = vmul.f32 %v5524_v33, %v5516_v0  ;;  %v3402_v33 = vld [vmem:[%s6417_s12 + $0x20] sm:$0xff] }
0x1165   :  { %4931 = vmatmul.mubr.msk.f32.vlgmr.msra.gmra.mrb[24].mxu0 %vm414_vm2, %v2939_v34  ;;  %v3403_v34 = vld [vmem:[%s6417_s12 + $0x28] sm:$0xff] }
0x1166   :  { %5230 = vmatpush3.bf16.msra.mxu0 %v6193_v2 }
0x1167   :  { %5232 = vmatprep.subr.bf16.mxu0 %v6199_v37 }
0x1188   :  { %v3214_v43 = vpop.xlane.xlu1 %3213 }
0x1189   :  { %v3224_v45 = vmul.f32 0.03125, %v3214_v43 }
0x118b   :  { %v3228_v38 = vsub.f32 %v3208_v9, %v3224_v45 }
0x118c   :  { %v3217_v42 = vpop.xlane.xlu0 %3216 }
0x118d   :  { %v3225_v44 = vmul.f32 0.03125, %v3217_v42  ;;  %v3232_v59 = vmul.f32 %v3228_v38, %v3228_v38 }
0x118f   :  { %v3229_v48 = vsub.f32 %v3209_v28, %v3225_v44  ;;  %v3236_v61 = vsel %vm310_vm1, %v3232_v59, 0.0 }
0x1191   :  { %v3233_v57 = vmul.f32 %v3229_v48, %v3229_v48 }
0x1193   :  { %v3239_v60 = vsel %vm310_vm1, %v3233_v57, 0.0 }
0x1233   :  { %v4918_v35 = vpop.f32.mrb[22].mxu0 }
0x1234   :  { %v2814_v36 = vpop.f32.mrb[23].mxu0 }
0x1238   :  { %v4932_v30 = vpop.f32.mrb[24].mxu0 }
0x1239   :  { %v3018_v39 = vpop.f32.mrb[25].mxu0 }
0x123a   :  { %4937 = vmatprep.mubr.msk.f32.mxu0 %vm414_vm2, %v3018_v39 }
0x123b   :  { %4938 = vmatmul.mubr.msk.f32.vlgmr.msra.gmra.mrb[26].mxu0 %vm414_vm2, %v4932_v30  ;;  %v3405_v30 = vld [vmem:[%s6417_s12 + $0x38] sm:$0xff] }
0x123c   :  { %5234 = vmatpush3.bf16.msra.mxu0 %v6199_v37  ;;  %4944 = vmatprep.mubr.msk.f32.mxu0 %vm414_vm2, %v2814_v36  ;;  %v3404_v36 = vld [vmem:[%s6417_s12 + $0x30] sm:$0xff] }
0x123d   :  { %5244 = vmatprep.subr.bf16.mxu0 %v5243_v27  ;;  %v5255_v39 = vpack.c.bf16 %v3405_v30, %v3404_v36 }
0x1243   :  { %4945 = vmatmul.mubr.msk.f32.vlgmr.msra.gmra.mrb[26].mxu0 %vm414_vm2, %v4918_v35  ;;  %v5251_v35 = vpack.c.bf16 %v3403_v34, %v3402_v33  ;;  %v3591_v33 = vld [vmem:[%s6420_s18 + $0x18] sm:$0xff] }
0x1244   :  { %5246 = vmatpush3.bf16.msra.mxu0 %v5243_v27  ;;  %v3589_v27 = vld [vmem:[%s6420_s18 + $0x8] sm:$0xff] }
0x1245   :  { %5248 = vmatprep.subr.bf16.mxu0 %v5247_v32  ;;  %v5259_v31 = vpack.c.bf16 %v3589_v27, %v3588_v26  ;;  %v3812_v27 = vld [vmem:[%s6426_s2] sm:$0xff] }
0x1248   :  { %5250 = vmatpush3.bf16.msra.mxu0 %v5247_v32  ;;  %v3590_v32 = vld [vmem:[%s6420_s18 + $0x10] sm:$0xff] }
0x1249   :  { %5252 = vmatprep.subr.bf16.mxu0 %v5251_v35  ;;  %v5263_v34 = vpack.c.bf16 %v3591_v33, %v3590_v32  ;;  %v3814_v33 = vld [vmem:[%s6426_s2 + $0x10] sm:$0xff] }
0x124c   :  { %5254 = vmatpush3.bf16.msra.mxu0 %v5251_v35 }
0x124d   :  { %5256 = vmatprep.subr.bf16.mxu0 %v5255_v39 }
0x1250   :  { %5258 = vmatpush3.bf16.msra.mxu0 %v5255_v39 }
0x1316   :  { %v4946_v40 = vpop.f32.mrb[26].mxu0 }
0x1317   :  { %3192 = vst.msk [vmem:[#allocation2 + $0x18] sm:$0xff] %vm310_vm1, %v4946_v40  ;;  %v3182_v2 = vpop.f32.mrb[27].mxu0 }
0x1318   :  { %3191 = vst.msk [vmem:[#allocation2 + $0x10] sm:$0xff] %vm310_vm1, %v3182_v2 }
0x131e   :  { %v3196_v47 = vld [vmem:[#allocation2 + $0x18] sm:$0xff] }
0x131f   :  { %v3207_v50 = vadd.f32 %v6222_v3, %v3196_v47  ;;  %v3195_v37 = vld [vmem:[#allocation2 + $0x10] sm:$0xff] }
0x1320   :  { %v3206_v52 = vadd.f32 %v6222_v3, %v3195_v37 }
0x1321   :  { %v3211_v54 = vadd.f32 %v3207_v50, %v6145_v12  ;;  %v3287_v12 = vld [vmem:[%s6414_s24 + $0x8] sm:$0xff] }
0x1322   :  { %v3210_v56 = vadd.f32 %v3206_v52, %v6142_v11  ;;  %v5235_v53 = vpack.c.bf16 %v3287_v12, %v3286_v62  ;;  %v3288_v11 = vld [vmem:[%s6414_s24 + $0x10] sm:$0xff] }
0x1323   :  { %v3221_v55 = vsel %vm310_vm1, %v3211_v54, 0.0  ;;  %v5239_v63 = vpack.c.bf16 %v3289_v41, %v3288_v11 }
0x1324   :  { %3222 = vadd.xlane.f32.xlu0 %v3221_v55  ;;  %v3218_v58 = vsel %vm310_vm1, %v3210_v56, 0.0  ;;  %5236 = vmatprep.subr.bf16.mxu1 %v5235_v53  ;;  %v4439_v55 = vld [vmem:[%s6418_s15] ss:$0 sm:$0xff] }
0x1325   :  { %3219 = vadd.xlane.f32.xlu1 %v3218_v58  ;;  %5238 = vmatpush3.bf16.msra.mxu1 %v5235_v53 }
0x1326   :  { %5240 = vmatprep.subr.bf16.mxu1 %v5239_v63 }
0x1328   :  { %3240 = vadd.xlane.f32.xlu0 %v3239_v60 }
0x1329   :  { %3237 = vadd.xlane.f32.xlu1 %v3236_v61  ;;  %5242 = vmatpush3.bf16.msra.mxu1 %v5239_v63 }
0x132a   :  { %5260 = vmatprep.subr.bf16.mxu1 %v5259_v31 }
0x13b1   :  { %v3223_v46 = vpop.xlane.xlu0 %3222 }
0x13b2   :  { %v3227_v0 = vmul.f32 0.03125, %v3223_v46  ;;  %v3220_v5 = vpop.xlane.xlu1 %3219 }
0x13b3   :  { %v3226_v1 = vmul.f32 0.03125, %v3220_v5 }
0x13b4   :  { %v3231_v29 = vsub.f32 %v3211_v54, %v3227_v0  ;;  %v4444_v0 = vld [vmem:[%s6419_s16] ss:$0 sm:$0xff] }
0x13b5   :  { %v3230_v3 = vsub.f32 %v3210_v56, %v3226_v1  ;;  %v3241_v4 = vpop.xlane.xlu0 %3240 }
0x13b6   :  { %v3249_v6 = vmul.f32 0.03125, %v3241_v4  ;;  %v3238_v7 = vpop.xlane.xlu1 %3237  ;;  %v3235_v8 = vmul.f32 %v3231_v29, %v3231_v29 }
0x13b7   :  { %v3248_v9 = vmul.f32 0.03125, %v3238_v7  ;;  %v3234_v10 = vmul.f32 %v3230_v3, %v3230_v3 }
0x13b8   :  { %v3253_v28 = vadd.f32 1e-05, %v3249_v6  ;;  %v3245_v14 = vsel %vm310_vm1, %v3235_v8, 0.0 }
0x13b9   :  { %v3252_v15 = vadd.f32 1e-05, %v3248_v9  ;;  %3246 = vadd.xlane.f32.xlu0 %v3245_v14  ;;  %v3242_v16 = vsel %vm310_vm1, %v3234_v10, 0.0 }
0x13ba   :  { %5525 = vrsqrt.f32 %v3253_v28  ;;  %3243 = vadd.xlane.f32.xlu1 %v3242_v16 }
0x13bb   :  { %5527 = vrsqrt.f32 %v3252_v15 }
0x13c4   :  { %v5526_v13 = vpop.eup %5525 }
0x13c5   :  { %v5528_v19 = vpop.eup %5527  ;;  %v3261_v22 = vmul.f32 %v5526_v13, %v3229_v48 }
0x13c6   :  { %v3260_v23 = vmul.f32 %v5528_v19, %v3228_v38 }
0x13c7   :  { %v3272_v20 = vmul.f32 %v4437_v17, %v3261_v22 }
0x13c8   :  { %v3271_v21 = vmul.f32 %v4437_v17, %v3260_v23 }
0x13c9   :  { %v6262_v25 = vadd.f32 %v4438_v18, %v3272_v20 }
0x13ca   :  { %v6260_v24 = vadd.f32 %v4438_v18, %v3271_v21 }
0x13cc   :  { %4955 = vmatprep.mubr.msk.f32.mxu1 %vm310_vm1, %v6260_v24 }
0x13cd   :  { %4956 = vmatmul.mubr.msk.f32.vlgmr.msra.gmra.mrb[32].mxu1 %vm310_vm1, %v6262_v25 }
0x13ce   :  { %5262 = vmatpush3.bf16.msra.mxu1 %v5259_v31  ;;  %v3813_v31 = vld [vmem:[%s6426_s2 + $0x8] sm:$0xff] }
0x13cf   :  { %5264 = vmatprep.subr.bf16.mxu1 %v5263_v34  ;;  %v5275_v32 = vpack.c.bf16 %v3813_v31, %v3812_v27  ;;  %v3944_v27 = vld [vmem:[%s6431_s5] sm:$0xff] }
0x13d1   :  { %5276 = vmatprep.subr.bf16.mxu0 %v5275_v32 }
0x13d2   :  { %5266 = vmatpush3.bf16.msra.mxu1 %v5263_v34  ;;  %v3815_v34 = vld [vmem:[%s6426_s2 + $0x18] sm:$0xff] }
0x1446   :  { %v3247_v40 = vpop.xlane.xlu0 %3246 }
0x1447   :  { %v3251_v2 = vmul.f32 0.03125, %v3247_v40  ;;  %v3244_v42 = vpop.xlane.xlu1 %3243 }
0x1448   :  { %v3250_v43 = vmul.f32 0.03125, %v3244_v42 }
0x1449   :  { %v3255_v44 = vadd.f32 1e-05, %v3251_v2 }
0x144a   :  { %v3254_v45 = vadd.f32 1e-05, %v3250_v43 }
0x144b   :  { %5529 = vrsqrt.f32 %v3255_v44 }
0x144c   :  { %5531 = vrsqrt.f32 %v3254_v45 }
0x1455   :  { %v5530_v47 = vpop.eup %5529 }
0x1456   :  { %v5532_v48 = vpop.eup %5531  ;;  %v3263_v50 = vmul.f32 %v5530_v47, %v3231_v29 }
0x1457   :  { %v3262_v37 = vmul.f32 %v5532_v48, %v3230_v3 }
0x1458   :  { %v3274_v38 = vmul.f32 %v4437_v17, %v3263_v50 }
0x1459   :  { %v3273_v52 = vmul.f32 %v4437_v17, %v3262_v37 }
0x145a   :  { %v3285_v56 = vadd.f32 %v4438_v18, %v3274_v38 }
0x145b   :  { %v3284_v54 = vadd.f32 %v4438_v18, %v3273_v52 }
0x145d   :  { %4958 = vmatprep.mubr.msk.f32.mxu1 %vm310_vm1, %v3284_v54 }
0x145e   :  { %4959 = vmatmul.mubr.msk.f32.gmra.mrb[34].mxu1 %vm310_vm1, %v3285_v56 }
0x14a0   :  { %v4957_v57 = vpop.f32.mrb[32].mxu1 }
0x14a1   :  { %v3381_v58 = vadd.f32 %v4957_v57, %v4439_v55  ;;  %v3375_v59 = vpop.f32.mrb[33].mxu1 }
0x14a2   :  { %v3376_v60 = vadd.f32 %v4439_v55, %v3375_v59 }
0x14a3   :  { %v3395_v62 = vmax.f32 %v3381_v58, 0.0 }
0x14a4   :  { %v3394_v61 = vmax.f32 %v3376_v60, 0.0  ;;  %v4450_v60 = vld [vmem:[%s6422_s23] ss:$0 sm:$0xff] }
0x14a6   :  { %4977 = vmatprep.mubr.msk.f32.mxu0 %vm193_vm0, %v3394_v61 }
0x14a7   :  { %4978 = vmatmul.mubr.msk.f32.vlgmr.msra.gmra.mrb[28].mxu0 %vm193_vm0, %v3395_v62 }
0x14a8   :  { %5278 = vmatpush3.bf16.msra.mxu0 %v5275_v32 }
0x1531   :  { %v4960_v12 = vpop.f32.mrb[34].mxu1 }
0x1532   :  { %v3391_v53 = vadd.f32 %v4960_v12, %v4439_v55  ;;  %v3385_v11 = vpop.f32.mrb[35].mxu1 }
0x1533   :  { %v3386_v41 = vadd.f32 %v4439_v55, %v3385_v11  ;;  %v3701_v11 = vld [vmem:[%s6423_s26 + $0x8] sm:$0xff] }
0x1534   :  { %v3397_v46 = vmax.f32 %v3391_v53, 0.0  ;;  %v3700_v53 = vld [vmem:[%s6423_s26] sm:$0xff] }
0x1535   :  { %v3396_v63 = vmax.f32 %v3386_v41, 0.0  ;;  %v5267_v41 = vpack.c.bf16 %v3701_v11, %v3700_v53 }
0x1537   :  { %4980 = vmatprep.mubr.msk.f32.mxu0 %vm193_vm0, %v3396_v63  ;;  %5268 = vmatprep.subr.bf16.mxu1 %v5267_v41  ;;  %v3702_v63 = vld [vmem:[%s6423_s26 + $0x10] sm:$0xff] }
0x1538   :  { %4981 = vmatmul.mubr.msk.f32.gmra.mrb[30].mxu0 %vm193_vm0, %v3397_v46  ;;  %v3703_v46 = vld [vmem:[%s6423_s26 + $0x18] sm:$0xff] }
0x157a   :  { %v4979_v5 = vpop.f32.mrb[28].mxu0 }
0x157b   :  { %v3497_v1 = vadd.f32 %v4979_v5, %v4444_v0  ;;  %v3491_v29 = vpop.f32.mrb[29].mxu0 }
0x157c   :  { %v3492_v3 = vadd.f32 %v4444_v0, %v3491_v29 }
0x157d   :  { %v3511_v4 = vadd.f32 %v3497_v1, %v6262_v25 }
0x157e   :  { %v3510_v6 = vadd.f32 %v3492_v3, %v6260_v24 }
0x157f   :  { %v3517_v7 = vsel %vm310_vm1, %v3511_v4, 0.0 }
0x1580   :  { %3518 = vadd.xlane.f32.xlu0 %v3517_v7  ;;  %v3514_v8 = vsel %vm310_vm1, %v3510_v6, 0.0 }
0x1581   :  { %3515 = vadd.xlane.f32.xlu1 %v3514_v8 }
0x160b   :  { %v4982_v9 = vpop.f32.mrb[30].mxu0 }
0x160c   :  { %v3507_v10 = vadd.f32 %v4982_v9, %v4444_v0  ;;  %v3501_v28 = vpop.f32.mrb[31].mxu0 }
0x160d   :  { %v3502_v14 = vadd.f32 %v4444_v0, %v3501_v28  ;;  %v3519_v15 = vpop.xlane.xlu0 %3518  ;;  %v5271_v0 = vpack.c.bf16 %v3703_v46, %v3702_v63 }
0x160e   :  { %v3527_v16 = vmul.f32 0.03125, %v3519_v15  ;;  %v3516_v13 = vpop.xlane.xlu1 %3515  ;;  %v3513_v17 = vadd.f32 %v3507_v10, %v3285_v56  ;;  %v4449_v56 = vld [vmem:[%s6421_s22] ss:$0 sm:$0xff] }
0x160f   :  { %v3526_v19 = vmul.f32 0.03125, %v3516_v13  ;;  %v3512_v22 = vadd.f32 %v3502_v14, %v3284_v54  ;;  %v4451_v13 = vld [vmem:[%s6424_s28] ss:$0 sm:$0xff] }
0x1610   :  { %v3531_v23 = vsub.f32 %v3511_v4, %v3527_v16  ;;  %v3523_v18 = vsel %vm310_vm1, %v3513_v17, 0.0 }
0x1611   :  { %v3530_v20 = vsub.f32 %v3510_v6, %v3526_v19  ;;  %3524 = vadd.xlane.f32.xlu0 %v3523_v18  ;;  %v3520_v21 = vsel %vm310_vm1, %v3512_v22, 0.0 }
0x1612   :  { %3521 = vadd.xlane.f32.xlu1 %v3520_v21  ;;  %v3535_v24 = vmul.f32 %v3531_v23, %v3531_v23  ;;  %v3956_v21 = vld [vmem:[%s6425_s1] sm:$0xff] }
0x1613   :  { %v3534_v25 = vmul.f32 %v3530_v20, %v3530_v20 }
0x1614   :  { %v3541_v49 = vsel %vm310_vm1, %v3535_v24, 0.0  ;;  %v3957_v24 = vld [vmem:[%s6425_s1 + $0x8] sm:$0xff] }
0x1615   :  { %3542 = vadd.xlane.f32.xlu0 %v3541_v49  ;;  %v3538_v51 = vsel %vm310_vm1, %v3534_v25, 0.0  ;;  %v5283_v25 = vpack.c.bf16 %v3957_v24, %v3956_v21  ;;  %v3958_v49 = vld [vmem:[%s6425_s1 + $0x10] sm:$0xff] }
0x1616   :  { %3539 = vadd.xlane.f32.xlu1 %v3538_v51  ;;  %v3959_v51 = vld [vmem:[%s6425_s1 + $0x18] sm:$0xff] }
0x1617   :  { %v5287_v26 = vpack.c.bf16 %v3959_v51, %v3958_v49  ;;  %v4171_v49 = vld [vmem:[%s5834_s20 + $0x18] sm:$0xff] }
0x169e   :  { %v3525_v35 = vpop.xlane.xlu0 %3524 }
0x169f   :  { %v3529_v36 = vmul.f32 0.03125, %v3525_v35  ;;  %v3522_v30 = vpop.xlane.xlu1 %3521  ;;  %v5279_v35 = vpack.c.bf16 %v3815_v34, %v3814_v33 }
0x16a0   :  { %v3528_v39 = vmul.f32 0.03125, %v3522_v30 }
0x16a1   :  { %v3533_v40 = vsub.f32 %v3513_v17, %v3529_v36  ;;  %5280 = vmatprep.subr.bf16.mxu0 %v5279_v35 }
0x16a2   :  { %v3532_v2 = vsub.f32 %v3512_v22, %v3528_v39  ;;  %v3543_v42 = vpop.xlane.xlu0 %3542  ;;  %5282 = vmatpush3.bf16.msra.mxu0 %v5279_v35 }
0x16a3   :  { %v3551_v43 = vmul.f32 0.03125, %v3543_v42  ;;  %v3540_v44 = vpop.xlane.xlu1 %3539  ;;  %v3537_v45 = vmul.f32 %v3533_v40, %v3533_v40 }
0x16a4   :  { %v3550_v47 = vmul.f32 0.03125, %v3540_v44  ;;  %v3536_v48 = vmul.f32 %v3532_v2, %v3532_v2 }
0x16a5   :  { %v3555_v50 = vadd.f32 1e-05, %v3551_v43  ;;  %v3547_v37 = vsel %vm310_vm1, %v3537_v45, 0.0  ;;  %v4456_v43 = vld [vmem:[%s6427_s7] ss:$0 sm:$0xff] }
0x16a6   :  { %v3554_v38 = vadd.f32 1e-05, %v3550_v47  ;;  %3548 = vadd.xlane.f32.xlu0 %v3547_v37  ;;  %v3544_v52 = vsel %vm310_vm1, %v3536_v48, 0.0 }
0x16a7   :  { %5533 = vrsqrt.f32 %v3555_v50  ;;  %3545 = vadd.xlane.f32.xlu1 %v3544_v52  ;;  %v4057_v52 = vld [vmem:[%s6428_s10 + $0x8] sm:$0xff] }
0x16a8   :  { %5535 = vrsqrt.f32 %v3554_v38  ;;  %v4056_v38 = vld [vmem:[%s6428_s10] sm:$0xff] }
0x16b1   :  { %v5534_v54 = vpop.eup %5533 }
0x16b2   :  { %v5536_v55 = vpop.eup %5535  ;;  %v3563_v57 = vmul.f32 %v5534_v54, %v3531_v23  ;;  %v5291_v54 = vpack.c.bf16 %v4057_v52, %v4056_v38 }
0x16b3   :  { %v3562_v58 = vmul.f32 %v5536_v55, %v3530_v20  ;;  %v4059_v55 = vld [vmem:[%s6428_s10 + $0x18] sm:$0xff] }
0x16b4   :  { %v3574_v59 = vmul.f32 %v4449_v56, %v3563_v57  ;;  %5292 = vmatprep.subr.bf16.mxu0 %v5291_v54 }
0x16b5   :  { %v3573_v61 = vmul.f32 %v4449_v56, %v3562_v58 }
0x16b6   :  { %v6302_v12 = vadd.f32 %v4450_v60, %v3574_v59 }
0x16b7   :  { %v6300_v62 = vadd.f32 %v4450_v60, %v3573_v61 }
0x16b9   :  { %4991 = vmatprep.mubr.msk.f32.mxu1 %vm310_vm1, %v6300_v62 }
0x16ba   :  { %4992 = vmatmul.mubr.msk.f32.vlgmr.msra.gmra.mrb[36].mxu1 %vm310_vm1, %v6302_v12 }
0x16bb   :  { %5270 = vmatpush3.bf16.msra.mxu1 %v5267_v41 }
0x16bc   :  { %5272 = vmatprep.subr.bf16.mxu1 %v5271_v0 }
0x16bf   :  { %5274 = vmatpush3.bf16.msra.mxu1 %v5271_v0 }
0x16c0   :  { %5284 = vmatprep.subr.bf16.mxu1 %v5283_v25 }
0x1733   :  { %v3549_v5 = vpop.xlane.xlu0 %3548 }
0x1734   :  { %v3553_v1 = vmul.f32 0.03125, %v3549_v5  ;;  %v3546_v29 = vpop.xlane.xlu1 %3545 }
0x1735   :  { %v3552_v3 = vmul.f32 0.03125, %v3546_v29 }
0x1736   :  { %v3557_v4 = vadd.f32 1e-05, %v3553_v1 }
0x1737   :  { %v3556_v6 = vadd.f32 1e-05, %v3552_v3 }
0x1738   :  { %5537 = vrsqrt.f32 %v3557_v4 }
0x1739   :  { %5539 = vrsqrt.f32 %v3556_v6 }
0x1742   :  { %v5538_v7 = vpop.eup %5537 }
0x1743   :  { %v5540_v8 = vpop.eup %5539  ;;  %v3565_v9 = vmul.f32 %v5538_v7, %v3533_v40 }
0x1744   :  { %v3564_v10 = vmul.f32 %v5540_v8, %v3532_v2  ;;  %v4461_v8 = vld [vmem:[%s6430_s0] ss:$0 sm:$0xff] }
0x1745   :  { %v3576_v28 = vmul.f32 %v4449_v56, %v3565_v9 }
0x1746   :  { %v3575_v14 = vmul.f32 %v4449_v56, %v3564_v10  ;;  %v4058_v56 = vld [vmem:[%s6428_s10 + $0x10] sm:$0xff] }
0x1747   :  { %v3587_v16 = vadd.f32 %v4450_v60, %v3576_v28  ;;  %v5295_v57 = vpack.c.bf16 %v4059_v55, %v4058_v56 }
0x1748   :  { %v3586_v15 = vadd.f32 %v4450_v60, %v3575_v14 }
0x174a   :  { %4994 = vmatprep.mubr.msk.f32.mxu1 %vm310_vm1, %v3586_v15 }
0x174b   :  { %4995 = vmatmul.mubr.msk.f32.gmra.mrb[38].mxu1 %vm310_vm1, %v3587_v16 }
0x178d   :  { %v4993_v17 = vpop.f32.mrb[36].mxu1 }
0x178e   :  { %v3683_v19 = vadd.f32 %v4993_v17, %v4451_v13  ;;  %v3677_v22 = vpop.f32.mrb[37].mxu1 }
0x178f   :  { %v3678_v23 = vadd.f32 %v4451_v13, %v3677_v22  ;;  %v4168_v22 = vld [vmem:[%s5834_s20] sm:$0xff] }
0x1790   :  { %v3697_v20 = vmax.f32 %v3683_v19, 0.0 }
0x1791   :  { %v3696_v18 = vmax.f32 %v3678_v23, 0.0  ;;  %v4169_v23 = vld [vmem:[%s5834_s20 + $0x8] sm:$0xff] }
0x1792   :  { %v5299_v21 = vpack.c.bf16 %v4169_v23, %v4168_v22 }
0x1793   :  { %5005 = vmatprep.mubr.msk.f32.mxu1 %vm310_vm1, %v3696_v18 }
0x1794   :  { %5006 = vmatmul.mubr.msk.f32.vlgmr.msra.gmra.mrb[40].mxu1 %vm310_vm1, %v3697_v20 }
0x1795   :  { %5286 = vmatpush3.bf16.msra.mxu1 %v5283_v25  ;;  %v4170_v25 = vld [vmem:[%s5834_s20 + $0x10] sm:$0xff]  ;;  %s5628_s20 = smov [#allocation3]  }
0x1796   :  { %5288 = vmatprep.subr.bf16.mxu1 %v5287_v26  ;;  %v5303_v51 = vpack.c.bf16 %v4171_v49, %v4170_v25  ;;  %s4287_s17 = sshll.u32 %s5628_s20, 4  ;;  %s4288_s17 = int_to_ptr.vmem [resolvable:$true] %s4287_s17 }
0x1797   :  { %s5557_s21 = scalar_lea.vmem %s4288_s17, 512  ;;  %p5562_p1 = scmp.lt.s32.totalorder %s4288_s17, %s4288_s17 }
0x1798   :  { %p5558_p0 = scmp.ne.s32.totalorder %s4288_s17, %s5557_s21  ;;  %p5563_p2 = scmp.lt.s32.totalorder %s5557_s21, %s5557_s21 }
0x1799   :  { %5290 = vmatpush3.bf16.msra.mxu1 %v5287_v26  ;;  %v3945_v26 = vld [vmem:[%s6431_s5 + $0x8] sm:$0xff] }
0x179a   :  { %5300 = vmatprep.subr.bf16.mxu1 %v5299_v21  ;;  %p5564_p3 = por %p5563_p2, %p5562_p1 }
0x179c   :  { %p5565_p4 = pnand %p5564_p3, %p5558_p0 }
0x181e   :  { %v4996_v36 = vpop.f32.mrb[38].mxu1 }
0x181f   :  { %v3693_v30 = vadd.f32 %v4996_v36, %v4451_v13  ;;  %v3687_v39 = vpop.f32.mrb[39].mxu1 }
0x1820   :  { %v3688_v40 = vadd.f32 %v4451_v13, %v3687_v39 }
0x1821   :  { %v3699_v42 = vmax.f32 %v3693_v30, 0.0 }
0x1822   :  { %v3698_v2 = vmax.f32 %v3688_v40, 0.0  ;;  %v4471_v40 = vld [vmem:[%s6432_s9] ss:$0 sm:$0xff] }
0x1824   :  { %5008 = vmatprep.mubr.msk.f32.mxu1 %vm310_vm1, %v3698_v2 }
0x1825   :  { %5009 = vmatmul.mubr.msk.f32.gmra.mrb[42].mxu1 %vm310_vm1, %v3699_v42 }
0x1826   :  { %5033 = vmatprep.mubr.msk.f32.mxu1 %vm310_vm1, %v6300_v62  ;;  %v4466_v62 = vld [vmem:[%s6429_s11] ss:$0 sm:$0xff] }
0x1829   :  { %5034 = vmatmul.mubr.msk.f32.vlgmr.msra.gmra.mrb[44].mxu1 %vm310_vm1, %v6302_v12 }
0x182a   :  { %5036 = vmatprep.mubr.msk.f32.mxu1 %vm310_vm1, %v3586_v15  ;;  %5302 = vmatpush3.bf16.msra.mxu1 %v5299_v21 }
0x182b   :  { %5304 = vmatprep.subr.bf16.mxu1 %v5303_v51 }
0x182d   :  { %5037 = vmatmul.mubr.msk.f32.gmra.mrb[46].mxu1 %vm310_vm1, %v3587_v16 }
0x182e   :  { %5306 = vmatpush3.bf16.msra.mxu1 %v5303_v51 }
0x1867   :  { %v5007_v44 = vpop.f32.mrb[40].mxu1 }
0x1868   :  { %v3795_v45 = vadd.f32 %v5007_v44, %v4456_v43  ;;  %v3789_v47 = vpop.f32.mrb[41].mxu1 }
0x1869   :  { %v3790_v48 = vadd.f32 %v4456_v43, %v3789_v47 }
0x186a   :  { %v3809_v37 = vmax.f32 %v3795_v45, 0.0 }
0x186b   :  { %v3808_v50 = vmax.f32 %v3790_v48, 0.0 }
0x186d   :  { %5019 = vmatprep.mubr.msk.f32.mxu0 %vm310_vm1, %v3808_v50 }
0x186e   :  { %5020 = vmatmul.mubr.msk.f32.vlgmr.msra.gmra.mrb[32].mxu0 %vm310_vm1, %v3809_v37 }
0x186f   :  { %5294 = vmatpush3.bf16.msra.mxu0 %v5291_v54 }
0x1870   :  { %5296 = vmatprep.subr.bf16.mxu0 %v5295_v57 }
0x1873   :  { %5298 = vmatpush3.bf16.msra.mxu0 %v5295_v57 }
0x18f8   :  { %v5010_v58 = vpop.f32.mrb[42].mxu1 }
0x18f9   :  { %v3805_v59 = vadd.f32 %v5010_v58, %v4456_v43  ;;  %v3799_v60 = vpop.f32.mrb[43].mxu1 }
0x18fa   :  { %v3800_v61 = vadd.f32 %v4456_v43, %v3799_v60 }
0x18fb   :  { %v3811_v11 = vmax.f32 %v3805_v59, 0.0 }
0x18fc   :  { %v3810_v12 = vmax.f32 %v3800_v61, 0.0  ;;  %v5035_v53 = vpop.f32.mrb[44].mxu1 }
0x18fd   :  { %v4039_v41 = vadd.f32 %v5035_v53, %v4466_v62  ;;  %v4033_v63 = vpop.f32.mrb[45].mxu1  ;;  %v3946_v53 = vld [vmem:[%s6431_s5 + $0x10] sm:$0xff] }
0x18fe   :  { %v4034_v46 = vadd.f32 %v4466_v62, %v4033_v63  ;;  %5022 = vmatprep.mubr.msk.f32.mxu0 %vm310_vm1, %v3810_v12  ;;  %v3947_v12 = vld [vmem:[%s6431_s5 + $0x18] sm:$0xff] }
0x18ff   :  { %5023 = vmatmul.mubr.msk.f32.gmra.mrb[34].mxu0 %vm310_vm1, %v3811_v11  ;;  %v4053_v1 = vmax.f32 %v4039_v41, 0.0 }
0x1900   :  { %v4052_v0 = vmax.f32 %v4034_v46, 0.0  ;;  %v5038_v5 = vpop.f32.mrb[46].mxu1 }
0x1901   :  { %v4049_v29 = vadd.f32 %v5038_v5, %v4466_v62  ;;  %v4043_v3 = vpop.f32.mrb[47].mxu1 }
0x1902   :  { %v4044_v4 = vadd.f32 %v4466_v62, %v4043_v3  ;;  %5047 = vmatprep.mubr.msk.f32.mxu0 %vm310_vm1, %v4052_v0  ;;  %v4476_v0 = vld [vmem:[%s5839_s27] ss:$0 sm:$0xff] }
0x1903   :  { %5048 = vmatmul.mubr.msk.f32.vlgmr.msra.gmra.mrb[36].mxu0 %vm310_vm1, %v4053_v1  ;;  %v4055_v7 = vmax.f32 %v4049_v29, 0.0 }
0x1904   :  { %v4054_v6 = vmax.f32 %v4044_v4, 0.0 }
0x1906   :  { %5050 = vmatprep.mubr.msk.f32.mxu0 %vm310_vm1, %v4054_v6 }
0x1907   :  { %5051 = vmatmul.mubr.msk.f32.gmra.mrb[38].mxu0 %vm310_vm1, %v4055_v7 }
0x1941   :  { %v5021_v9 = vpop.f32.mrb[32].mxu0 }
0x1942   :  { %v3907_v10 = vadd.f32 %v5021_v9, %v4461_v8  ;;  %v3901_v28 = vpop.f32.mrb[33].mxu0 }
0x1943   :  { %v3902_v14 = vadd.f32 %v4461_v8, %v3901_v28 }
0x1944   :  { %v3921_v15 = vsub.f32 0.0, %v3907_v10 }
0x1945   :  { %v3920_v16 = vsub.f32 0.0, %v3902_v14 }
0x1946   :  { %v3926_v13 = vmul.f32 1.442695, %v3921_v15 }
0x1947   :  { %v3924_v17 = vmul.f32 1.442695, %v3920_v16 }
0x1948   :  { %5541 = vpow2.f32 %v3926_v13 }
0x1949   :  { %5543 = vpow2.f32 %v3924_v17 }
0x1952   :  { %v5542_v19 = vpop.eup %5541 }
0x1953   :  { %v5544_v18 = vpop.eup %5543  ;;  %v3933_v20 = vadd.f32 1.0, %v5542_v19 }
0x1954   :  { %v3932_v24 = vadd.f32 1.0, %v5544_v18 }
0x1955   :  { %5545 = vrcp.f32 %v3933_v20 }
0x1956   :  { %5547 = vrcp.f32 %v3932_v24 }
0x195f   :  { %v5546_v31 = vpop.eup %5545 }
0x1960   :  { %v5548_v32 = vpop.eup %5547  ;;  %v3949_v33 = vmul.f32 %v5546_v31, %v3945_v26 }
0x1961   :  { %v3948_v34 = vmul.f32 %v5548_v32, %v3944_v27 }
0x1962   :  { %3953 = vst [vmem:[%s5844_s4 + $0x8] sm:$0xff] %v3949_v33 }
0x1963   :  { %3952 = vst [vmem:[%s5844_s4] sm:$0xff] %v3948_v34 }
0x19d2   :  { %v5024_v35 = vpop.f32.mrb[34].mxu0 }
0x19d3   :  { %v3917_v36 = vadd.f32 %v5024_v35, %v4461_v8  ;;  %v3911_v30 = vpop.f32.mrb[35].mxu0 }
0x19d4   :  { %v3912_v39 = vadd.f32 %v4461_v8, %v3911_v30 }
0x19d5   :  { %v3923_v2 = vsub.f32 0.0, %v3917_v36 }
0x19d6   :  { %v3922_v42 = vsub.f32 0.0, %v3912_v39  ;;  %v5049_v43 = vpop.f32.mrb[36].mxu0 }
0x19d7   :  { %v3930_v44 = vmul.f32 1.442695, %v3923_v2  ;;  %v4151_v45 = vadd.f32 %v5049_v43, %v4471_v40  ;;  %v4145_v47 = vpop.f32.mrb[37].mxu0 }
0x19d8   :  { %v3928_v48 = vmul.f32 1.442695, %v3922_v42  ;;  %v4146_v50 = vadd.f32 %v4471_v40, %v4145_v47 }
0x19d9   :  { %5549 = vpow2.f32 %v3930_v44  ;;  %v4165_v52 = vmax.f32 %v4151_v45, 0.0 }
0x19da   :  { %5551 = vpow2.f32 %v3928_v48  ;;  %v4164_v37 = vmax.f32 %v4146_v50, 0.0  ;;  %v5052_v38 = vpop.f32.mrb[38].mxu0 }
0x19db   :  { %v4161_v54 = vadd.f32 %v5052_v38, %v4471_v40  ;;  %v4155_v56 = vpop.f32.mrb[39].mxu0 }
0x19dc   :  { %v4156_v55 = vadd.f32 %v4471_v40, %v4155_v56  ;;  %5061 = vmatprep.mubr.msk.f32.mxu1 %vm310_vm1, %v4164_v37 }
0x19dd   :  { %5062 = vmatmul.mubr.msk.f32.vlgmr.msra.gmra.mrb[48].mxu1 %vm310_vm1, %v4165_v52  ;;  %v4167_v58 = vmax.f32 %v4161_v54, 0.0 }
0x19de   :  { %v4166_v57 = vmax.f32 %v4156_v55, 0.0 }
0x19e0   :  { %5064 = vmatprep.mubr.msk.f32.mxu1 %vm310_vm1, %v4166_v57 }
0x19e1   :  { %5065 = vmatmul.mubr.msk.f32.gmra.mrb[50].mxu1 %vm310_vm1, %v4167_v58 }
0x19e3   :  { %v5550_v59 = vpop.eup %5549 }
0x19e4   :  { %v5552_v60 = vpop.eup %5551  ;;  %v3935_v61 = vadd.f32 1.0, %v5550_v59 }
0x19e5   :  { %v3934_v62 = vadd.f32 1.0, %v5552_v60 }
0x19e6   :  { %5553 = vrcp.f32 %v3935_v61 }
0x19e7   :  { %5555 = vrcp.f32 %v3934_v62 }
0x19f0   :  { %v5554_v11 = vpop.eup %5553 }
0x19f1   :  { %v5556_v41 = vpop.eup %5555  ;;  %v3951_v63 = vmul.f32 %v5554_v11, %v3947_v12 }
0x19f2   :  { %v3950_v46 = vmul.f32 %v5556_v41, %v3946_v53 }
0x19f3   :  { %3955 = vst [vmem:[%s5844_s4 + $0x18] sm:$0xff] %v3951_v63 }
0x19f4   :  { %3954 = vst [vmem:[%s5844_s4 + $0x10] sm:$0xff] %v3950_v46 }
0x1ab0   :  { %v5063_v5 = vpop.f32.mrb[48].mxu1 }
0x1ab1   :  { %v4263_v1 = vadd.f32 %v5063_v5, %v4476_v0  ;;  %v4257_v29 = vpop.f32.mrb[49].mxu1 }
0x1ab2   :  { %v4258_v3 = vadd.f32 %v4476_v0, %v4257_v29 }
0x1ab3   :  { %4277 = vst [vmem:[#allocation3 + $0x8] sm:$0xff] %v4263_v1 }
0x1ab4   :  { %4276 = vst [vmem:[#allocation3] sm:$0xff] %v4258_v3  ;;  %v5066_v4 = vpop.f32.mrb[50].mxu1 }
0x1ab5   :  { %v4273_v6 = vadd.f32 %v5066_v4, %v4476_v0  ;;  %v4267_v7 = vpop.f32.mrb[51].mxu1 }
0x1ab6   :  { %v4268_v8 = vadd.f32 %v4476_v0, %v4267_v7 }
0x1ab7   :  { %4279 = vst [vmem:[#allocation3 + $0x18] sm:$0xff] %v4273_v6 }
0x1ab8   :  { %4278 = vst [vmem:[#allocation3 + $0x10] sm:$0xff] %v4268_v8 }
0x1ab9   :  { %5568 = shalt.err (!%p5565_p4)
}
0x1aba   :  { %s5569_s27 = scalar_lea.hbm %s5849_s13, 512 }
0x1abb   :  { %p5570_p5 = scmp.ne.s32.totalorder %s5849_s13, %s5569_s27  ;;  %p5573_p6 = scmp.lt.u32.totalorder %s5569_s27, %s5849_s13 }
0x1abd   :  { %p5575_p7 = pnand %p5573_p6, %p5570_p5 }
0x1abf   :  { %5578 = shalt.err (!%p5575_p7)
}
0x1ac0   :  { %s5629_s4 = smov 128   ;;  %s5630_s25 = smov 8  }
0x1ac1   :  { %4293 = dma.vmem_to_hbm [thread:$0]  %s4288_s17, 512, %s5849_s13, [#allocation4], %s5629_s4, %s5629_s4, %s5630_s25  }
0x1ac2   :  { %5579 = dma.done.wait [#allocation4], 512  }
0x1ac3   :  { %5580 = vsyncadd [#allocation4], 4294966784 }
0x1ac4   :  { %4299 = vsyncpa [#allocation4], 1 }

</bundles_post_ra>
